<compile_context>
chip_gen: v7x
topology: tpu7x:2x2x1
jax: 0.10.0
libtpu: 0.0.40
codegen_flags: <defaults>
</compile_context>

<pallas_src>
import math
import jax
import jax.numpy as jnp
from jax import lax
from jax.experimental import pallas as pl
from jax.experimental.pallas import tpu as pltpu


# --------------------------------------------------------------------------
# Generation-aware VMEM limit (queried lazily, memoized)
# --------------------------------------------------------------------------
_VMEM_LIMIT_CACHE = None


def _vmem_limit():
    global _VMEM_LIMIT_CACHE
    if _VMEM_LIMIT_CACHE is None:
        try:
            info = pltpu.get_tpu_info()
            cap = getattr(info, "vmem_capacity_bytes", 64 * 1024 * 1024)
        except Exception:
            cap = 64 * 1024 * 1024          # conservative (v7x-sized) fallback
        _VMEM_LIMIT_CACHE = int(min(96 * 1024 * 1024, cap * 3 // 4))
    return _VMEM_LIMIT_CACHE


# --------------------------------------------------------------------------
# Row-tiled matmul + bias kernel (input projections and final Linear).
# bf16 x bf16 -> f32 accumulation on the MXU.
# --------------------------------------------------------------------------
def _mm_bias_kernel(x_ref, w_ref, b_ref, o_ref):
    o_ref[...] = (
        jnp.dot(x_ref[...], w_ref[...], preferred_element_type=jnp.float32)
        + b_ref[...]
    )


def matmul_bias(x, w, b, *, tm=512):
    """x @ w + b.  x:[M,K] (any float), w:[K,N] (bf16), b:[N] (f32) -> [M,N] f32."""
    M, K = x.shape
    N = w.shape[1]
    x = x.astype(jnp.bfloat16)
    w = w.astype(jnp.bfloat16)
    b = b.reshape(1, N).astype(jnp.float32)
    tm_eff = min(tm, M)
    grid = (pl.cdiv(M, tm_eff),)           # partial last block handled by Pallas
    return pl.pallas_call(
        _mm_bias_kernel,
        out_shape=jax.ShapeDtypeStruct((M, N), jnp.float32),
        grid=grid,
        in_specs=[
            pl.BlockSpec((tm_eff, K), lambda i: (i, 0)),
            pl.BlockSpec((K, N), lambda i: (0, 0)),
            pl.BlockSpec((1, N), lambda i: (0, 0)),
        ],
        out_specs=pl.BlockSpec((tm_eff, N), lambda i: (i, 0)),
        compiler_params=pltpu.CompilerParams(
            dimension_semantics=("parallel",),
            vmem_limit_bytes=_vmem_limit(),
        ),
    )(x, w, b)


# --------------------------------------------------------------------------
# Fused bidirectional LSTM recurrence.
# Grid = (ndir,) marked "parallel" (v7x: one direction per TensorCore).
# Time loop is a lax.fori_loop inside the kernel; gx / W_hh / h_seq block and
# the h/c scratch are VMEM-resident for the whole sequence.
# --------------------------------------------------------------------------
def _bilstm_rec_kernel(gx_ref, whh_ref, h0_ref, c0_ref,
                       hseq_ref, cfin_ref, h_scr, c_scr):
    d = pl.program_id(0)                    # direction: 0 = forward, 1 = reverse
    T = gx_ref.shape[0]
    B, H = h_scr.shape

    h_scr[...] = h0_ref[0]
    c_scr[...] = c0_ref[0]

    def step(t, carry):
        # Forward consumes x[t]; reverse consumes x[T-1-t].  In both cases the
        # per-timestep output is written back at the same (read) time index.
        t_idx = lax.select(d == 0, t, T - 1 - t)

        # gates = (x @ Wih + b)  [precomputed, VMEM-resident]  +  h @ Whh
        gates = gx_ref[t_idx] + jnp.dot(
            h_scr[...].astype(whh_ref.dtype), whh_ref[0],
            preferred_element_type=jnp.float32)

        i = jax.nn.sigmoid(gates[:, 0:H])
        f = jax.nn.sigmoid(gates[:, H:2 * H])
        g = jnp.tanh(gates[:, 2 * H:3 * H])
        o = jax.nn.sigmoid(gates[:, 3 * H:4 * H])

        c_new = f * c_scr[...] + i * g
        h_new = o * jnp.tanh(c_new)

        c_scr[...] = c_new
        h_scr[...] = h_new
        hseq_ref[t_idx] = h_new
        return carry

    lax.fori_loop(0, T, step, 0)
    cfin_ref[0] = c_scr[...]                # final cell state, written once


def bilstm_layer(gx, whh, h0, c0):
    """Run all directions of one LSTM layer in a single pallas_call.

    gx : [T, B, ndir*4H] f32   precomputed x @ W_ih + (b_ih + b_hh), both dirs
    whh: [ndir, H, 4H]   bf16  recurrent weights (pre-transposed)
    h0 : [ndir, B, H]    f32
    c0 : [ndir, B, H]    f32
    Returns (h_seq [T, B, ndir*H] f32 in natural time order,
             c_fin [ndir, B, H] f32 final cell states)."""
    T, B, _ = gx.shape
    ndir, H, G = whh.shape                  # G == 4H

    h_seq, c_fin = pl.pallas_call(
        _bilstm_rec_kernel,
        out_shape=(jax.ShapeDtypeStruct((T, B, ndir * H), jnp.float32),
                   jax.ShapeDtypeStruct((ndir, B, H), jnp.float32)),
        grid=(ndir,),
        in_specs=[
            pl.BlockSpec((T, B, G), lambda d: (0, 0, d)),   # this dir's gates
            pl.BlockSpec((1, H, G), lambda d: (d, 0, 0)),   # resident W_hh
            pl.BlockSpec((1, B, H), lambda d: (d, 0, 0)),   # h0
            pl.BlockSpec((1, B, H), lambda d: (d, 0, 0)),   # c0
        ],
        out_specs=(
            pl.BlockSpec((T, B, H), lambda d: (0, 0, d)),   # column slab per dir
            pl.BlockSpec((1, B, H), lambda d: (d, 0, 0)),
        ),
        scratch_shapes=[pltpu.VMEM((B, H), jnp.float32),
                        pltpu.VMEM((B, H), jnp.float32)],
        compiler_params=pltpu.CompilerParams(
            dimension_semantics=("parallel",),              # dirs independent
            vmem_limit_bytes=_vmem_limit(),
        ),
    )(gx, whh, h0, c0)
    return h_seq, c_fin
    # TODO(synk): for very long sequences where gx is not fully VMEM-resident,
    # chunk T and double-buffer gx chunks with pltpu.emit_pipeline.


# --------------------------------------------------------------------------
# Parameters (matches torch.nn.LSTM / nn.Linear default init).
# Only arrays are stored in the pytree (no Python flags -> jit-safe).
# --------------------------------------------------------------------------
def make_params(key, dim, layers=2, bi=True):
    ndir = 2 if bi else 1
    n_rand = layers * ndir * 4 + (2 if bi else 0)
    keys = iter(jax.random.split(key, max(n_rand, 2)))

    def unif(shape, fan):
        bound = 1.0 / math.sqrt(fan)
        return jax.random.uniform(next(keys), shape, jnp.float32, -bound, bound)

    layer_params = []
    for li in range(layers):
        in_size = dim if li == 0 else ndir * dim
        wihs, whhs, bs = [], [], []
        for _ in range(ndir):
            wihs.append(unif((in_size, 4 * dim), dim))       # pre-transposed
            whhs.append(unif((dim, 4 * dim), dim))
            bs.append(unif((4 * dim,), dim) + unif((4 * dim,), dim))  # b_ih+b_hh
        layer_params.append(dict(
            wih=jnp.concatenate(wihs, axis=1).astype(jnp.bfloat16),  # [in, ndir*4H]
            whh=jnp.stack(whhs, axis=0).astype(jnp.bfloat16),        # [ndir, H, 4H]
            b=jnp.concatenate(bs, axis=0),                           # [ndir*4H] f32
        ))

    params = dict(layers=layer_params)
    if bi:
        params["lin_w"] = unif((2 * dim, dim), 2 * dim).astype(jnp.bfloat16)
        params["lin_b"] = unif((dim,), 2 * dim)
    return params


# --------------------------------------------------------------------------
# Forward pass (mirrors BLSTM.forward)
# --------------------------------------------------------------------------
def blstm_forward(x, params, hidden=None):
    """x: [T, B, dim] (seq-first, like torch).  Returns (y, (h_n, c_n))."""
    T, B, D = x.shape
    layers = params["layers"]
    bi = "lin_w" in params                  # pytree structure -> static
    n_layers = len(layers)
    ndir = layers[0]["whh"].shape[0]        # static shape -> static
    H = D

    if hidden is not None:
        h0_all, c0_all = hidden
        h0_all = h0_all.astype(jnp.float32)
        c0_all = c0_all.astype(jnp.float32)
    else:
        h0_all = jnp.zeros((n_layers * ndir, B, H), jnp.float32)
        c0_all = jnp.zeros((n_layers * ndir, B, H), jnp.float32)

    h_finals, c_finals = [], []
    inp = x.astype(jnp.float32)
    for li, lp in enumerate(layers):
        # 1) fused input projection for BOTH directions over all timesteps
        gx = matmul_bias(inp.reshape(T * B, -1), lp["wih"], lp["b"])
        gx = gx.reshape(T, B, ndir * 4 * H)
        # 2) fused bidirectional recurrence (one pallas_call per layer)
        h0 = h0_all[li * ndir:(li + 1) * ndir]
        c0 = c0_all[li * ndir:(li + 1) * ndir]
        h_seq, c_fin = bilstm_layer(gx, lp["whh"], h0, c0)

        # final hidden states in torch ordering (layer-major, then direction)
        h_finals.append(h_seq[T - 1, :, 0:H])
        if ndir == 2:
            h_finals.append(h_seq[0, :, H:2 * H])
        for dd in range(ndir):
            c_finals.append(c_fin[dd])

        inp = h_seq                          # already [T, B, ndir*H], no concat

    if bi:
        y = matmul_bias(inp.reshape(T * B, ndir * H),
                        params["lin_w"], params["lin_b"]).reshape(T, B, H)
    else:
        y = inp

    h_n = jnp.stack(h_finals, axis=0)
    c_n = jnp.stack(c_finals, axis=0)
    return y, (h_n, c_n)


# --------------------------------------------------------------------------
if __name__ == "__main__":
    key = jax.random.PRNGKey(0)
    pkey, xkey = jax.random.split(key)

    dim = 128          # lane-aligned hidden size (gate block = 4H = 512 cols)
    T, B = 24, 4
    params = make_params(pkey, dim=dim, layers=2, bi=True)
    x = jax.random.normal(xkey, (T, B, dim), jnp.float32)

    fwd = jax.jit(blstm_forward)
    y, (h_n, c_n) = jax.block_until_ready(fwd(x, params))

    assert y.shape == (T, B, dim), y.shape
    assert h_n.shape == (4, B, dim), h_n.shape
    assert c_n.shape == (4, B, dim), c_n.shape
    assert bool(jnp.all(jnp.isfinite(y)))
    assert bool(jnp.all(jnp.isfinite(h_n))) and bool(jnp.all(jnp.isfinite(c_n)))
    print("KERNEL_OK")
</pallas_src>

<mosaic_0001>
module attributes {stable_mosaic.version = 11 : i64} {
  func.func @_mm_bias_kernel(%arg0: i32, %arg1: memref<96x128xbf16, #tpu.memory_space<vmem>>, %arg2: memref<128x1024xbf16, #tpu.memory_space<vmem>>, %arg3: memref<1x1024xf32, #tpu.memory_space<vmem>>, %arg4: memref<96x1024xf32, #tpu.memory_space<vmem>>) attributes {dimension_semantics = [#tpu.dimension_semantics<parallel>], iteration_bounds = array<i64: 1>, scalar_prefetch = 0 : i64, scratch_operands = 0 : i64, tpu.core_type = #tpu.core_type<tc>, window_params = [{transform_indices = @transform_0, window_bounds = array<i64: 96, 128>}, {pipeline_mode = #tpu.pipeline_mode<synchronous>, transform_indices = @transform_1, window_bounds = array<i64: 128, 1024>}, {pipeline_mode = #tpu.pipeline_mode<synchronous>, transform_indices = @transform_2, window_bounds = array<i64: 1, 1024>}, {transform_indices = @transform_3, window_bounds = array<i64: 96, 1024>}]} {
    %c0 = arith.constant 0 : index
    %c0_0 = arith.constant 0 : index
    %0 = vector.load %arg1[%c0, %c0_0] : memref<96x128xbf16, #tpu.memory_space<vmem>>, vector<96x128xbf16>
    %c0_1 = arith.constant 0 : index
    %c0_2 = arith.constant 0 : index
    %1 = vector.load %arg2[%c0_1, %c0_2] : memref<128x1024xbf16, #tpu.memory_space<vmem>>, vector<128x1024xbf16>
    %cst = arith.constant dense<0.000000e+00> : vector<96x1024xf32>
    %2 = tpu.matmul %0, %1, %cst {dimension_numbers = #tpu.dot_dimension_numbers<[1], [0], [0], [1], [0, 0, 1, 1], [], []>} : vector<96x128xbf16>, vector<128x1024xbf16>, vector<96x1024xf32> -> vector<96x1024xf32>
    %c0_3 = arith.constant 0 : index
    %c0_4 = arith.constant 0 : index
    %3 = vector.load %arg3[%c0_3, %c0_4] : memref<1x1024xf32, #tpu.memory_space<vmem>>, vector<1x1024xf32>
    %4 = vector.broadcast %3 : vector<1x1024xf32> to vector<96x1024xf32>
    %5 = arith.addf %2, %4 : vector<96x1024xf32>
    %c0_5 = arith.constant 0 : index
    %c0_6 = arith.constant 0 : index
    %6 = vector.load %arg4[%c0_5, %c0_6] : memref<96x1024xf32, #tpu.memory_space<vmem>>, vector<96x1024xf32>
    tpu.vector_store %arg4[%c0_5, %c0_6], %5 {strides = array<i32>} : memref<96x1024xf32, #tpu.memory_space<vmem>>, vector<96x1024xf32>,
    return
  }
  func.func @transform_0(%arg0: i32) -> (i32, i32) {
    %c0_i32 = arith.constant 0 : i32
    %c0_i32_0 = arith.constant 0 : i32
    return %arg0, %c0_i32 : i32, i32
  }
  func.func @transform_1(%arg0: i32) -> (i32, i32) {
    %c0_i32 = arith.constant 0 : i32
    %c0_i32_0 = arith.constant 0 : i32
    %c0_i32_1 = arith.constant 0 : i32
    return %c0_i32, %c0_i32_0 : i32, i32
  }
  func.func @transform_2(%arg0: i32) -> (i32, i32) {
    %c0_i32 = arith.constant 0 : i32
    %c0_i32_0 = arith.constant 0 : i32
    %c0_i32_1 = arith.constant 0 : i32
    return %c0_i32, %c0_i32_0 : i32, i32
  }
  func.func @transform_3(%arg0: i32) -> (i32, i32) {
    %c0_i32 = arith.constant 0 : i32
    %c0_i32_0 = arith.constant 0 : i32
    return %arg0, %c0_i32 : i32, i32
  }
}

module attributes {stable_mosaic.version = 11 : i64} {
  func.func @_bilstm_rec_kernel(%arg0: i32, %arg1: memref<24x4x512xf32, #tpu.memory_space<vmem>>, %arg2: memref<1x128x512xbf16, #tpu.memory_space<vmem>>, %arg3: memref<1x4x128xf32, #tpu.memory_space<vmem>>, %arg4: memref<1x4x128xf32, #tpu.memory_space<vmem>>, %arg5: memref<24x4x128xf32, #tpu.memory_space<vmem>>, %arg6: memref<1x4x128xf32, #tpu.memory_space<vmem>>, %arg7: memref<4x128xf32, #tpu.memory_space<vmem>>, %arg8: memref<4x128xf32, #tpu.memory_space<vmem>>) attributes {dimension_semantics = [#tpu.dimension_semantics<parallel>], iteration_bounds = array<i64: 2>, scalar_prefetch = 0 : i64, scratch_operands = 2 : i64, tpu.core_type = #tpu.core_type<tc>, window_params = [{transform_indices = @transform_0, window_bounds = array<i64: 24, 4, 512>}, {transform_indices = @transform_1, window_bounds = array<i64: 1, 128, 512>}, {transform_indices = @transform_2, window_bounds = array<i64: 1, 4, 128>}, {transform_indices = @transform_3, window_bounds = array<i64: 1, 4, 128>}, {transform_indices = @transform_4, window_bounds = array<i64: 24, 4, 128>}, {transform_indices = @transform_5, window_bounds = array<i64: 1, 4, 128>}]} {
    %c0 = arith.constant 0 : index
    %c0_0 = arith.constant 0 : index
    %c0_1 = arith.constant 0 : index
    %0 = vector.load %arg3[%c0, %c0_0, %c0_1] : memref<1x4x128xf32, #tpu.memory_space<vmem>>, vector<1x4x128xf32>
    %1 = vector.shape_cast %0 : vector<1x4x128xf32> to vector<4x128xf32>
    %c0_2 = arith.constant 0 : index
    %c0_3 = arith.constant 0 : index
    %2 = vector.load %arg7[%c0_2, %c0_3] : memref<4x128xf32, #tpu.memory_space<vmem>>, vector<4x128xf32>
    tpu.vector_store %arg7[%c0_2, %c0_3], %1 {strides = array<i32>} : memref<4x128xf32, #tpu.memory_space<vmem>>, vector<4x128xf32>,
    %c0_4 = arith.constant 0 : index
    %c0_5 = arith.constant 0 : index
    %c0_6 = arith.constant 0 : index
    %3 = vector.load %arg4[%c0_4, %c0_5, %c0_6] : memref<1x4x128xf32, #tpu.memory_space<vmem>>, vector<1x4x128xf32>
    %4 = vector.shape_cast %3 : vector<1x4x128xf32> to vector<4x128xf32>
    %c0_7 = arith.constant 0 : index
    %c0_8 = arith.constant 0 : index
    %5 = vector.load %arg8[%c0_7, %c0_8] : memref<4x128xf32, #tpu.memory_space<vmem>>, vector<4x128xf32>
    tpu.vector_store %arg8[%c0_7, %c0_8], %4 {strides = array<i32>} : memref<4x128xf32, #tpu.memory_space<vmem>>, vector<4x128xf32>,
    %c0_i32 = arith.constant 0 : i32
    %c24_i32 = arith.constant 24 : i32
    %6 = arith.addi %c0_i32, %c24_i32 : i32
    %c1_i32 = arith.constant 1 : i32
    scf.for %arg9 = %c0_i32 to %6 step %c1_i32  : i32 {
      %c0_i32_15 = arith.constant 0 : i32
      %11 = arith.cmpi eq, %arg0, %c0_i32_15 : i32
      %c23_i32 = arith.constant 23 : i32
      %12 = arith.subi %c23_i32, %arg9 : i32
      %13 = arith.select %11, %arg9, %12 : i32
      %14 = arith.index_cast %13 : i32 to index
      %c0_16 = arith.constant 0 : index
      %c0_17 = arith.constant 0 : index
      %15 = vector.load %arg1[%14, %c0_16, %c0_17] : memref<24x4x512xf32, #tpu.memory_space<vmem>>, vector<1x4x512xf32>
      %16 = vector.shape_cast %15 : vector<1x4x512xf32> to vector<4x512xf32>
      %c0_18 = arith.constant 0 : index
      %c0_19 = arith.constant 0 : index
      %17 = vector.load %arg7[%c0_18, %c0_19] : memref<4x128xf32, #tpu.memory_space<vmem>>, vector<4x128xf32>
      %18 = arith.truncf %17 : vector<4x128xf32> to vector<4x128xbf16>
      %c0_20 = arith.constant 0 : index
      %c0_21 = arith.constant 0 : index
      %c0_22 = arith.constant 0 : index
      %19 = vector.load %arg2[%c0_20, %c0_21, %c0_22] : memref<1x128x512xbf16, #tpu.memory_space<vmem>>, vector<1x128x512xbf16>
      %20 = vector.shape_cast %19 : vector<1x128x512xbf16> to vector<128x512xbf16>
      %cst = arith.constant dense<0.000000e+00> : vector<4x512xf32>
      %21 = tpu.matmul %18, %20, %cst {dimension_numbers = #tpu.dot_dimension_numbers<[1], [0], [0], [1], [0, 0, 1, 1], [], []>} : vector<4x128xbf16>, vector<128x512xbf16>, vector<4x512xf32> -> vector<4x512xf32>
      %22 = arith.addf %16, %21 : vector<4x512xf32>
      %23 = vector.extract_strided_slice %22 {offsets = [0, 0], sizes = [4, 128], strides = [1, 1]} : vector<4x512xf32> to vector<4x128xf32>
      %24 = arith.negf %23 : vector<4x128xf32>
      %25 = math.exp %24 : vector<4x128xf32>
      %cst_23 = arith.constant 1.000000e+00 : f32
      %26 = vector.broadcast %cst_23 : f32 to vector<4x128xf32>
      %27 = arith.addf %26, %25 : vector<4x128xf32>
      %28 = arith.divf %26, %27 : vector<4x128xf32>
      %29 = vector.extract_strided_slice %22 {offsets = [0, 128], sizes = [4, 128], strides = [1, 1]} : vector<4x512xf32> to vector<4x128xf32>
      %30 = arith.negf %29 : vector<4x128xf32>
      %31 = math.exp %30 : vector<4x128xf32>
      %cst_24 = arith.constant 1.000000e+00 : f32
      %32 = vector.broadcast %cst_24 : f32 to vector<4x128xf32>
      %33 = arith.addf %32, %31 : vector<4x128xf32>
      %34 = arith.divf %32, %33 : vector<4x128xf32>
      %35 = vector.extract_strided_slice %22 {offsets = [0, 256], sizes = [4, 128], strides = [1, 1]} : vector<4x512xf32> to vector<4x128xf32>
      %36 = math.tanh %35 : vector<4x128xf32>
      %37 = vector.extract_strided_slice %22 {offsets = [0, 384], sizes = [4, 128], strides = [1, 1]} : vector<4x512xf32> to vector<4x128xf32>
      %38 = arith.negf %37 : vector<4x128xf32>
      %39 = math.exp %38 : vector<4x128xf32>
      %cst_25 = arith.constant 1.000000e+00 : f32
      %40 = vector.broadcast %cst_25 : f32 to vector<4x128xf32>
      %41 = arith.addf %40, %39 : vector<4x128xf32>
      %42 = arith.divf %40, %41 : vector<4x128xf32>
      %c0_26 = arith.constant 0 : index
      %c0_27 = arith.constant 0 : index
      %43 = vector.load %arg8[%c0_26, %c0_27] : memref<4x128xf32, #tpu.memory_space<vmem>>, vector<4x128xf32>
      %44 = arith.mulf %34, %43 : vector<4x128xf32>
      %45 = arith.mulf %28, %36 : vector<4x128xf32>
      %46 = arith.addf %44, %45 : vector<4x128xf32>
      %47 = math.tanh %46 : vector<4x128xf32>
      %48 = arith.mulf %42, %47 : vector<4x128xf32>
      %c0_28 = arith.constant 0 : index
      %c0_29 = arith.constant 0 : index
      %49 = vector.load %arg8[%c0_28, %c0_29] : memref<4x128xf32, #tpu.memory_space<vmem>>, vector<4x128xf32>
      tpu.vector_store %arg8[%c0_28, %c0_29], %46 {strides = array<i32>} : memref<4x128xf32, #tpu.memory_space<vmem>>, vector<4x128xf32>,
      %c0_30 = arith.constant 0 : index
      %c0_31 = arith.constant 0 : index
      %50 = vector.load %arg7[%c0_30, %c0_31] : memref<4x128xf32, #tpu.memory_space<vmem>>, vector<4x128xf32>
      tpu.vector_store %arg7[%c0_30, %c0_31], %48 {strides = array<i32>} : memref<4x128xf32, #tpu.memory_space<vmem>>, vector<4x128xf32>,
      %51 = arith.index_cast %13 : i32 to index
      %c0_32 = arith.constant 0 : index
      %c0_33 = arith.constant 0 : index
      %52 = vector.load %arg5[%51, %c0_32, %c0_33] : memref<24x4x128xf32, #tpu.memory_space<vmem>>, vector<1x4x128xf32>
      %53 = vector.shape_cast %52 : vector<1x4x128xf32> to vector<4x128xf32>
      %54 = vector.shape_cast %48 : vector<4x128xf32> to vector<1x4x128xf32>
      tpu.vector_store %arg5[%51, %c0_32, %c0_33], %54 {strides = array<i32>} : memref<24x4x128xf32, #tpu.memory_space<vmem>>, vector<1x4x128xf32>,
    }
    %c24_i32_9 = arith.constant 24 : i32
    %c0_10 = arith.constant 0 : index
    %c0_11 = arith.constant 0 : index
    %7 = vector.load %arg8[%c0_10, %c0_11] : memref<4x128xf32, #tpu.memory_space<vmem>>, vector<4x128xf32>
    %c0_12 = arith.constant 0 : index
    %c0_13 = arith.constant 0 : index
    %c0_14 = arith.constant 0 : index
    %8 = vector.load %arg6[%c0_12, %c0_13, %c0_14] : memref<1x4x128xf32, #tpu.memory_space<vmem>>, vector<1x4x128xf32>
    %9 = vector.shape_cast %8 : vector<1x4x128xf32> to vector<4x128xf32>
    %10 = vector.shape_cast %7 : vector<4x128xf32> to vector<1x4x128xf32>
    tpu.vector_store %arg6[%c0_12, %c0_13, %c0_14], %10 {strides = array<i32>} : memref<1x4x128xf32, #tpu.memory_space<vmem>>, vector<1x4x128xf32>,
    return
  }
  func.func @transform_0(%arg0: i32) -> (i32, i32, i32) {
    %c0_i32 = arith.constant 0 : i32
    %c0_i32_0 = arith.constant 0 : i32
    %c0_i32_1 = arith.constant 0 : i32
    return %c0_i32, %c0_i32_0, %arg0 : i32, i32, i32
  }
  func.func @transform_1(%arg0: i32) -> (i32, i32, i32) {
    %c0_i32 = arith.constant 0 : i32
    %c0_i32_0 = arith.constant 0 : i32
    %c0_i32_1 = arith.constant 0 : i32
    return %arg0, %c0_i32, %c0_i32_0 : i32, i32, i32
  }
  func.func @transform_2(%arg0: i32) -> (i32, i32, i32) {
    %c0_i32 = arith.constant 0 : i32
    %c0_i32_0 = arith.constant 0 : i32
    %c0_i32_1 = arith.constant 0 : i32
    return %arg0, %c0_i32, %c0_i32_0 : i32, i32, i32
  }
  func.func @transform_3(%arg0: i32) -> (i32, i32, i32) {
    %c0_i32 = arith.constant 0 : i32
    %c0_i32_0 = arith.constant 0 : i32
    %c0_i32_1 = arith.constant 0 : i32
    return %arg0, %c0_i32, %c0_i32_0 : i32, i32, i32
  }
  func.func @transform_4(%arg0: i32) -> (i32, i32, i32) {
    %c0_i32 = arith.constant 0 : i32
    %c0_i32_0 = arith.constant 0 : i32
    %c0_i32_1 = arith.constant 0 : i32
    return %c0_i32, %c0_i32_0, %arg0 : i32, i32, i32
  }
  func.func @transform_5(%arg0: i32) -> (i32, i32, i32) {
    %c0_i32 = arith.constant 0 : i32
    %c0_i32_0 = arith.constant 0 : i32
    %c0_i32_1 = arith.constant 0 : i32
    return %arg0, %c0_i32, %c0_i32_0 : i32, i32, i32
  }
}

module attributes {stable_mosaic.version = 11 : i64} {
  func.func @_mm_bias_kernel(%arg0: i32, %arg1: memref<96x256xbf16, #tpu.memory_space<vmem>>, %arg2: memref<256x1024xbf16, #tpu.memory_space<vmem>>, %arg3: memref<1x1024xf32, #tpu.memory_space<vmem>>, %arg4: memref<96x1024xf32, #tpu.memory_space<vmem>>) attributes {dimension_semantics = [#tpu.dimension_semantics<parallel>], iteration_bounds = array<i64: 1>, scalar_prefetch = 0 : i64, scratch_operands = 0 : i64, tpu.core_type = #tpu.core_type<tc>, window_params = [{transform_indices = @transform_0, window_bounds = array<i64: 96, 256>}, {pipeline_mode = #tpu.pipeline_mode<synchronous>, transform_indices = @transform_1, window_bounds = array<i64: 256, 1024>}, {pipeline_mode = #tpu.pipeline_mode<synchronous>, transform_indices = @transform_2, window_bounds = array<i64: 1, 1024>}, {transform_indices = @transform_3, window_bounds = array<i64: 96, 1024>}]} {
    %c0 = arith.constant 0 : index
    %c0_0 = arith.constant 0 : index
    %0 = vector.load %arg1[%c0, %c0_0] : memref<96x256xbf16, #tpu.memory_space<vmem>>, vector<96x256xbf16>
    %c0_1 = arith.constant 0 : index
    %c0_2 = arith.constant 0 : index
    %1 = vector.load %arg2[%c0_1, %c0_2] : memref<256x1024xbf16, #tpu.memory_space<vmem>>, vector<256x1024xbf16>
    %cst = arith.constant dense<0.000000e+00> : vector<96x1024xf32>
    %2 = tpu.matmul %0, %1, %cst {dimension_numbers = #tpu.dot_dimension_numbers<[1], [0], [0], [1], [0, 0, 1, 1], [], []>} : vector<96x256xbf16>, vector<256x1024xbf16>, vector<96x1024xf32> -> vector<96x1024xf32>
    %c0_3 = arith.constant 0 : index
    %c0_4 = arith.constant 0 : index
    %3 = vector.load %arg3[%c0_3, %c0_4] : memref<1x1024xf32, #tpu.memory_space<vmem>>, vector<1x1024xf32>
    %4 = vector.broadcast %3 : vector<1x1024xf32> to vector<96x1024xf32>
    %5 = arith.addf %2, %4 : vector<96x1024xf32>
    %c0_5 = arith.constant 0 : index
    %c0_6 = arith.constant 0 : index
    %6 = vector.load %arg4[%c0_5, %c0_6] : memref<96x1024xf32, #tpu.memory_space<vmem>>, vector<96x1024xf32>
    tpu.vector_store %arg4[%c0_5, %c0_6], %5 {strides = array<i32>} : memref<96x1024xf32, #tpu.memory_space<vmem>>, vector<96x1024xf32>,
    return
  }
  func.func @transform_0(%arg0: i32) -> (i32, i32) {
    %c0_i32 = arith.constant 0 : i32
    %c0_i32_0 = arith.constant 0 : i32
    return %arg0, %c0_i32 : i32, i32
  }
  func.func @transform_1(%arg0: i32) -> (i32, i32) {
    %c0_i32 = arith.constant 0 : i32
    %c0_i32_0 = arith.constant 0 : i32
    %c0_i32_1 = arith.constant 0 : i32
    return %c0_i32, %c0_i32_0 : i32, i32
  }
  func.func @transform_2(%arg0: i32) -> (i32, i32) {
    %c0_i32 = arith.constant 0 : i32
    %c0_i32_0 = arith.constant 0 : i32
    %c0_i32_1 = arith.constant 0 : i32
    return %c0_i32, %c0_i32_0 : i32, i32
  }
  func.func @transform_3(%arg0: i32) -> (i32, i32) {
    %c0_i32 = arith.constant 0 : i32
    %c0_i32_0 = arith.constant 0 : i32
    return %arg0, %c0_i32 : i32, i32
  }
}

module attributes {stable_mosaic.version = 11 : i64} {
  func.func @_mm_bias_kernel(%arg0: i32, %arg1: memref<96x256xbf16, #tpu.memory_space<vmem>>, %arg2: memref<256x128xbf16, #tpu.memory_space<vmem>>, %arg3: memref<1x128xf32, #tpu.memory_space<vmem>>, %arg4: memref<96x128xf32, #tpu.memory_space<vmem>>) attributes {dimension_semantics = [#tpu.dimension_semantics<parallel>], iteration_bounds = array<i64: 1>, scalar_prefetch = 0 : i64, scratch_operands = 0 : i64, tpu.core_type = #tpu.core_type<tc>, window_params = [{transform_indices = @transform_0, window_bounds = array<i64: 96, 256>}, {pipeline_mode = #tpu.pipeline_mode<synchronous>, transform_indices = @transform_1, window_bounds = array<i64: 256, 128>}, {pipeline_mode = #tpu.pipeline_mode<synchronous>, transform_indices = @transform_2, window_bounds = array<i64: 1, 128>}, {transform_indices = @transform_3, window_bounds = array<i64: 96, 128>}]} {
    %c0 = arith.constant 0 : index
    %c0_0 = arith.constant 0 : index
    %0 = vector.load %arg1[%c0, %c0_0] : memref<96x256xbf16, #tpu.memory_space<vmem>>, vector<96x256xbf16>
    %c0_1 = arith.constant 0 : index
    %c0_2 = arith.constant 0 : index
    %1 = vector.load %arg2[%c0_1, %c0_2] : memref<256x128xbf16, #tpu.memory_space<vmem>>, vector<256x128xbf16>
    %cst = arith.constant dense<0.000000e+00> : vector<96x128xf32>
    %2 = tpu.matmul %0, %1, %cst {dimension_numbers = #tpu.dot_dimension_numbers<[1], [0], [0], [1], [0, 0, 1, 1], [], []>} : vector<96x256xbf16>, vector<256x128xbf16>, vector<96x128xf32> -> vector<96x128xf32>
    %c0_3 = arith.constant 0 : index
    %c0_4 = arith.constant 0 : index
    %3 = vector.load %arg3[%c0_3, %c0_4] : memref<1x128xf32, #tpu.memory_space<vmem>>, vector<1x128xf32>
    %4 = vector.broadcast %3 : vector<1x128xf32> to vector<96x128xf32>
    %5 = arith.addf %2, %4 : vector<96x128xf32>
    %c0_5 = arith.constant 0 : index
    %c0_6 = arith.constant 0 : index
    %6 = vector.load %arg4[%c0_5, %c0_6] : memref<96x128xf32, #tpu.memory_space<vmem>>, vector<96x128xf32>
    tpu.vector_store %arg4[%c0_5, %c0_6], %5 {strides = array<i32>} : memref<96x128xf32, #tpu.memory_space<vmem>>, vector<96x128xf32>,
    return
  }
  func.func @transform_0(%arg0: i32) -> (i32, i32) {
    %c0_i32 = arith.constant 0 : i32
    %c0_i32_0 = arith.constant 0 : i32
    return %arg0, %c0_i32 : i32, i32
  }
  func.func @transform_1(%arg0: i32) -> (i32, i32) {
    %c0_i32 = arith.constant 0 : i32
    %c0_i32_0 = arith.constant 0 : i32
    %c0_i32_1 = arith.constant 0 : i32
    return %c0_i32, %c0_i32_0 : i32, i32
  }
  func.func @transform_2(%arg0: i32) -> (i32, i32) {
    %c0_i32 = arith.constant 0 : i32
    %c0_i32_0 = arith.constant 0 : i32
    %c0_i32_1 = arith.constant 0 : i32
    return %c0_i32, %c0_i32_0 : i32, i32
  }
  func.func @transform_3(%arg0: i32) -> (i32, i32) {
    %c0_i32 = arith.constant 0 : i32
    %c0_i32_0 = arith.constant 0 : i32
    return %arg0, %c0_i32 : i32, i32
  }
}

</mosaic_0001>

<bundles_post_ra>
// kernel: blstm_forward.6
= control target key start
LH: loop header
LB: loop body
LE: loop exit
PB: predicated region body
PF: predicated region fallthrough
CT: control target
= control target key end

     0   :  { %s1231_s18 = smov 0   ;;  %s1233_s19 = smov 0   ;;  %s1522_s0 = inlined_call_operand.vmem [shape: f32[24,4,1024], index: 0, kind: input, shape index: {}]   ;;  %s1523_s1 = inlined_call_operand.vmem [shape: bf16[2,128,512], index: 1, kind: input, shape index: {}]   ;;  %s1524_s2 = inlined_call_operand.vmem [shape: f32[2,4,128], index: 2, kind: input, shape index: {}, may-alias: {2,3}]   ;;  %s1525_s3 = inlined_call_operand.vmem [shape: f32[2,4,128], index: 3, kind: input, shape index: {}, may-alias: {2,3}]   ;;  %s1526_s4 = inlined_call_operand.vmem [shape: f32[24,4,256], index: 4, kind: output, shape index: {0}]   ;;  %s1527_s5 = inlined_call_operand.vmem [shape: f32[2,4,128], index: 5, kind: output, shape index: {1}]  }
   0x1   :  { %s1235_s20 = smov 0  }
   0x2 LB: > { %s1247_s21 = sadd.s32 4294967295, %s1194_s20   ;;  %s1250_s22 = sadd.s32 1, %s1194_s20   ;;  %s1194_s20 = sphi %s1235_s20, %s1531_s20   ;;  %s1190_s19 = sphi %s1233_s19, %s1530_s19   ;;  %s1186_s18 = sphi %s1231_s18, %s1529_s18  }
   0x3   : > { %s20_s23 = ssub.s32 %s1194_s20, %s1250_s22  ;;  %s23_s24 = sadd.s32 1, %s1190_s19 }
   0x4   : > { %p21_p0 = scmp.eq.s32.totalorder %s20_s23, 0  ;;  %p30_p1 = scmp.ne.s32.totalorder %s1190_s19, %s1186_s18 }
   0x5   : > { %p31_p2 = scmp.eq.s32.totalorder %s1194_s20, 0  ;;  %p138_p3 = scmp.eq.s32.totalorder %s1247_s21, 1 }
   0x6   : > { %s1260_s25 = scalar_select %p21_p0, %s1190_s19, %s23_s24  }
   0x7   : > { %p32_p4 = por %p31_p2, %p30_p1  ;;  %p1262_p5 = por %p138_p3, %p30_p1 }
   0x8   : > { %p1016_p6 = scmp.ge.s32.totalorder %s1194_s20, 2 }
   0xa   : > { %186 = sbr.rel (%p1016_p6) target bundleno = 45 (0x2d), region = 16 }
  0x11   : > { %189 = sbr.rel (!%p32_p4) target bundleno = 45 (0x2d), region = 20  ;;  %s191_s27 = sand.u32 (%p32_p4), 1, %s1190_s19  }
  0x12   : > { %s1065_s28 = sshll.u32 (%p32_p4), %s1194_s20, 4  ;;  %s1068_s29 = smul.u32 (%p32_p4), 384, %s191_s27 }
  0x13   : > { %s1272_s7 = scalar_lea.vmem (%p32_p4), %s1522_s0, %s1065_s28 }
  0x14   : > { %v209_v0 = vld [vmem:[%s1272_s7] sm:$0xff] (%p32_p4)  ;;  %v211_v1 = vld [vmem:[%s1272_s7 + $0x8] sm:$0xff] (%p32_p4)  ;;  %s1280_s8 = scalar_lea.vmem (%p32_p4), [#allocation4], %s1068_s29 }
  0x15   : > { %v213_v2 = vld [vmem:[%s1272_s7 + $0x20] sm:$0xff] (%p32_p4)  ;;  %v215_v3 = vld [vmem:[%s1272_s7 + $0x28] sm:$0xff] (%p32_p4)  ;;  %210 = vst [vmem:[%s1280_s8] sm:$0xff] (%p32_p4), %v209_v0  ;;  %212 = vst [vmem:[%s1280_s8 + $0x8] sm:$0xff] (%p32_p4), %v211_v1 }
  0x16   : > { %v217_v4 = vld [vmem:[%s1272_s7 + $0x40] sm:$0xff] (%p32_p4)  ;;  %v219_v5 = vld [vmem:[%s1272_s7 + $0x48] sm:$0xff] (%p32_p4)  ;;  %214 = vst [vmem:[%s1280_s8 + $0x10] sm:$0xff] (%p32_p4), %v213_v2  ;;  %216 = vst [vmem:[%s1280_s8 + $0x18] sm:$0xff] (%p32_p4), %v215_v3 }
  0x17   : > { %218 = vst [vmem:[%s1280_s8 + $0x20] sm:$0xff] (%p32_p4), %v217_v4  ;;  %220 = vst [vmem:[%s1280_s8 + $0x28] sm:$0xff] (%p32_p4), %v219_v5  ;;  %v221_v6 = vld [vmem:[%s1272_s7 + $0x60] sm:$0xff] (%p32_p4)  ;;  %v223_v7 = vld [vmem:[%s1272_s7 + $0x68] sm:$0xff] (%p32_p4) }
  0x18   : > { %v225_v8 = vld [vmem:[%s1272_s7 + $0x80] sm:$0xff]  ;;  %222 = vst [vmem:[%s1280_s8 + $0x30] sm:$0xff] %v221_v6  ;;  %224 = vst [vmem:[%s1280_s8 + $0x38] sm:$0xff] %v223_v7  ;;  %v227_v9 = vld [vmem:[%s1272_s7 + $0x88] sm:$0xff] }
  0x19   : > { %226 = vst [vmem:[%s1280_s8 + $0x40] sm:$0xff] %v225_v8  ;;  %v229_v10 = vld [vmem:[%s1272_s7 + $0xa0] sm:$0xff]  ;;  %v231_v11 = vld [vmem:[%s1272_s7 + $0xa8] sm:$0xff]  ;;  %228 = vst [vmem:[%s1280_s8 + $0x48] sm:$0xff] %v227_v9 }
  0x1a   : > { %230 = vst [vmem:[%s1280_s8 + $0x50] sm:$0xff] %v229_v10  ;;  %232 = vst [vmem:[%s1280_s8 + $0x58] sm:$0xff] %v231_v11  ;;  %v233_v12 = vld [vmem:[%s1272_s7 + $0xc0] sm:$0xff]  ;;  %v235_v13 = vld [vmem:[%s1272_s7 + $0xc8] sm:$0xff] }
  0x1b   : > { %v237_v14 = vld [vmem:[%s1272_s7 + $0xe0] sm:$0xff]  ;;  %234 = vst [vmem:[%s1280_s8 + $0x60] sm:$0xff] %v233_v12  ;;  %236 = vst [vmem:[%s1280_s8 + $0x68] sm:$0xff] %v235_v13  ;;  %v239_v15 = vld [vmem:[%s1272_s7 + $0xe8] sm:$0xff] }
  0x1c   : > { %238 = vst [vmem:[%s1280_s8 + $0x70] sm:$0xff] %v237_v14  ;;  %v241_v16 = vld [vmem:[%s1272_s7 + $0x100] sm:$0xff]  ;;  %v243_v17 = vld [vmem:[%s1272_s7 + $0x108] sm:$0xff]  ;;  %240 = vst [vmem:[%s1280_s8 + $0x78] sm:$0xff] %v239_v15 }
  0x1d   : > { %242 = vst [vmem:[%s1280_s8 + $0x80] sm:$0xff] %v241_v16  ;;  %244 = vst [vmem:[%s1280_s8 + $0x88] sm:$0xff] %v243_v17  ;;  %v245_v18 = vld [vmem:[%s1272_s7 + $0x120] sm:$0xff]  ;;  %v247_v19 = vld [vmem:[%s1272_s7 + $0x128] sm:$0xff] }
  0x1e   : > { %v249_v20 = vld [vmem:[%s1272_s7 + $0x140] sm:$0xff]  ;;  %246 = vst [vmem:[%s1280_s8 + $0x90] sm:$0xff] %v245_v18  ;;  %248 = vst [vmem:[%s1280_s8 + $0x98] sm:$0xff] %v247_v19  ;;  %v251_v21 = vld [vmem:[%s1272_s7 + $0x148] sm:$0xff] }
  0x1f   : > { %250 = vst [vmem:[%s1280_s8 + $0xa0] sm:$0xff] %v249_v20  ;;  %v253_v22 = vld [vmem:[%s1272_s7 + $0x160] sm:$0xff]  ;;  %v255_v23 = vld [vmem:[%s1272_s7 + $0x168] sm:$0xff]  ;;  %252 = vst [vmem:[%s1280_s8 + $0xa8] sm:$0xff] %v251_v21 }
  0x20   : > { %254 = vst [vmem:[%s1280_s8 + $0xb0] sm:$0xff] %v253_v22  ;;  %256 = vst [vmem:[%s1280_s8 + $0xb8] sm:$0xff] %v255_v23  ;;  %v257_v24 = vld [vmem:[%s1272_s7 + $0x180] sm:$0xff]  ;;  %v259_v25 = vld [vmem:[%s1272_s7 + $0x188] sm:$0xff] }
  0x21   : > { %v261_v26 = vld [vmem:[%s1272_s7 + $0x1a0] sm:$0xff]  ;;  %258 = vst [vmem:[%s1280_s8 + $0xc0] sm:$0xff] %v257_v24  ;;  %260 = vst [vmem:[%s1280_s8 + $0xc8] sm:$0xff] %v259_v25  ;;  %v263_v27 = vld [vmem:[%s1272_s7 + $0x1a8] sm:$0xff] }
  0x22   : > { %262 = vst [vmem:[%s1280_s8 + $0xd0] sm:$0xff] %v261_v26  ;;  %v265_v28 = vld [vmem:[%s1272_s7 + $0x1c0] sm:$0xff]  ;;  %v267_v29 = vld [vmem:[%s1272_s7 + $0x1c8] sm:$0xff]  ;;  %264 = vst [vmem:[%s1280_s8 + $0xd8] sm:$0xff] %v263_v27 }
  0x23   : > { %266 = vst [vmem:[%s1280_s8 + $0xe0] sm:$0xff] %v265_v28  ;;  %268 = vst [vmem:[%s1280_s8 + $0xe8] sm:$0xff] %v267_v29  ;;  %v269_v30 = vld [vmem:[%s1272_s7 + $0x1e0] sm:$0xff]  ;;  %v271_v31 = vld [vmem:[%s1272_s7 + $0x1e8] sm:$0xff] }
  0x24   : > { %v273_v32 = vld [vmem:[%s1272_s7 + $0x200] sm:$0xff]  ;;  %270 = vst [vmem:[%s1280_s8 + $0xf0] sm:$0xff] %v269_v30  ;;  %272 = vst [vmem:[%s1280_s8 + $0xf8] sm:$0xff] %v271_v31  ;;  %v275_v33 = vld [vmem:[%s1272_s7 + $0x208] sm:$0xff] }
  0x25   : > { %274 = vst [vmem:[%s1280_s8 + $0x100] sm:$0xff] %v273_v32  ;;  %v277_v34 = vld [vmem:[%s1272_s7 + $0x220] sm:$0xff]  ;;  %v279_v35 = vld [vmem:[%s1272_s7 + $0x228] sm:$0xff]  ;;  %276 = vst [vmem:[%s1280_s8 + $0x108] sm:$0xff] %v275_v33 }
  0x26   : > { %278 = vst [vmem:[%s1280_s8 + $0x110] sm:$0xff] %v277_v34  ;;  %280 = vst [vmem:[%s1280_s8 + $0x118] sm:$0xff] %v279_v35  ;;  %v281_v36 = vld [vmem:[%s1272_s7 + $0x240] sm:$0xff]  ;;  %v283_v37 = vld [vmem:[%s1272_s7 + $0x248] sm:$0xff] }
  0x27   : > { %v285_v38 = vld [vmem:[%s1272_s7 + $0x260] sm:$0xff]  ;;  %282 = vst [vmem:[%s1280_s8 + $0x120] sm:$0xff] %v281_v36  ;;  %284 = vst [vmem:[%s1280_s8 + $0x128] sm:$0xff] %v283_v37  ;;  %v287_v39 = vld [vmem:[%s1272_s7 + $0x268] sm:$0xff] }
  0x28   : > { %286 = vst [vmem:[%s1280_s8 + $0x130] sm:$0xff] %v285_v38  ;;  %v289_v40 = vld [vmem:[%s1272_s7 + $0x280] sm:$0xff]  ;;  %v291_v41 = vld [vmem:[%s1272_s7 + $0x288] sm:$0xff]  ;;  %288 = vst [vmem:[%s1280_s8 + $0x138] sm:$0xff] %v287_v39 }
  0x29   : > { %290 = vst [vmem:[%s1280_s8 + $0x140] sm:$0xff] %v289_v40  ;;  %292 = vst [vmem:[%s1280_s8 + $0x148] sm:$0xff] %v291_v41  ;;  %v293_v42 = vld [vmem:[%s1272_s7 + $0x2a0] sm:$0xff]  ;;  %v295_v43 = vld [vmem:[%s1272_s7 + $0x2a8] sm:$0xff] }
  0x2a   : > { %v297_v44 = vld [vmem:[%s1272_s7 + $0x2c0] sm:$0xff]  ;;  %294 = vst [vmem:[%s1280_s8 + $0x150] sm:$0xff] %v293_v42  ;;  %296 = vst [vmem:[%s1280_s8 + $0x158] sm:$0xff] %v295_v43  ;;  %v299_v45 = vld [vmem:[%s1272_s7 + $0x2c8] sm:$0xff] }
  0x2b   : > { %298 = vst [vmem:[%s1280_s8 + $0x160] sm:$0xff] %v297_v44  ;;  %v301_v46 = vld [vmem:[%s1272_s7 + $0x2e0] sm:$0xff]  ;;  %v303_v47 = vld [vmem:[%s1272_s7 + $0x2e8] sm:$0xff]  ;;  %300 = vst [vmem:[%s1280_s8 + $0x168] sm:$0xff] %v299_v45 }
  0x2c   : > { %302 = vst [vmem:[%s1280_s8 + $0x170] sm:$0xff] %v301_v46  ;;  %304 = vst [vmem:[%s1280_s8 + $0x178] sm:$0xff] %v303_v47 }
  0x2d PF: > { %p1019_p7 = scmp.ge.s32.totalorder %s1194_s20, 1  ;;  %p331_p8 = scmp.lt.s32.totalorder %s1194_s20, 3 }
  0x2f   : > { %p332_p9 = pnand %p1019_p7, %p331_p8 }
  0x30   : > { %s338_s9 = sand.u32 (!%p332_p9), 1, %s1186_s18   ;;  %p382_p10 = scmp.lt.s32.totalorder (!%p332_p9), %s1247_s21, 1 }
  0x31   : > { %335 = sbr.rel (%p332_p9) target bundleno = 383 (0x17f), region = 55 }
  0x32   : > { %s1375_s10 = smul.u32 (!%p332_p9), 384, %s338_s9 }
  0x33   : > { %s1070_s11 = smul.u32 (!%p332_p9), 96, %s338_s9  ;;  %s1401_s9 = smov (!%p332_p9), 0  }
  0x34   : > { %s340_s7 = scalar_lea.vmem (!%p332_p9), [#allocation4], %s1375_s10 }
  0x35   : > { %s1399_s8 = scalar_lea.vmem (!%p332_p9), [#allocation5], %s1070_s11 }
  0x38   : > { %s383_s12 = scalar_select %p382_p10, %s1247_s21, 1 }
  0x3a   : > { %s1066_s13 = sshll.u32 %s383_s12, 8  ;;  %s1379_s14 = sshll.u32 %s383_s12, 2 }
  0x3b   : > { %s1384_s17 = scalar_lea.vmem %s1523_s1, %s1066_s13  ;;  %s390_s18 = scalar_lea.vmem %s1524_s2, %s1379_s14 }
  0x3c   : > { %s398_s28 = scalar_lea.vmem %s1527_s5, %s1379_s14  ;;  %v400_v48 = vld [vmem:[%s390_s18] sm:$0xf]  ;;  %s394_s6 = scalar_lea.vmem %s1525_s3, %s1379_s14 }
  0x3d   : > { %401 = vst [vmem:[#allocation2] sm:$0xf] %v400_v48  ;;  %v402_v49 = vld [vmem:[%s394_s6] sm:$0xf] }
  0x3e   : > { %403 = vst [vmem:[#allocation3] sm:$0xf] %v402_v49 }
  0x3f LB: >> { %v1104_v50 = vld [vmem:[%s1384_s17 + $0x4] ss:$16 sps:$4 sm:$0xff]   ;;  %v1106_v51 = vld [vmem:[%s1384_s17] ss:$16 sps:$4 sm:$0xff]   ;;  %v1200_v52 = vmov 0   ;;  %p410_p11 = scmp.eq.s32.totalorder %s1247_s21, 0  ;;  %s1198_s9 = sphi %s1401_s9, %s409_s9  }
  0x40   : >> { %644 = vmatprep.mubr.bf16.mxu0 %v1200_v52  ;;  %685 = vmatprep.mubr.bf16.mxu1 %v1200_v52  ;;  %v1107_v53 = vld [vmem:[%s1384_s17 + $0x24] ss:$16 sps:$4 sm:$0xff]   ;;  %v1109_v54 = vld [vmem:[%s1384_s17 + $0x20] ss:$16 sps:$4 sm:$0xff]   ;;  %v1115_v56 = vld [vmem:[%s1384_s17 + $0xc] ss:$16 sps:$4 sm:$0xff]  }
  0x41   : >> { %612 = vmatprep.subr.bf16.mxu0 %v1104_v50  ;;  %v1110_v55 = vld [vmem:[%s1384_s17 + $0x44] ss:$16 sps:$4 sm:$0xff]   ;;  %v1118_v57 = vld [vmem:[%s1384_s17 + $0x8] ss:$16 sps:$4 sm:$0xff]   ;;  %v1112_v58 = vld [vmem:[%s1384_s17 + $0x40] ss:$16 sps:$4 sm:$0xff]   ;;  %653 = vmatprep.subr.bf16.mxu1 %v1115_v56 }
  0x42   : >> { %613 = vmatpush1.bf16.msra.mxu0 %v1106_v51  ;;  %v1113_v59 = vld [vmem:[%s1384_s17 + $0x64] ss:$16 sps:$4 sm:$0xff]   ;;  %654 = vmatpush1.bf16.msra.mxu1 %v1118_v57  ;;  %v1121_v60 = vld [vmem:[%s1384_s17 + $0x2c] ss:$16 sps:$4 sm:$0xff]   ;;  %v1124_v61 = vld [vmem:[%s1384_s17 + $0x28] ss:$16 sps:$4 sm:$0xff]  }
  0x43   : >> { %614 = vmatprep.subr.bf16.mxu0 %v1107_v53  ;;  %655 = vmatprep.subr.bf16.mxu1 %v1121_v60  ;;  %v1117_v62 = vld [vmem:[%s1384_s17 + $0x60] ss:$16 sps:$4 sm:$0xff]   ;;  %v1119_v63 = vld [vmem:[%s1384_s17 + $0x84] ss:$16 sps:$4 sm:$0xff]   ;;  %v1127_v0 = vld [vmem:[%s1384_s17 + $0x4c] ss:$16 sps:$4 sm:$0xff]  }
  0x44   : >> { %v1130_v1 = vld [vmem:[%s1384_s17 + $0x48] ss:$16 sps:$4 sm:$0xff]   ;;  %v1133_v2 = vld [vmem:[%s1384_s17 + $0x6c] ss:$16 sps:$4 sm:$0xff]   ;;  %v1123_v3 = vld [vmem:[%s1384_s17 + $0x80] ss:$16 sps:$4 sm:$0xff]  }
  0x45   : >> { %v1125_v4 = vld [vmem:[%s1384_s17 + $0xa4] ss:$16 sps:$4 sm:$0xff]   ;;  %v1136_v5 = vld [vmem:[%s1384_s17 + $0x68] ss:$16 sps:$4 sm:$0xff]   ;;  %v1139_v6 = vld [vmem:[%s1384_s17 + $0x8c] ss:$16 sps:$4 sm:$0xff]  }
  0x46   : >> { %615 = vmatpush1.bf16.msra.mxu0 %v1109_v54  ;;  %656 = vmatpush1.bf16.msra.mxu1 %v1124_v61  ;;  %v1129_v7 = vld [vmem:[%s1384_s17 + $0xa0] ss:$16 sps:$4 sm:$0xff]   ;;  %v1131_v8 = vld [vmem:[%s1384_s17 + $0xc4] ss:$16 sps:$4 sm:$0xff]   ;;  %v1142_v9 = vld [vmem:[%s1384_s17 + $0x88] ss:$16 sps:$4 sm:$0xff]  }
  0x47   : >> { %616 = vmatprep.subr.bf16.mxu0 %v1110_v55  ;;  %657 = vmatprep.subr.bf16.mxu1 %v1127_v0  ;;  %v1143_v10 = vld [vmem:[%s1384_s17 + $0xac] ss:$16 sps:$4 sm:$0xff]   ;;  %v1135_v11 = vld [vmem:[%s1384_s17 + $0xc0] ss:$16 sps:$4 sm:$0xff]   ;;  %v1137_v12 = vld [vmem:[%s1384_s17 + $0xe4] ss:$16 sps:$4 sm:$0xff]  }
  0x48   : >> { %v1145_v13 = vld [vmem:[%s1384_s17 + $0xa8] ss:$16 sps:$4 sm:$0xff]   ;;  %v1146_v14 = vld [vmem:[%s1384_s17 + $0xcc] ss:$16 sps:$4 sm:$0xff]   ;;  %v1141_v15 = vld [vmem:[%s1384_s17 + $0xe0] ss:$16 sps:$4 sm:$0xff]  }
  0x49   : >> { %v418_v16 = vld [vmem:[#allocation2] sm:$0xf]  ;;  %v1148_v17 = vld [vmem:[%s1384_s17 + $0xc8] ss:$16 sps:$4 sm:$0xff]   ;;  %v1149_v18 = vld [vmem:[%s1384_s17 + $0xec] ss:$16 sps:$4 sm:$0xff]  }
  0x4a   : >> { %617 = vmatpush1.bf16.msra.mxu0 %v1112_v58  ;;  %658 = vmatpush1.bf16.msra.mxu1 %v1130_v1  ;;  %v419_v19 = vpack.c.bf16 %v418_v16, %v418_v16  ;;  %v1151_v20 = vld [vmem:[%s1384_s17 + $0xe8] ss:$16 sps:$4 sm:$0xff]   ;;  %s411_s11 = ssub.s32 23, %s1198_s9  ;;  %v729_v47 = vld [vmem:[#allocation3] sm:$0xf] }
  0x4b   : >> { %618 = vmatprep.subr.bf16.mxu0 %v1113_v59  ;;  %659 = vmatprep.subr.bf16.mxu1 %v1133_v2  ;;  %s1441_s12 = scalar_select %p410_p11, %s1198_s9, %s411_s11 }
  0x4c   : >> { %s409_s9 = sadd.s32 1, %s1198_s9  }
  0x4d   : >> { %s1067_s13 = sshll.u32 %s1441_s12, 4  ;;  %s1025_s16 = sshll.u32 %s1441_s12, 2 }
  0x4e   : >> { %619 = vmatpush1.bf16.msra.mxu0 %v1117_v62  ;;  %660 = vmatpush1.bf16.msra.mxu1 %v1136_v5  ;;  %s415_s15 = scalar_lea.vmem %s340_s7, %s1067_s13 [#allocation4]  ;;  %s737_s20 = scalar_lea.vmem %s1399_s8, %s1025_s16 [#allocation5] }
  0x4f   : >> { %620 = vmatprep.subr.bf16.mxu0 %v1119_v63  ;;  %661 = vmatprep.subr.bf16.mxu1 %v1139_v6  ;;  %v416_v22 = vld [vmem:[%s415_s15] sm:$0xff]  ;;  %v417_v31 = vld [vmem:[%s415_s15 + $0x8] sm:$0xff]  ;;  %p406_p12 = scmp.ge.s32.totalorder %s409_s9, 24  }
  0x52   : >> { %621 = vmatpush1.bf16.msra.mxu0 %v1123_v3  ;;  %662 = vmatpush1.bf16.msra.mxu1 %v1142_v9 }
  0x53   : >> { %622 = vmatprep.subr.bf16.mxu0 %v1125_v4  ;;  %663 = vmatprep.subr.bf16.mxu1 %v1143_v10 }
  0x56   : >> { %623 = vmatpush1.bf16.msra.mxu0 %v1129_v7  ;;  %664 = vmatpush1.bf16.msra.mxu1 %v1145_v13 }
  0x57   : >> { %624 = vmatprep.subr.bf16.mxu0 %v1131_v8  ;;  %665 = vmatprep.subr.bf16.mxu1 %v1146_v14 }
  0x5a   : >> { %625 = vmatpush1.bf16.msra.mxu0 %v1135_v11  ;;  %666 = vmatpush1.bf16.msra.mxu1 %v1148_v17 }
  0x5b   : >> { %626 = vmatprep.subr.bf16.mxu0 %v1137_v12  ;;  %667 = vmatprep.subr.bf16.mxu1 %v1149_v18 }
  0x5e   : >> { %627 = vmatpush1.bf16.msra.mxu0 %v1141_v15  ;;  %668 = vmatpush1.bf16.msra.mxu1 %v1151_v20 }
  0x61   : >> { %645 = vmatmul.mubr.bf16.vlgmr.msra.gmra.mrb[0].mxu0 %v419_v19  ;;  %686 = vmatmul.mubr.bf16.vlgmr.msra.gmra.mrb[0].mxu1 %v419_v19 }
 0x134   : >> { %v646_v21 = vpop.f32.mrb[0].mxu0  ;;  %v687_v28 = vpop.f32.mrb[0].mxu1 }
 0x135   : >> { %v648_v23 = vpop.f32.mrb[1].mxu0  ;;  %v689_v32 = vpop.f32.mrb[1].mxu1 }
 0x136   : >> { %v698_v24 = vcombine.low %v646_v21, %v648_v23  ;;  %v650_v25 = vpop.f32.mrb[2].mxu0  ;;  %v699_v33 = vcombine.low %v687_v28, %v689_v32  ;;  %v691_v34 = vpop.f32.mrb[2].mxu1 }
 0x137   : >> { %v651_v26 = vpop.f32.mrb[3].mxu0  ;;  %v692_v36 = vpop.f32.mrb[3].mxu1 }
 0x138   : >> { %v702_v27 = vadd.f32 %v698_v24, %v416_v22  ;;  %v703_v37 = vadd.f32 %v699_v33, %v417_v31 }
 0x13a   : >> { %v1059_v29 = vmul.f32 -1.442695, %v702_v27  ;;  %v711_v30 = vrot.slane %v702_v27, 4  ;;  %v721_v38 = vrot.slane %v703_v37, 4 }
 0x13c   : >> { %1152 = vpow2.f32 %v1059_v29  ;;  %v1060_v35 = vmul.f32 -1.442695, %v711_v30  ;;  %v1061_v39 = vmul.f32 -1.442695, %v721_v38 }
 0x13e   : >> { %1154 = vpow2.f32 %v1060_v35 }
 0x13f   : >> { %1156 = vtanh.f32 %v703_v37 }
 0x140   : >> { %1158 = vpow2.f32 %v1061_v39 }
 0x146   : >> { %v1153_v40 = vpop.eup %1152 }
 0x147   : >> { %v707_v41 = vadd.f32 1.0, %v1153_v40 }
 0x148   : >> { %v1155_v42 = vpop.eup %1154 }
 0x149   : >> { %1160 = vrcp.f32 %v707_v41  ;;  %v716_v43 = vadd.f32 1.0, %v1155_v42  ;;  %v1157_v44 = vpop.eup %1156 }
 0x14a   : >> { %v1159_v45 = vpop.eup %1158 }
 0x14b   : >> { %1162 = vrcp.f32 %v716_v43  ;;  %v726_v48 = vadd.f32 1.0, %v1159_v45 }
 0x14d   : >> { %1164 = vrcp.f32 %v726_v48 }
 0x153   : >> { %v1161_v46 = vpop.eup %1160 }
 0x154   : >> { %v731_v49 = vmul.f32 %v1161_v46, %v1157_v44 }
 0x155   : >> { %v1163_v50 = vpop.eup %1162 }
 0x156   : >> { %v730_v51 = vmul.f32 %v1163_v50, %v729_v47 }
 0x157   : >> { %v1165_v53 = vpop.eup %1164 }
 0x158   : >> { %v732_v52 = vadd.f32 %v731_v49, %v730_v51 }
 0x15a   : >> { %1166 = vtanh.f32 %v732_v52  ;;  %735 = vst [vmem:[#allocation3] sm:$0xf] %v732_v52 }
 0x161   : > { %408 = sbr.rel (!%p406_p12) target bundleno = 63 (0x3f), region = 165  ;;  %v739_v56 = vld [vmem:[#allocation3] sm:$0xf] (%p406_p12) }
 0x162   : > { %740 = vst [vmem:[%s398_s28] sm:$0xf] (%p406_p12), %v739_v56 }
 0x164   : >> { %v1167_v54 = vpop.eup %1166 }
 0x165   : >> { %v734_v55 = vmul.f32 %v1167_v54, %v1165_v53 }
 0x167   : >> { %736 = vst [vmem:[#allocation2] sm:$0xf] %v734_v55  ;;  %738 = vst [vmem:[%s737_s20] sm:$0xf] %v734_v55 }
 0x168   : > { %751 = sbr.rel (!%p1262_p5) target bundleno = 383 (0x17f), region = 70  ;;  %s1062_s24 = sshll.u32 (%p1262_p5), %s1247_s21, 2 }
 0x169   : > { %s1464_s14 = scalar_lea.vmem (%p1262_p5), %s1526_s4, %s1062_s24 }
 0x16e   : > { %v769_v57 = vld [vmem:[%s1399_s8] sm:$0xf] (%p1262_p5)  ;;  %v771_v58 = vld [vmem:[%s1399_s8 + $0x4] sm:$0xf] (%p1262_p5)  ;;  %v773_v59 = vld [vmem:[%s1399_s8 + $0x8] sm:$0xf] (%p1262_p5) }
 0x16f   : > { %v775_v60 = vld [vmem:[%s1399_s8 + $0xc] sm:$0xf]  ;;  %v777_v61 = vld [vmem:[%s1399_s8 + $0x10] sm:$0xf]  ;;  %770 = vst [vmem:[%s1464_s14] sm:$0xf] %v769_v57 }
 0x170   : > { %772 = vst [vmem:[%s1464_s14 + $0x8] sm:$0xf] %v771_v58  ;;  %774 = vst [vmem:[%s1464_s14 + $0x10] sm:$0xf] %v773_v59  ;;  %v779_v62 = vld [vmem:[%s1399_s8 + $0x14] sm:$0xf] }
 0x171   : > { %776 = vst [vmem:[%s1464_s14 + $0x18] sm:$0xf] %v775_v60  ;;  %778 = vst [vmem:[%s1464_s14 + $0x20] sm:$0xf] %v777_v61  ;;  %v781_v63 = vld [vmem:[%s1399_s8 + $0x18] sm:$0xf] }
 0x172   : > { %v783_v0 = vld [vmem:[%s1399_s8 + $0x1c] sm:$0xf]  ;;  %780 = vst [vmem:[%s1464_s14 + $0x28] sm:$0xf] %v779_v62  ;;  %782 = vst [vmem:[%s1464_s14 + $0x30] sm:$0xf] %v781_v63 }
 0x173   : > { %784 = vst [vmem:[%s1464_s14 + $0x38] sm:$0xf] %v783_v0  ;;  %v785_v1 = vld [vmem:[%s1399_s8 + $0x20] sm:$0xf]  ;;  %v787_v2 = vld [vmem:[%s1399_s8 + $0x24] sm:$0xf] }
 0x174   : > { %v789_v3 = vld [vmem:[%s1399_s8 + $0x28] sm:$0xf]  ;;  %786 = vst [vmem:[%s1464_s14 + $0x40] sm:$0xf] %v785_v1  ;;  %788 = vst [vmem:[%s1464_s14 + $0x48] sm:$0xf] %v787_v2 }
 0x175   : > { %790 = vst [vmem:[%s1464_s14 + $0x50] sm:$0xf] %v789_v3  ;;  %v791_v4 = vld [vmem:[%s1399_s8 + $0x2c] sm:$0xf]  ;;  %v793_v5 = vld [vmem:[%s1399_s8 + $0x30] sm:$0xf] }
 0x176   : > { %v795_v6 = vld [vmem:[%s1399_s8 + $0x34] sm:$0xf]  ;;  %792 = vst [vmem:[%s1464_s14 + $0x58] sm:$0xf] %v791_v4  ;;  %794 = vst [vmem:[%s1464_s14 + $0x60] sm:$0xf] %v793_v5 }
 0x177   : > { %796 = vst [vmem:[%s1464_s14 + $0x68] sm:$0xf] %v795_v6  ;;  %v797_v7 = vld [vmem:[%s1399_s8 + $0x38] sm:$0xf]  ;;  %v799_v8 = vld [vmem:[%s1399_s8 + $0x3c] sm:$0xf] }
 0x178   : > { %v801_v9 = vld [vmem:[%s1399_s8 + $0x40] sm:$0xf]  ;;  %798 = vst [vmem:[%s1464_s14 + $0x70] sm:$0xf] %v797_v7  ;;  %800 = vst [vmem:[%s1464_s14 + $0x78] sm:$0xf] %v799_v8 }
 0x179   : > { %802 = vst [vmem:[%s1464_s14 + $0x80] sm:$0xf] %v801_v9  ;;  %v803_v10 = vld [vmem:[%s1399_s8 + $0x44] sm:$0xf]  ;;  %v805_v11 = vld [vmem:[%s1399_s8 + $0x48] sm:$0xf] }
 0x17a   : > { %v807_v12 = vld [vmem:[%s1399_s8 + $0x4c] sm:$0xf]  ;;  %804 = vst [vmem:[%s1464_s14 + $0x88] sm:$0xf] %v803_v10  ;;  %806 = vst [vmem:[%s1464_s14 + $0x90] sm:$0xf] %v805_v11 }
 0x17b   : > { %808 = vst [vmem:[%s1464_s14 + $0x98] sm:$0xf] %v807_v12  ;;  %v809_v13 = vld [vmem:[%s1399_s8 + $0x50] sm:$0xf]  ;;  %v811_v14 = vld [vmem:[%s1399_s8 + $0x54] sm:$0xf] }
 0x17c   : > { %v813_v15 = vld [vmem:[%s1399_s8 + $0x58] sm:$0xf]  ;;  %810 = vst [vmem:[%s1464_s14 + $0xa0] sm:$0xf] %v809_v13  ;;  %812 = vst [vmem:[%s1464_s14 + $0xa8] sm:$0xf] %v811_v14 }
 0x17d   : > { %814 = vst [vmem:[%s1464_s14 + $0xb0] sm:$0xf] %v813_v15  ;;  %v815_v16 = vld [vmem:[%s1399_s8 + $0x5c] sm:$0xf] }
 0x17e   : > { %816 = vst [vmem:[%s1464_s14 + $0xb8] sm:$0xf] %v815_v16 }
 0x17f PF: > { %p13_p13 = scmp.ge.s32.totalorder %s1250_s22, 4   ;;  %s1529_s18 = smov %s1190_s19 }
 0x180   : > { %s1530_s19 = smov %s1260_s25  ;;  %s1531_s20 = smov %s1250_s22 }
 0x181   :  { %15 = sbr.rel (!%p13_p13) target bundleno = 2 (0x2), region = 176 }

// kernel: blstm_forward.5
= control target key start
LH: loop header
LB: loop body
LE: loop exit
PB: predicated region body
PF: predicated region fallthrough
CT: control target
= control target key end

     0   :  { %8 = vsyncpa [#allocation3], 0  ;;  %s1080_s12 = smov [#allocation2]   ;;  %s1599_s0 = inlined_call_operand.vmem [shape: bf16[96,128], index: 0, kind: input, shape index: {}]   ;;  %s1600_s1 = inlined_call_operand.hbm [shape: bf16[128,1024], index: 1, kind: input, shape index: {}]   ;;  %s1601_s2 = inlined_call_operand.vmem [shape: f32[1,1024], index: 2, kind: input, shape index: {}]   ;;  %s1602_s3 = inlined_call_operand.vmem [shape: f32[96,1024], index: 3, kind: output, shape index: {}]  }
   0x1   :  { %s16_s13 = sshll.u32 %s1080_s12, 4  ;;  %s1056_s16 = scalar_lea.hbm %s1600_s1, 8192  ;;  %s17_s13 = int_to_ptr.vmem [resolvable:$true] %s16_s13 }
   0x2   :  { %p1057_p0 = scmp.ne.s32.totalorder %s1600_s1, %s1056_s16  ;;  %p1060_p1 = scmp.lt.u32.totalorder %s1056_s16, %s1600_s1 }
   0x4   :  { %p1062_p2 = pnand %p1060_p1, %p1057_p0 }
   0x6   :  { %1065 = shalt.err (!%p1062_p2)
}
   0x7   :  { %s1066_s21 = scalar_lea.vmem %s17_s13, 8192  ;;  %p1071_p4 = scmp.lt.s32.totalorder %s17_s13, %s17_s13 }
   0x8   :  { %p1067_p3 = scmp.ne.s32.totalorder %s17_s13, %s1066_s21  ;;  %p1072_p5 = scmp.lt.s32.totalorder %s1066_s21, %s1066_s21 }
   0xa   :  { %p1073_p6 = por %p1072_p5, %p1071_p4 }
   0xc   :  { %p1074_p7 = pnand %p1073_p6, %p1067_p3 }
   0xe   :  { %1077 = shalt.err (!%p1074_p7)
}
   0xf   :  { %s1081_s22 = smov 512   ;;  %s1082_s23 = smov 32  }
  0x10   :  { %22 = dma.hbm_to_vmem [thread:$0]  %s1600_s1, 8192, %s17_s13, [#allocation3], %s1081_s22, %s1081_s22, %s1082_s23  }
  0x11   :  { %1078 = dma.done.wait [#allocation3], 8192  }
  0x12   :  { %1079 = vsyncadd [#allocation3], 4294959104  ;;  %v1083_v0 = vmov 0   ;;  %v41_v1 = vld [vmem:[#allocation2] sm:$0xff]  ;;  %v42_v3 = vld [vmem:[#allocation2 + $0x8] sm:$0xff] }
  0x13   :  { %535 = vmatprep.mubr.bf16.mxu0 %v1083_v0  ;;  %628 = vmatprep.mubr.bf16.mxu1 %v1083_v0  ;;  %v45_v2 = vld [vmem:[#allocation2 + $0x20] sm:$0xff]  ;;  %v46_v5 = vld [vmem:[#allocation2 + $0x28] sm:$0xff]  ;;  %v43_v63 = vld [vmem:[#allocation2 + $0x10] sm:$0xff] }
  0x14   :  { %v983_v4 = vcombine.high %v41_v1, %v45_v2  ;;  %v982_v6 = vcombine.low %v41_v1, %v45_v2  ;;  %v49_v7 = vld [vmem:[#allocation2 + $0x40] sm:$0xff]  ;;  %v985_v9 = vcombine.high %v42_v3, %v46_v5  ;;  %v984_v10 = vcombine.low %v42_v3, %v46_v5  ;;  %v50_v12 = vld [vmem:[#allocation2 + $0x48] sm:$0xff]  ;;  %v47_v1 = vld [vmem:[#allocation2 + $0x30] sm:$0xff] }
  0x15   :  { %v53_v8 = vld [vmem:[#allocation2 + $0x60] sm:$0xff]  ;;  %v54_v13 = vld [vmem:[#allocation2 + $0x68] sm:$0xff]  ;;  %v44_v2 = vld [vmem:[#allocation2 + $0x18] sm:$0xff] }
  0x16   :  { %v991_v11 = vcombine.high %v49_v7, %v53_v8  ;;  %v57_v14 = vld [vmem:[#allocation2 + $0x80] sm:$0xff]  ;;  %503 = vmatprep.subr.bf16.mxu0 %v983_v4  ;;  %v993_v15 = vcombine.high %v50_v12, %v54_v13  ;;  %v58_v17 = vld [vmem:[#allocation2 + $0x88] sm:$0xff]  ;;  %596 = vmatprep.subr.bf16.mxu1 %v985_v9  ;;  %v990_v19 = vcombine.low %v49_v7, %v53_v8  ;;  %v48_v3 = vld [vmem:[#allocation2 + $0x38] sm:$0xff] }
  0x17   :  { %v61_v16 = vld [vmem:[#allocation2 + $0xa0] sm:$0xff]  ;;  %v62_v18 = vld [vmem:[#allocation2 + $0xa8] sm:$0xff]  ;;  %504 = vmatpush1.bf16.msra.mxu0 %v982_v6  ;;  %597 = vmatpush1.bf16.msra.mxu1 %v984_v10  ;;  %v992_v20 = vcombine.low %v50_v12, %v54_v13  ;;  %v987_v6 = vcombine.high %v43_v63, %v47_v1  ;;  %v989_v7 = vcombine.high %v44_v2, %v48_v3  ;;  %v51_v8 = vld [vmem:[#allocation2 + $0x50] sm:$0xff] }
  0x18   :  { %505 = vmatprep.subr.bf16.mxu0 %v991_v11  ;;  %v999_v21 = vcombine.high %v57_v14, %v61_v16  ;;  %598 = vmatprep.subr.bf16.mxu1 %v993_v15  ;;  %v1001_v22 = vcombine.high %v58_v17, %v62_v18  ;;  %v65_v23 = vld [vmem:[#allocation2 + $0xc0] sm:$0xff]  ;;  %v66_v25 = vld [vmem:[#allocation2 + $0xc8] sm:$0xff]  ;;  %v998_v27 = vcombine.low %v57_v14, %v61_v16  ;;  %v55_v9 = vld [vmem:[#allocation2 + $0x70] sm:$0xff] }
  0x19   :  { %v69_v24 = vld [vmem:[#allocation2 + $0xe0] sm:$0xff]  ;;  %v70_v26 = vld [vmem:[#allocation2 + $0xe8] sm:$0xff]  ;;  %v1000_v28 = vcombine.low %v58_v17, %v62_v18  ;;  %v52_v11 = vld [vmem:[#allocation2 + $0x58] sm:$0xff]  ;;  %v986_v13 = vcombine.low %v43_v63, %v47_v1  ;;  %v988_v14 = vcombine.low %v44_v2, %v48_v3  ;;  %v995_v15 = vcombine.high %v51_v8, %v55_v9 }
  0x1a   :  { %v1007_v29 = vcombine.high %v65_v23, %v69_v24  ;;  %v1009_v30 = vcombine.high %v66_v25, %v70_v26  ;;  %v73_v31 = vld [vmem:[#allocation2 + $0x100] sm:$0xff]  ;;  %v74_v33 = vld [vmem:[#allocation2 + $0x108] sm:$0xff]  ;;  %v1006_v35 = vcombine.low %v65_v23, %v69_v24  ;;  %v1008_v36 = vcombine.low %v66_v25, %v70_v26  ;;  %v56_v12 = vld [vmem:[#allocation2 + $0x78] sm:$0xff] }
  0x1b   :  { %506 = vmatpush1.bf16.msra.mxu0 %v990_v19  ;;  %599 = vmatpush1.bf16.msra.mxu1 %v992_v20  ;;  %v77_v32 = vld [vmem:[#allocation2 + $0x120] sm:$0xff]  ;;  %v78_v34 = vld [vmem:[#allocation2 + $0x128] sm:$0xff]  ;;  %v997_v16 = vcombine.high %v52_v11, %v56_v12  ;;  %v59_v17 = vld [vmem:[#allocation2 + $0x90] sm:$0xff] }
  0x1c   :  { %507 = vmatprep.subr.bf16.mxu0 %v999_v21  ;;  %600 = vmatprep.subr.bf16.mxu1 %v1001_v22  ;;  %v1015_v37 = vcombine.high %v73_v31, %v77_v32  ;;  %v81_v38 = vld [vmem:[#allocation2 + $0x140] sm:$0xff]  ;;  %v1017_v39 = vcombine.high %v74_v33, %v78_v34  ;;  %v82_v41 = vld [vmem:[#allocation2 + $0x148] sm:$0xff]  ;;  %v1014_v43 = vcombine.low %v73_v31, %v77_v32  ;;  %v63_v18 = vld [vmem:[#allocation2 + $0xb0] sm:$0xff] }
  0x1d   :  { %v85_v40 = vld [vmem:[#allocation2 + $0x160] sm:$0xff]  ;;  %v86_v42 = vld [vmem:[#allocation2 + $0x168] sm:$0xff]  ;;  %v1016_v44 = vcombine.low %v74_v33, %v78_v34  ;;  %v60_v19 = vld [vmem:[#allocation2 + $0x98] sm:$0xff]  ;;  %v994_v21 = vcombine.low %v51_v8, %v55_v9  ;;  %v996_v22 = vcombine.low %v52_v11, %v56_v12  ;;  %v1003_v23 = vcombine.high %v59_v17, %v63_v18 }
  0x1e   :  { %v1023_v45 = vcombine.high %v81_v38, %v85_v40  ;;  %v1025_v46 = vcombine.high %v82_v41, %v86_v42  ;;  %v89_v47 = vld [vmem:[#allocation2 + $0x180] sm:$0xff]  ;;  %v90_v49 = vld [vmem:[#allocation2 + $0x188] sm:$0xff]  ;;  %v1022_v51 = vcombine.low %v81_v38, %v85_v40  ;;  %v1024_v52 = vcombine.low %v82_v41, %v86_v42  ;;  %v64_v20 = vld [vmem:[#allocation2 + $0xb8] sm:$0xff] }
  0x1f   :  { %508 = vmatpush1.bf16.msra.mxu0 %v998_v27  ;;  %601 = vmatpush1.bf16.msra.mxu1 %v1000_v28  ;;  %v93_v48 = vld [vmem:[#allocation2 + $0x1a0] sm:$0xff]  ;;  %v94_v50 = vld [vmem:[#allocation2 + $0x1a8] sm:$0xff]  ;;  %v1005_v24 = vcombine.high %v60_v19, %v64_v20  ;;  %v67_v26 = vld [vmem:[#allocation2 + $0xd0] sm:$0xff]  ;;  %v1002_v28 = vcombine.low %v59_v17, %v63_v18  ;;  %v1004_v31 = vcombine.low %v60_v19, %v64_v20  ;;  %v107_v9 = vlaneseq }
  0x20   :  { %509 = vmatprep.subr.bf16.mxu0 %v1007_v29  ;;  %602 = vmatprep.subr.bf16.mxu1 %v1009_v30  ;;  %v1031_v53 = vcombine.high %v89_v47, %v93_v48  ;;  %v1033_v54 = vcombine.high %v90_v49, %v94_v50  ;;  %v97_v55 = vld [vmem:[#allocation2 + $0x1c0] sm:$0xff]  ;;  %v98_v57 = vld [vmem:[#allocation2 + $0x1c8] sm:$0xff]  ;;  %v1030_v59 = vcombine.low %v89_v47, %v93_v48  ;;  %v71_v27 = vld [vmem:[#allocation2 + $0xf0] sm:$0xff] }
  0x21   :  { %v101_v56 = vld [vmem:[#allocation2 + $0x1e0] sm:$0xff]  ;;  %v102_v58 = vld [vmem:[#allocation2 + $0x1e8] sm:$0xff]  ;;  %v1032_v60 = vcombine.low %v90_v49, %v94_v50  ;;  %v68_v29 = vld [vmem:[#allocation2 + $0xd8] sm:$0xff]  ;;  %v1011_v32 = vcombine.high %v67_v26, %v71_v27  ;;  %v1010_v38 = vcombine.low %v67_v26, %v71_v27 }
  0x22   :  { %v1039_v61 = vcombine.high %v97_v55, %v101_v56  ;;  %v1041_v62 = vcombine.high %v98_v57, %v102_v58  ;;  %v1038_v4 = vcombine.low %v97_v55, %v101_v56  ;;  %v1040_v5 = vcombine.low %v98_v57, %v102_v58  ;;  %v1121_v10 = vld [vmem:[%s1599_s0] sm:$0xff]   ;;  %v1130_v25 = vld [vmem:[%s1599_s0 + $0x8] sm:$0xff]   ;;  %v72_v30 = vld [vmem:[#allocation2 + $0xf8] sm:$0xff] }
  0x23   :  { %510 = vmatpush1.bf16.msra.mxu0 %v1006_v35  ;;  %603 = vmatpush1.bf16.msra.mxu1 %v1008_v36  ;;  %v75_v33 = vld [vmem:[#allocation2 + $0x110] sm:$0xff]  ;;  %v1013_v35 = vcombine.high %v68_v29, %v72_v30  ;;  %v76_v36 = vld [vmem:[#allocation2 + $0x118] sm:$0xff]  ;;  %v1055_v8 = vld [vmem:[%s1599_s0 + $0x28] sm:$0xff]  }
  0x24   :  { %511 = vmatprep.subr.bf16.mxu0 %v1015_v37  ;;  %604 = vmatprep.subr.bf16.mxu1 %v1017_v39  ;;  %v79_v34 = vld [vmem:[#allocation2 + $0x130] sm:$0xff]  ;;  %v80_v37 = vld [vmem:[#allocation2 + $0x138] sm:$0xff]  ;;  %v1012_v39 = vcombine.low %v68_v29, %v72_v30  ;;  %v1182_v12 = vld [vmem:[%s1601_s2] sm:$0xff] }
  0x25   :  { %v1019_v40 = vcombine.high %v75_v33, %v79_v34  ;;  %v1021_v41 = vcombine.high %v76_v36, %v80_v37  ;;  %v1139_v42 = vld [vmem:[%s1599_s0 + $0x10] sm:$0xff]   ;;  %v1018_v47 = vcombine.low %v75_v33, %v79_v34  ;;  %v1020_v48 = vcombine.low %v76_v36, %v80_v37  ;;  %v1053_v58 = vld [vmem:[%s1599_s0 + $0x18] sm:$0xff]  }
  0x26   :  { %v104_v63 = vld [vmem:[#allocation2 + $0x1f8] sm:$0xff] }
  0x27   :  { %512 = vmatpush1.bf16.msra.mxu0 %v1014_v43  ;;  %605 = vmatpush1.bf16.msra.mxu1 %v1016_v44  ;;  %v83_v43 = vld [vmem:[#allocation2 + $0x150] sm:$0xff] }
  0x28   :  { %513 = vmatprep.subr.bf16.mxu0 %v1023_v45  ;;  %606 = vmatprep.subr.bf16.mxu1 %v1025_v46  ;;  %v87_v44 = vld [vmem:[#allocation2 + $0x170] sm:$0xff]  ;;  %v84_v45 = vld [vmem:[#allocation2 + $0x158] sm:$0xff] }
  0x29   :  { %v88_v46 = vld [vmem:[#allocation2 + $0x178] sm:$0xff]  ;;  %v1027_v49 = vcombine.high %v83_v43, %v87_v44  ;;  %v1026_v55 = vcombine.low %v83_v43, %v87_v44 }
  0x2a   :  { %v1029_v50 = vcombine.high %v84_v45, %v88_v46  ;;  %v1028_v56 = vcombine.low %v84_v45, %v88_v46 }
  0x2b   :  { %514 = vmatpush1.bf16.msra.mxu0 %v1022_v51  ;;  %607 = vmatpush1.bf16.msra.mxu1 %v1024_v52  ;;  %v91_v51 = vld [vmem:[#allocation2 + $0x190] sm:$0xff] }
  0x2c   :  { %515 = vmatprep.subr.bf16.mxu0 %v1031_v53  ;;  %608 = vmatprep.subr.bf16.mxu1 %v1033_v54  ;;  %v95_v52 = vld [vmem:[#allocation2 + $0x1b0] sm:$0xff]  ;;  %v92_v53 = vld [vmem:[#allocation2 + $0x198] sm:$0xff] }
  0x2d   :  { %v96_v54 = vld [vmem:[#allocation2 + $0x1b8] sm:$0xff]  ;;  %v1035_v57 = vcombine.high %v91_v51, %v95_v52  ;;  %v1034_v1 = vcombine.low %v91_v51, %v95_v52 }
  0x2e   :  { %v1036_v2 = vcombine.low %v92_v53, %v96_v54 }
  0x2f   :  { %516 = vmatpush1.bf16.msra.mxu0 %v1030_v59  ;;  %609 = vmatpush1.bf16.msra.mxu1 %v1032_v60  ;;  %v1037_v59 = vcombine.high %v92_v53, %v96_v54  ;;  %v99_v60 = vld [vmem:[#allocation2 + $0x1d0] sm:$0xff] }
  0x30   :  { %517 = vmatprep.subr.bf16.mxu0 %v1039_v61  ;;  %610 = vmatprep.subr.bf16.mxu1 %v1041_v62  ;;  %v103_v61 = vld [vmem:[#allocation2 + $0x1f0] sm:$0xff]  ;;  %v100_v62 = vld [vmem:[#allocation2 + $0x1d8] sm:$0xff] }
  0x31   :  { %v1043_v3 = vcombine.high %v99_v60, %v103_v61 }
  0x33   :  { %518 = vmatpush1.bf16.msra.mxu0 %v1038_v4  ;;  %611 = vmatpush1.bf16.msra.mxu1 %v1040_v5  ;;  %v1045_v4 = vcombine.high %v100_v62, %v104_v63  ;;  %v1042_v5 = vcombine.low %v99_v60, %v103_v61 }
  0x34   :  { %689 = vmatprep.subr.bf16.mxu0 %v987_v6  ;;  %782 = vmatprep.subr.bf16.mxu1 %v989_v7  ;;  %v1044_v6 = vcombine.low %v100_v62, %v104_v63  ;;  %v1054_v7 = vld [vmem:[%s1599_s0 + $0x20] sm:$0xff]  }
  0x36   :  { %536 = vmatmul.mubr.bf16.vlgmr.msra.gmra.mrb[0].mxu0 %v1121_v10  ;;  %629 = vmatmul.mubr.bf16.vlgmr.msra.gmra.mrb[0].mxu1 %v1121_v10 }
  0x37   :  { %690 = vmatpush1.bf16.msra.mxu0 %v986_v13  ;;  %783 = vmatpush1.bf16.msra.mxu1 %v988_v14 }
  0x38   :  { %691 = vmatprep.subr.bf16.mxu0 %v995_v15  ;;  %784 = vmatprep.subr.bf16.mxu1 %v997_v16 }
  0x39   :  { %545 = vmatprep.mubr.bf16.mxu0 %v1083_v0  ;;  %638 = vmatprep.mubr.bf16.mxu1 %v1083_v0 }
  0x3b   :  { %692 = vmatpush1.bf16.msra.mxu0 %v994_v21  ;;  %785 = vmatpush1.bf16.msra.mxu1 %v996_v22 }
  0x3c   :  { %693 = vmatprep.subr.bf16.mxu0 %v1003_v23  ;;  %786 = vmatprep.subr.bf16.mxu1 %v1005_v24 }
  0x3e   :  { %546 = vmatmul.mubr.bf16.gmra.mrb[4].mxu0 %v1130_v25  ;;  %639 = vmatmul.mubr.bf16.gmra.mrb[4].mxu1 %v1130_v25 }
  0x3f   :  { %694 = vmatpush1.bf16.msra.mxu0 %v1002_v28  ;;  %787 = vmatpush1.bf16.msra.mxu1 %v1004_v31 }
  0x40   :  { %555 = vmatprep.mubr.bf16.mxu0 %v1083_v0  ;;  %648 = vmatprep.mubr.bf16.mxu1 %v1083_v0 }
  0x41   :  { %695 = vmatprep.subr.bf16.mxu0 %v1011_v32  ;;  %788 = vmatprep.subr.bf16.mxu1 %v1013_v35 }
  0x43   :  { %696 = vmatpush1.bf16.msra.mxu0 %v1010_v38  ;;  %789 = vmatpush1.bf16.msra.mxu1 %v1012_v39 }
  0x44   :  { %697 = vmatprep.subr.bf16.mxu0 %v1019_v40  ;;  %790 = vmatprep.subr.bf16.mxu1 %v1021_v41 }
  0x46   :  { %556 = vmatmul.mubr.bf16.gmra.mrb[8].mxu0 %v1139_v42  ;;  %649 = vmatmul.mubr.bf16.gmra.mrb[8].mxu1 %v1139_v42 }
  0x47   :  { %565 = vmatprep.mubr.bf16.mxu0 %v1083_v0  ;;  %658 = vmatprep.mubr.bf16.mxu1 %v1083_v0 }
  0x48   :  { %698 = vmatpush1.bf16.msra.mxu0 %v1018_v47  ;;  %791 = vmatpush1.bf16.msra.mxu1 %v1020_v48 }
  0x49   :  { %699 = vmatprep.subr.bf16.mxu0 %v1027_v49  ;;  %792 = vmatprep.subr.bf16.mxu1 %v1029_v50 }
  0x4c   :  { %700 = vmatpush1.bf16.msra.mxu0 %v1026_v55  ;;  %793 = vmatpush1.bf16.msra.mxu1 %v1028_v56 }
  0x4d   :  { %701 = vmatprep.subr.bf16.mxu0 %v1035_v57  ;;  %794 = vmatprep.subr.bf16.mxu1 %v1037_v59 }
  0x4e   :  { %566 = vmatmul.mubr.bf16.gmra.mrb[12].mxu0 %v1053_v58  ;;  %659 = vmatmul.mubr.bf16.gmra.mrb[12].mxu1 %v1053_v58 }
  0x4f   :  { %575 = vmatprep.mubr.bf16.mxu0 %v1083_v0  ;;  %668 = vmatprep.mubr.bf16.mxu1 %v1083_v0 }
  0x50   :  { %702 = vmatpush1.bf16.msra.mxu0 %v1034_v1  ;;  %795 = vmatpush1.bf16.msra.mxu1 %v1036_v2 }
  0x51   :  { %703 = vmatprep.subr.bf16.mxu0 %v1043_v3  ;;  %796 = vmatprep.subr.bf16.mxu1 %v1045_v4 }
  0x54   :  { %704 = vmatpush1.bf16.msra.mxu0 %v1042_v5  ;;  %797 = vmatpush1.bf16.msra.mxu1 %v1044_v6 }
  0x56   :  { %576 = vmatmul.mubr.bf16.gmra.mrb[16].mxu0 %v1054_v7  ;;  %669 = vmatmul.mubr.bf16.gmra.mrb[16].mxu1 %v1054_v7 }
  0x57   :  { %585 = vmatprep.mubr.bf16.mxu0 %v1083_v0  ;;  %678 = vmatprep.mubr.bf16.mxu1 %v1083_v0 }
  0x5e   :  { %586 = vmatmul.mubr.bf16.gmra.mrb[20].mxu0 %v1055_v8  ;;  %679 = vmatmul.mubr.bf16.gmra.mrb[20].mxu1 %v1055_v8 }
  0x5f   :  { %721 = vmatprep.mubr.bf16.mxu0 %v1083_v0  ;;  %814 = vmatprep.mubr.bf16.mxu1 %v1083_v0 }
  0x66   :  { %722 = vmatmul.mubr.bf16.vlgmr.msra.gmra.mrb[24].mxu0 %v1121_v10  ;;  %815 = vmatmul.mubr.bf16.vlgmr.msra.gmra.mrb[24].mxu1 %v1121_v10  ;;  %v1176_v10 = vshrl.u32 %v107_v9, 7 }
  0x67   :  { %731 = vmatprep.mubr.bf16.mxu0 %v1083_v0  ;;  %824 = vmatprep.mubr.bf16.mxu1 %v1083_v0 }
  0x68   :  { %v109_v11 = vsub.s32 0, %v1176_v10  ;;  %v117_v13 = vsub.s32 2, %v1176_v10  ;;  %v113_v14 = vsub.s32 1, %v1176_v10  ;;  %v121_v15 = vsub.s32 3, %v1176_v10 }
  0x6a   :  { %v1191_v16 = vrot.slane %v1182_v12, %v117_v13  ;;  %v1194_v17 = vrot.slane %v1182_v12, %v113_v14  ;;  %v1197_v18 = vrot.slane %v1182_v12, %v121_v15 }
  0x6e   :  { %732 = vmatmul.mubr.bf16.gmra.mrb[28].mxu0 %v1130_v25  ;;  %825 = vmatmul.mubr.bf16.gmra.mrb[28].mxu1 %v1130_v25 }
  0x6f   :  { %741 = vmatprep.mubr.bf16.mxu0 %v1083_v0  ;;  %834 = vmatprep.mubr.bf16.mxu1 %v1083_v0 }
  0x76   :  { %742 = vmatmul.mubr.bf16.gmra.mrb[32].mxu0 %v1139_v42  ;;  %835 = vmatmul.mubr.bf16.gmra.mrb[32].mxu1 %v1139_v42 }
  0x77   :  { %751 = vmatprep.mubr.bf16.mxu0 %v1083_v0  ;;  %844 = vmatprep.mubr.bf16.mxu1 %v1083_v0 }
  0x7e   :  { %752 = vmatmul.mubr.bf16.gmra.mrb[36].mxu0 %v1053_v58  ;;  %845 = vmatmul.mubr.bf16.gmra.mrb[36].mxu1 %v1053_v58 }
  0x7f   :  { %761 = vmatprep.mubr.bf16.mxu0 %v1083_v0  ;;  %854 = vmatprep.mubr.bf16.mxu1 %v1083_v0 }
  0x86   :  { %762 = vmatmul.mubr.bf16.gmra.mrb[40].mxu0 %v1054_v7  ;;  %855 = vmatmul.mubr.bf16.gmra.mrb[40].mxu1 %v1054_v7 }
  0x87   :  { %771 = vmatprep.mubr.bf16.mxu0 %v1083_v0  ;;  %864 = vmatprep.mubr.bf16.mxu1 %v1083_v0  ;;  %v1188_v0 = vrot.slane %v1182_v12, %v109_v11 }
  0x8e   :  { %772 = vmatmul.mubr.bf16.gmra.mrb[44].mxu0 %v1055_v8  ;;  %865 = vmatmul.mubr.bf16.gmra.mrb[44].mxu1 %v1055_v8 }
 0x109   :  { %v537_v19 = vpop.f32.mrb[0].mxu0  ;;  %v630_v21 = vpop.f32.mrb[0].mxu1 }
 0x10a   :  { %v538_v20 = vadd.f32 %v537_v19, %v1188_v0  ;;  %v539_v22 = vpop.f32.mrb[1].mxu0  ;;  %v631_v23 = vadd.f32 %v630_v21, %v1191_v16  ;;  %v632_v25 = vpop.f32.mrb[1].mxu1 }
 0x10b   :  { %v540_v24 = vadd.f32 %v539_v22, %v1194_v17  ;;  %v541_v26 = vpop.f32.mrb[2].mxu0  ;;  %v633_v27 = vadd.f32 %v632_v25, %v1197_v18  ;;  %v634_v29 = vpop.f32.mrb[2].mxu1 }
 0x10c   :  { %875 = vst [vmem:[%s1602_s3] sm:$0xff] %v538_v20  ;;  %v542_v28 = vadd.f32 %v541_v26, %v1188_v0  ;;  %v543_v30 = vpop.f32.mrb[3].mxu0  ;;  %877 = vst [vmem:[%s1602_s3 + $0x10] sm:$0xff] %v631_v23  ;;  %v635_v31 = vadd.f32 %v634_v29, %v1191_v16  ;;  %v636_v33 = vpop.f32.mrb[3].mxu1 }
 0x10d   :  { %876 = vst [vmem:[%s1602_s3 + $0x8] sm:$0xff] %v540_v24  ;;  %v544_v32 = vadd.f32 %v543_v30, %v1194_v17  ;;  %878 = vst [vmem:[%s1602_s3 + $0x18] sm:$0xff] %v633_v27  ;;  %v637_v34 = vadd.f32 %v636_v33, %v1197_v18 }
 0x10e   :  { %883 = vst [vmem:[%s1602_s3 + $0x40] sm:$0xff] %v542_v28  ;;  %885 = vst [vmem:[%s1602_s3 + $0x50] sm:$0xff] %v635_v31 }
 0x10f   :  { %884 = vst [vmem:[%s1602_s3 + $0x48] sm:$0xff] %v544_v32  ;;  %886 = vst [vmem:[%s1602_s3 + $0x58] sm:$0xff] %v637_v34 }
 0x111   :  { %v547_v35 = vpop.f32.mrb[4].mxu0  ;;  %v640_v37 = vpop.f32.mrb[4].mxu1 }
 0x112   :  { %v548_v36 = vadd.f32 %v547_v35, %v1188_v0  ;;  %v549_v38 = vpop.f32.mrb[5].mxu0  ;;  %v641_v39 = vadd.f32 %v640_v37, %v1191_v16  ;;  %v642_v41 = vpop.f32.mrb[5].mxu1 }
 0x113   :  { %v550_v40 = vadd.f32 %v549_v38, %v1194_v17  ;;  %v551_v42 = vpop.f32.mrb[6].mxu0  ;;  %v643_v43 = vadd.f32 %v642_v41, %v1197_v18  ;;  %v644_v45 = vpop.f32.mrb[6].mxu1 }
 0x114   :  { %891 = vst [vmem:[%s1602_s3 + $0x80] sm:$0xff] %v548_v36  ;;  %v552_v44 = vadd.f32 %v551_v42, %v1188_v0  ;;  %v553_v46 = vpop.f32.mrb[7].mxu0  ;;  %893 = vst [vmem:[%s1602_s3 + $0x90] sm:$0xff] %v641_v39  ;;  %v645_v47 = vadd.f32 %v644_v45, %v1191_v16  ;;  %v646_v49 = vpop.f32.mrb[7].mxu1  ;;  %v125_v45 = vsub.s32 4, %v1176_v10 }
 0x115   :  { %892 = vst [vmem:[%s1602_s3 + $0x88] sm:$0xff] %v550_v40  ;;  %v554_v48 = vadd.f32 %v553_v46, %v1194_v17  ;;  %894 = vst [vmem:[%s1602_s3 + $0x98] sm:$0xff] %v643_v43  ;;  %v647_v50 = vadd.f32 %v646_v49, %v1197_v18 }
 0x116   :  { %899 = vst [vmem:[%s1602_s3 + $0xc0] sm:$0xff] %v552_v44  ;;  %901 = vst [vmem:[%s1602_s3 + $0xd0] sm:$0xff] %v645_v47 }
 0x117   :  { %900 = vst [vmem:[%s1602_s3 + $0xc8] sm:$0xff] %v554_v48  ;;  %902 = vst [vmem:[%s1602_s3 + $0xd8] sm:$0xff] %v647_v50  ;;  %v133_v50 = vsub.s32 6, %v1176_v10 }
 0x119   :  { %v557_v51 = vpop.f32.mrb[8].mxu0  ;;  %v650_v53 = vpop.f32.mrb[8].mxu1 }
 0x11a   :  { %v558_v52 = vadd.f32 %v557_v51, %v1188_v0  ;;  %v559_v54 = vpop.f32.mrb[9].mxu0  ;;  %v651_v55 = vadd.f32 %v650_v53, %v1191_v16  ;;  %v652_v57 = vpop.f32.mrb[9].mxu1  ;;  %v129_v51 = vsub.s32 5, %v1176_v10 }
 0x11b   :  { %v560_v56 = vadd.f32 %v559_v54, %v1194_v17  ;;  %v561_v58 = vpop.f32.mrb[10].mxu0  ;;  %v653_v59 = vadd.f32 %v652_v57, %v1197_v18  ;;  %v654_v61 = vpop.f32.mrb[10].mxu1 }
 0x11c   :  { %907 = vst [vmem:[%s1602_s3 + $0x100] sm:$0xff] %v558_v52  ;;  %v562_v60 = vadd.f32 %v561_v58, %v1188_v0  ;;  %v563_v62 = vpop.f32.mrb[11].mxu0  ;;  %909 = vst [vmem:[%s1602_s3 + $0x110] sm:$0xff] %v651_v55  ;;  %v655_v63 = vadd.f32 %v654_v61, %v1191_v16  ;;  %v656_v2 = vpop.f32.mrb[11].mxu1 }
 0x11d   :  { %908 = vst [vmem:[%s1602_s3 + $0x108] sm:$0xff] %v560_v56  ;;  %v564_v1 = vadd.f32 %v563_v62, %v1194_v17  ;;  %910 = vst [vmem:[%s1602_s3 + $0x118] sm:$0xff] %v653_v59  ;;  %v657_v3 = vadd.f32 %v656_v2, %v1197_v18  ;;  %v137_v56 = vsub.s32 7, %v1176_v10 }
 0x11e   :  { %915 = vst [vmem:[%s1602_s3 + $0x140] sm:$0xff] %v562_v60  ;;  %917 = vst [vmem:[%s1602_s3 + $0x150] sm:$0xff] %v655_v63 }
 0x11f   :  { %916 = vst [vmem:[%s1602_s3 + $0x148] sm:$0xff] %v564_v1  ;;  %918 = vst [vmem:[%s1602_s3 + $0x158] sm:$0xff] %v657_v3 }
 0x121   :  { %v567_v4 = vpop.f32.mrb[12].mxu0  ;;  %v660_v6 = vpop.f32.mrb[12].mxu1 }
 0x122   :  { %v568_v5 = vadd.f32 %v567_v4, %v1188_v0  ;;  %v569_v7 = vpop.f32.mrb[13].mxu0  ;;  %v661_v8 = vadd.f32 %v660_v6, %v1191_v16  ;;  %v662_v11 = vpop.f32.mrb[13].mxu1 }
 0x123   :  { %v570_v9 = vadd.f32 %v569_v7, %v1194_v17  ;;  %v571_v13 = vpop.f32.mrb[14].mxu0  ;;  %v663_v14 = vadd.f32 %v662_v11, %v1197_v18  ;;  %v664_v19 = vpop.f32.mrb[14].mxu1 }
 0x124   :  { %923 = vst [vmem:[%s1602_s3 + $0x180] sm:$0xff] %v568_v5  ;;  %v572_v15 = vadd.f32 %v571_v13, %v1188_v0  ;;  %v573_v20 = vpop.f32.mrb[15].mxu0  ;;  %925 = vst [vmem:[%s1602_s3 + $0x190] sm:$0xff] %v661_v8  ;;  %v665_v21 = vadd.f32 %v664_v19, %v1191_v16  ;;  %v666_v23 = vpop.f32.mrb[15].mxu1 }
 0x125   :  { %924 = vst [vmem:[%s1602_s3 + $0x188] sm:$0xff] %v570_v9  ;;  %v574_v22 = vadd.f32 %v573_v20, %v1194_v17  ;;  %926 = vst [vmem:[%s1602_s3 + $0x198] sm:$0xff] %v663_v14  ;;  %v667_v24 = vadd.f32 %v666_v23, %v1197_v18 }
 0x126   :  { %931 = vst [vmem:[%s1602_s3 + $0x1c0] sm:$0xff] %v572_v15  ;;  %933 = vst [vmem:[%s1602_s3 + $0x1d0] sm:$0xff] %v665_v21 }
 0x127   :  { %932 = vst [vmem:[%s1602_s3 + $0x1c8] sm:$0xff] %v574_v22  ;;  %934 = vst [vmem:[%s1602_s3 + $0x1d8] sm:$0xff] %v667_v24 }
 0x129   :  { %v577_v25 = vpop.f32.mrb[16].mxu0  ;;  %v670_v27 = vpop.f32.mrb[16].mxu1 }
 0x12a   :  { %v578_v26 = vadd.f32 %v577_v25, %v1188_v0  ;;  %v579_v28 = vpop.f32.mrb[17].mxu0  ;;  %v671_v29 = vadd.f32 %v670_v27, %v1191_v16  ;;  %v672_v31 = vpop.f32.mrb[17].mxu1 }
 0x12b   :  { %v580_v30 = vadd.f32 %v579_v28, %v1194_v17  ;;  %v581_v32 = vpop.f32.mrb[18].mxu0  ;;  %v673_v33 = vadd.f32 %v672_v31, %v1197_v18  ;;  %v674_v35 = vpop.f32.mrb[18].mxu1 }
 0x12c   :  { %939 = vst [vmem:[%s1602_s3 + $0x200] sm:$0xff] %v578_v26  ;;  %v582_v34 = vadd.f32 %v581_v32, %v1188_v0  ;;  %v583_v36 = vpop.f32.mrb[19].mxu0  ;;  %941 = vst [vmem:[%s1602_s3 + $0x210] sm:$0xff] %v671_v29  ;;  %v675_v37 = vadd.f32 %v674_v35, %v1191_v16  ;;  %v676_v39 = vpop.f32.mrb[19].mxu1 }
 0x12d   :  { %940 = vst [vmem:[%s1602_s3 + $0x208] sm:$0xff] %v580_v30  ;;  %v584_v38 = vadd.f32 %v583_v36, %v1194_v17  ;;  %942 = vst [vmem:[%s1602_s3 + $0x218] sm:$0xff] %v673_v33  ;;  %v677_v40 = vadd.f32 %v676_v39, %v1197_v18 }
 0x12e   :  { %947 = vst [vmem:[%s1602_s3 + $0x240] sm:$0xff] %v582_v34  ;;  %949 = vst [vmem:[%s1602_s3 + $0x250] sm:$0xff] %v675_v37 }
 0x12f   :  { %948 = vst [vmem:[%s1602_s3 + $0x248] sm:$0xff] %v584_v38  ;;  %950 = vst [vmem:[%s1602_s3 + $0x258] sm:$0xff] %v677_v40 }
 0x131   :  { %v587_v41 = vpop.f32.mrb[20].mxu0  ;;  %v680_v43 = vpop.f32.mrb[20].mxu1 }
 0x132   :  { %v588_v42 = vadd.f32 %v587_v41, %v1188_v0  ;;  %v589_v44 = vpop.f32.mrb[21].mxu0  ;;  %v681_v46 = vadd.f32 %v680_v43, %v1191_v16  ;;  %v682_v48 = vpop.f32.mrb[21].mxu1 }
 0x133   :  { %v590_v47 = vadd.f32 %v589_v44, %v1194_v17  ;;  %v591_v49 = vpop.f32.mrb[22].mxu0  ;;  %v683_v52 = vadd.f32 %v682_v48, %v1197_v18  ;;  %v684_v54 = vpop.f32.mrb[22].mxu1 }
 0x134   :  { %955 = vst [vmem:[%s1602_s3 + $0x280] sm:$0xff] %v588_v42  ;;  %v592_v53 = vadd.f32 %v591_v49, %v1188_v0  ;;  %v593_v55 = vpop.f32.mrb[23].mxu0  ;;  %957 = vst [vmem:[%s1602_s3 + $0x290] sm:$0xff] %v681_v46  ;;  %v685_v57 = vadd.f32 %v684_v54, %v1191_v16  ;;  %v686_v59 = vpop.f32.mrb[23].mxu1  ;;  %v1387_v0 = vrot.slane %v1182_v12, %v125_v45 }
 0x135   :  { %956 = vst [vmem:[%s1602_s3 + $0x288] sm:$0xff] %v590_v47  ;;  %v594_v58 = vadd.f32 %v593_v55, %v1194_v17  ;;  %958 = vst [vmem:[%s1602_s3 + $0x298] sm:$0xff] %v683_v52  ;;  %v687_v10 = vadd.f32 %v686_v59, %v1197_v18  ;;  %v1396_v16 = vrot.slane %v1182_v12, %v133_v50 }
 0x136   :  { %963 = vst [vmem:[%s1602_s3 + $0x2c0] sm:$0xff] %v592_v53  ;;  %965 = vst [vmem:[%s1602_s3 + $0x2d0] sm:$0xff] %v685_v57  ;;  %v1399_v17 = vrot.slane %v1182_v12, %v129_v51  ;;  %v1405_v18 = vrot.slane %v1182_v12, %v137_v56 }
 0x137   :  { %964 = vst [vmem:[%s1602_s3 + $0x2c8] sm:$0xff] %v594_v58  ;;  %966 = vst [vmem:[%s1602_s3 + $0x2d8] sm:$0xff] %v687_v10 }
 0x139   :  { %v723_v60 = vpop.f32.mrb[24].mxu0  ;;  %v816_v62 = vpop.f32.mrb[24].mxu1 }
 0x13a   :  { %v724_v61 = vadd.f32 %v723_v60, %v1387_v0  ;;  %v725_v63 = vpop.f32.mrb[25].mxu0  ;;  %v817_v1 = vadd.f32 %v816_v62, %v1396_v16  ;;  %v818_v3 = vpop.f32.mrb[25].mxu1 }
 0x13b   :  { %v726_v2 = vadd.f32 %v725_v63, %v1399_v17  ;;  %v727_v4 = vpop.f32.mrb[26].mxu0  ;;  %v819_v5 = vadd.f32 %v818_v3, %v1405_v18  ;;  %v820_v6 = vpop.f32.mrb[26].mxu1 }
 0x13c   :  { %879 = vst [vmem:[%s1602_s3 + $0x20] sm:$0xff] %v724_v61  ;;  %v728_v12 = vadd.f32 %v727_v4, %v1387_v0  ;;  %v729_v7 = vpop.f32.mrb[27].mxu0  ;;  %881 = vst [vmem:[%s1602_s3 + $0x30] sm:$0xff] %v817_v1  ;;  %v821_v8 = vadd.f32 %v820_v6, %v1396_v16  ;;  %v822_v11 = vpop.f32.mrb[27].mxu1 }
 0x13d   :  { %880 = vst [vmem:[%s1602_s3 + $0x28] sm:$0xff] %v726_v2  ;;  %v730_v9 = vadd.f32 %v729_v7, %v1399_v17  ;;  %882 = vst [vmem:[%s1602_s3 + $0x38] sm:$0xff] %v819_v5  ;;  %v823_v13 = vadd.f32 %v822_v11, %v1405_v18 }
 0x13e   :  { %887 = vst [vmem:[%s1602_s3 + $0x60] sm:$0xff] %v728_v12  ;;  %889 = vst [vmem:[%s1602_s3 + $0x70] sm:$0xff] %v821_v8 }
 0x13f   :  { %888 = vst [vmem:[%s1602_s3 + $0x68] sm:$0xff] %v730_v9  ;;  %890 = vst [vmem:[%s1602_s3 + $0x78] sm:$0xff] %v823_v13 }
 0x141   :  { %v733_v14 = vpop.f32.mrb[28].mxu0  ;;  %v826_v19 = vpop.f32.mrb[28].mxu1 }
 0x142   :  { %v734_v15 = vadd.f32 %v733_v14, %v1387_v0  ;;  %v735_v20 = vpop.f32.mrb[29].mxu0  ;;  %v827_v21 = vadd.f32 %v826_v19, %v1396_v16  ;;  %v828_v23 = vpop.f32.mrb[29].mxu1 }
 0x143   :  { %v736_v22 = vadd.f32 %v735_v20, %v1399_v17  ;;  %v737_v24 = vpop.f32.mrb[30].mxu0  ;;  %v829_v25 = vadd.f32 %v828_v23, %v1405_v18  ;;  %v830_v27 = vpop.f32.mrb[30].mxu1 }
 0x144   :  { %895 = vst [vmem:[%s1602_s3 + $0xa0] sm:$0xff] %v734_v15  ;;  %v738_v26 = vadd.f32 %v737_v24, %v1387_v0  ;;  %v739_v28 = vpop.f32.mrb[31].mxu0  ;;  %897 = vst [vmem:[%s1602_s3 + $0xb0] sm:$0xff] %v827_v21  ;;  %v831_v29 = vadd.f32 %v830_v27, %v1396_v16  ;;  %v832_v31 = vpop.f32.mrb[31].mxu1 }
 0x145   :  { %896 = vst [vmem:[%s1602_s3 + $0xa8] sm:$0xff] %v736_v22  ;;  %v740_v30 = vadd.f32 %v739_v28, %v1399_v17  ;;  %898 = vst [vmem:[%s1602_s3 + $0xb8] sm:$0xff] %v829_v25  ;;  %v833_v32 = vadd.f32 %v832_v31, %v1405_v18 }
 0x146   :  { %903 = vst [vmem:[%s1602_s3 + $0xe0] sm:$0xff] %v738_v26  ;;  %905 = vst [vmem:[%s1602_s3 + $0xf0] sm:$0xff] %v831_v29 }
 0x147   :  { %904 = vst [vmem:[%s1602_s3 + $0xe8] sm:$0xff] %v740_v30  ;;  %906 = vst [vmem:[%s1602_s3 + $0xf8] sm:$0xff] %v833_v32 }
 0x149   :  { %v743_v33 = vpop.f32.mrb[32].mxu0  ;;  %v836_v35 = vpop.f32.mrb[32].mxu1 }
 0x14a   :  { %v744_v34 = vadd.f32 %v743_v33, %v1387_v0  ;;  %v745_v36 = vpop.f32.mrb[33].mxu0  ;;  %v837_v37 = vadd.f32 %v836_v35, %v1396_v16  ;;  %v838_v39 = vpop.f32.mrb[33].mxu1 }
 0x14b   :  { %v746_v38 = vadd.f32 %v745_v36, %v1399_v17  ;;  %v747_v40 = vpop.f32.mrb[34].mxu0  ;;  %v839_v41 = vadd.f32 %v838_v39, %v1405_v18  ;;  %v840_v43 = vpop.f32.mrb[34].mxu1 }
 0x14c   :  { %911 = vst [vmem:[%s1602_s3 + $0x120] sm:$0xff] %v744_v34  ;;  %v748_v42 = vadd.f32 %v747_v40, %v1387_v0  ;;  %v749_v44 = vpop.f32.mrb[35].mxu0  ;;  %913 = vst [vmem:[%s1602_s3 + $0x130] sm:$0xff] %v837_v37  ;;  %v841_v45 = vadd.f32 %v840_v43, %v1396_v16  ;;  %v842_v47 = vpop.f32.mrb[35].mxu1 }
 0x14d   :  { %912 = vst [vmem:[%s1602_s3 + $0x128] sm:$0xff] %v746_v38  ;;  %v750_v46 = vadd.f32 %v749_v44, %v1399_v17  ;;  %914 = vst [vmem:[%s1602_s3 + $0x138] sm:$0xff] %v839_v41  ;;  %v843_v48 = vadd.f32 %v842_v47, %v1405_v18 }
 0x14e   :  { %919 = vst [vmem:[%s1602_s3 + $0x160] sm:$0xff] %v748_v42  ;;  %921 = vst [vmem:[%s1602_s3 + $0x170] sm:$0xff] %v841_v45 }
 0x14f   :  { %920 = vst [vmem:[%s1602_s3 + $0x168] sm:$0xff] %v750_v46  ;;  %922 = vst [vmem:[%s1602_s3 + $0x178] sm:$0xff] %v843_v48 }
 0x151   :  { %v753_v49 = vpop.f32.mrb[36].mxu0  ;;  %v846_v51 = vpop.f32.mrb[36].mxu1 }
 0x152   :  { %v754_v50 = vadd.f32 %v753_v49, %v1387_v0  ;;  %v755_v52 = vpop.f32.mrb[37].mxu0  ;;  %v847_v53 = vadd.f32 %v846_v51, %v1396_v16  ;;  %v848_v55 = vpop.f32.mrb[37].mxu1 }
 0x153   :  { %v756_v54 = vadd.f32 %v755_v52, %v1399_v17  ;;  %v757_v56 = vpop.f32.mrb[38].mxu0  ;;  %v849_v57 = vadd.f32 %v848_v55, %v1405_v18  ;;  %v850_v59 = vpop.f32.mrb[38].mxu1 }
 0x154   :  { %927 = vst [vmem:[%s1602_s3 + $0x1a0] sm:$0xff] %v754_v50  ;;  %v758_v58 = vadd.f32 %v757_v56, %v1387_v0  ;;  %v759_v10 = vpop.f32.mrb[39].mxu0  ;;  %929 = vst [vmem:[%s1602_s3 + $0x1b0] sm:$0xff] %v847_v53  ;;  %v851_v60 = vadd.f32 %v850_v59, %v1396_v16  ;;  %v852_v62 = vpop.f32.mrb[39].mxu1 }
 0x155   :  { %928 = vst [vmem:[%s1602_s3 + $0x1a8] sm:$0xff] %v756_v54  ;;  %v760_v61 = vadd.f32 %v759_v10, %v1399_v17  ;;  %930 = vst [vmem:[%s1602_s3 + $0x1b8] sm:$0xff] %v849_v57  ;;  %v853_v63 = vadd.f32 %v852_v62, %v1405_v18 }
 0x156   :  { %935 = vst [vmem:[%s1602_s3 + $0x1e0] sm:$0xff] %v758_v58  ;;  %937 = vst [vmem:[%s1602_s3 + $0x1f0] sm:$0xff] %v851_v60 }
 0x157   :  { %936 = vst [vmem:[%s1602_s3 + $0x1e8] sm:$0xff] %v760_v61  ;;  %938 = vst [vmem:[%s1602_s3 + $0x1f8] sm:$0xff] %v853_v63 }
 0x159   :  { %v763_v1 = vpop.f32.mrb[40].mxu0  ;;  %v856_v3 = vpop.f32.mrb[40].mxu1 }
 0x15a   :  { %v764_v2 = vadd.f32 %v763_v1, %v1387_v0  ;;  %v765_v4 = vpop.f32.mrb[41].mxu0  ;;  %v857_v5 = vadd.f32 %v856_v3, %v1396_v16  ;;  %v858_v6 = vpop.f32.mrb[41].mxu1 }
 0x15b   :  { %v766_v12 = vadd.f32 %v765_v4, %v1399_v17  ;;  %v767_v7 = vpop.f32.mrb[42].mxu0  ;;  %v859_v8 = vadd.f32 %v858_v6, %v1405_v18  ;;  %v860_v11 = vpop.f32.mrb[42].mxu1 }
 0x15c   :  { %943 = vst [vmem:[%s1602_s3 + $0x220] sm:$0xff] %v764_v2  ;;  %v768_v9 = vadd.f32 %v767_v7, %v1387_v0  ;;  %v769_v13 = vpop.f32.mrb[43].mxu0  ;;  %945 = vst [vmem:[%s1602_s3 + $0x230] sm:$0xff] %v857_v5  ;;  %v861_v14 = vadd.f32 %v860_v11, %v1396_v16  ;;  %v862_v19 = vpop.f32.mrb[43].mxu1 }
 0x15d   :  { %944 = vst [vmem:[%s1602_s3 + $0x228] sm:$0xff] %v766_v12  ;;  %v770_v15 = vadd.f32 %v769_v13, %v1399_v17  ;;  %946 = vst [vmem:[%s1602_s3 + $0x238] sm:$0xff] %v859_v8  ;;  %v863_v20 = vadd.f32 %v862_v19, %v1405_v18 }
 0x15e   :  { %951 = vst [vmem:[%s1602_s3 + $0x260] sm:$0xff] %v768_v9  ;;  %953 = vst [vmem:[%s1602_s3 + $0x270] sm:$0xff] %v861_v14 }
 0x15f   :  { %952 = vst [vmem:[%s1602_s3 + $0x268] sm:$0xff] %v770_v15  ;;  %954 = vst [vmem:[%s1602_s3 + $0x278] sm:$0xff] %v863_v20 }
 0x161   :  { %v773_v21 = vpop.f32.mrb[44].mxu0  ;;  %v866_v23 = vpop.f32.mrb[44].mxu1 }
 0x162   :  { %v774_v22 = vadd.f32 %v773_v21, %v1387_v0  ;;  %v775_v24 = vpop.f32.mrb[45].mxu0  ;;  %v867_v25 = vadd.f32 %v866_v23, %v1396_v16  ;;  %v868_v27 = vpop.f32.mrb[45].mxu1 }
 0x163   :  { %v776_v26 = vadd.f32 %v775_v24, %v1399_v17  ;;  %v777_v28 = vpop.f32.mrb[46].mxu0  ;;  %v869_v29 = vadd.f32 %v868_v27, %v1405_v18  ;;  %v870_v31 = vpop.f32.mrb[46].mxu1 }
 0x164   :  { %959 = vst [vmem:[%s1602_s3 + $0x2a0] sm:$0xff] %v774_v22  ;;  %v778_v30 = vadd.f32 %v777_v28, %v1387_v0  ;;  %v779_v32 = vpop.f32.mrb[47].mxu0  ;;  %961 = vst [vmem:[%s1602_s3 + $0x2b0] sm:$0xff] %v867_v25  ;;  %v871_v33 = vadd.f32 %v870_v31, %v1396_v16  ;;  %v872_v35 = vpop.f32.mrb[47].mxu1 }
 0x165   :  { %960 = vst [vmem:[%s1602_s3 + $0x2a8] sm:$0xff] %v776_v26  ;;  %v780_v34 = vadd.f32 %v779_v32, %v1399_v17  ;;  %962 = vst [vmem:[%s1602_s3 + $0x2b8] sm:$0xff] %v869_v29  ;;  %v873_v0 = vadd.f32 %v872_v35, %v1405_v18 }
 0x166   :  { %967 = vst [vmem:[%s1602_s3 + $0x2e0] sm:$0xff] %v778_v30  ;;  %969 = vst [vmem:[%s1602_s3 + $0x2f0] sm:$0xff] %v871_v33 }
 0x167   :  { %968 = vst [vmem:[%s1602_s3 + $0x2e8] sm:$0xff] %v780_v34  ;;  %970 = vst [vmem:[%s1602_s3 + $0x2f8] sm:$0xff] %v873_v0 }
 0x168   :  { %975 = vsyncpa [#allocation3], 1 }

// kernel: blstm_forward.9
= control target key start
LH: loop header
LB: loop body
LE: loop exit
PB: predicated region body
PF: predicated region fallthrough
CT: control target
= control target key end

     0   :  { %s612_s0 = inlined_call_operand.vmem [shape: bf16[96,256], index: 0, kind: input, shape index: {}]   ;;  %s613_s1 = inlined_call_operand.vmem [shape: bf16[256,128], index: 1, kind: input, shape index: {}]   ;;  %s614_s2 = inlined_call_operand.vmem [shape: f32[1,128], index: 2, kind: input, shape index: {}]   ;;  %s615_s3 = inlined_call_operand.hbm [shape: f32[96,128], index: 3, kind: output, shape index: {}]  }
   0x1   :  { %v432_v0 = vld [vmem:[%s613_s1 + $0x40] sm:$0xff]   ;;  %v434_v2 = vld [vmem:[%s613_s1 + $0x48] sm:$0xff]   ;;  %v436_v4 = vld [vmem:[%s613_s1 + $0x50] sm:$0xff]  }
   0x2   :  { %v433_v1 = vld [vmem:[%s613_s1] sm:$0xff]   ;;  %361 = vmatprep.subr.bf16.mxu0 %v432_v0  ;;  %413 = vmatprep.subr.bf16.mxu1 %v432_v0  ;;  %v435_v3 = vld [vmem:[%s613_s1 + $0x8] sm:$0xff]   ;;  %v437_v5 = vld [vmem:[%s613_s1 + $0x10] sm:$0xff]  }
   0x3   :  { %362 = vmatpush3.bf16.msra.mxu0 %v433_v1  ;;  %421 = vmatpush3.bf16.msra.mxu1 %v433_v1  ;;  %v438_v6 = vld [vmem:[%s613_s1 + $0x58] sm:$0xff]   ;;  %v440_v8 = vld [vmem:[%s613_s1 + $0x60] sm:$0xff]   ;;  %v442_v10 = vld [vmem:[%s613_s1 + $0x68] sm:$0xff]  }
   0x4   :  { %363 = vmatprep.subr.bf16.mxu0 %v434_v2  ;;  %414 = vmatprep.subr.bf16.mxu1 %v434_v2  ;;  %v439_v7 = vld [vmem:[%s613_s1 + $0x18] sm:$0xff]   ;;  %v441_v9 = vld [vmem:[%s613_s1 + $0x20] sm:$0xff]   ;;  %v443_v13 = vld [vmem:[%s613_s1 + $0x28] sm:$0xff]  }
   0x5   :  { %v450_v11 = vld [vmem:[%s612_s0 + $0x4] ss:$8 sps:$4 sm:$0xff]   ;;  %v453_v12 = vld [vmem:[%s612_s0 + $0x34] ss:$8 sps:$4 sm:$0xff]  }
   0x6   :  { %v444_v14 = vld [vmem:[%s613_s1 + $0x70] sm:$0xff]   ;;  %255 = vmatprep.mubr.bf16.mxu0 %v450_v11  ;;  %279 = vmatprep.mubr.bf16.mxu1 %v453_v12  ;;  %v446_v16 = vld [vmem:[%s613_s1 + $0x78] sm:$0xff]  }
   0x7   :  { %364 = vmatpush3.bf16.msra.mxu0 %v435_v3  ;;  %422 = vmatpush3.bf16.msra.mxu1 %v435_v3  ;;  %v445_v15 = vld [vmem:[%s613_s1 + $0x30] sm:$0xff]  }
   0x8   :  { %365 = vmatprep.subr.bf16.mxu0 %v436_v4  ;;  %415 = vmatprep.subr.bf16.mxu1 %v436_v4 }
   0xb   :  { %366 = vmatpush3.bf16.msra.mxu0 %v437_v5  ;;  %423 = vmatpush3.bf16.msra.mxu1 %v437_v5 }
   0xc   :  { %367 = vmatprep.subr.bf16.mxu0 %v438_v6  ;;  %416 = vmatprep.subr.bf16.mxu1 %v438_v6 }
   0xf   :  { %368 = vmatpush3.bf16.msra.mxu0 %v439_v7  ;;  %424 = vmatpush3.bf16.msra.mxu1 %v439_v7 }
  0x10   :  { %369 = vmatprep.subr.bf16.mxu0 %v440_v8  ;;  %417 = vmatprep.subr.bf16.mxu1 %v440_v8 }
  0x13   :  { %370 = vmatpush3.bf16.msra.mxu0 %v441_v9  ;;  %425 = vmatpush3.bf16.msra.mxu1 %v441_v9 }
  0x14   :  { %371 = vmatprep.subr.bf16.mxu0 %v442_v10  ;;  %418 = vmatprep.subr.bf16.mxu1 %v442_v10 }
  0x17   :  { %372 = vmatpush3.bf16.msra.mxu0 %v443_v13  ;;  %426 = vmatpush3.bf16.msra.mxu1 %v443_v13 }
  0x18   :  { %373 = vmatprep.subr.bf16.mxu0 %v444_v14  ;;  %419 = vmatprep.subr.bf16.mxu1 %v444_v14 }
  0x19   :  { %8 = vsyncpa [#allocation3], 0  ;;  %v447_v17 = vld [vmem:[%s613_s1 + $0x38] sm:$0xff]   ;;  %v448_v18 = vld [vmem:[%s612_s0] ss:$8 sps:$4 sm:$0xff]  }
  0x1a   :  { %v451_v19 = vld [vmem:[%s612_s0 + $0x30] ss:$8 sps:$4 sm:$0xff]   ;;  %v454_v20 = vld [vmem:[%s612_s0 + $0x14] ss:$8 sps:$4 sm:$0xff]   ;;  %v456_v21 = vld [vmem:[%s612_s0 + $0x44] ss:$8 sps:$4 sm:$0xff]  }
  0x1b   :  { %374 = vmatpush3.bf16.msra.mxu0 %v445_v15  ;;  %427 = vmatpush3.bf16.msra.mxu1 %v445_v15  ;;  %v458_v22 = vld [vmem:[%s612_s0 + $0x10] ss:$8 sps:$4 sm:$0xff]   ;;  %v459_v23 = vld [vmem:[%s612_s0 + $0x40] ss:$8 sps:$4 sm:$0xff]   ;;  %v460_v24 = vld [vmem:[%s612_s0 + $0x24] ss:$8 sps:$4 sm:$0xff]  }
  0x1c   :  { %375 = vmatprep.subr.bf16.mxu0 %v446_v16  ;;  %420 = vmatprep.subr.bf16.mxu1 %v446_v16  ;;  %v462_v25 = vld [vmem:[%s612_s0 + $0x54] ss:$8 sps:$4 sm:$0xff]   ;;  %v464_v26 = vld [vmem:[%s612_s0 + $0x20] ss:$8 sps:$4 sm:$0xff]   ;;  %v465_v27 = vld [vmem:[%s612_s0 + $0x50] ss:$8 sps:$4 sm:$0xff]  }
  0x1d   :  { %v332_v30 = vld [vmem:[%s614_s2] ss:$0 sm:$0xff]  ;;  %s490_s0 = smov [#allocation2]  }
  0x1e   :  { %s321_s2 = sshll.u32 %s490_s0, 4  ;;  %s322_s2 = int_to_ptr.vmem [resolvable:$true] %s321_s2 }
  0x1f   :  { %376 = vmatpush3.bf16.msra.mxu0 %v447_v17  ;;  %428 = vmatpush3.bf16.msra.mxu1 %v447_v17  ;;  %s466_s15 = scalar_lea.vmem %s322_s2, 1536  ;;  %p471_p1 = scmp.lt.s32.totalorder %s322_s2, %s322_s2 }
  0x20   :  { %p467_p0 = scmp.ne.s32.totalorder %s322_s2, %s466_s15  ;;  %p472_p2 = scmp.lt.s32.totalorder %s466_s15, %s466_s15 }
  0x22   :  { %256 = vmatmul.mubr.bf16.vlgmr.msra.gmra.mrb[0].mxu0 %v448_v18  ;;  %280 = vmatmul.mubr.bf16.vlgmr.msra.gmra.mrb[0].mxu1 %v451_v19  ;;  %p473_p3 = por %p472_p2, %p471_p1 }
  0x23   :  { %263 = vmatprep.mubr.bf16.mxu0 %v454_v20  ;;  %287 = vmatprep.mubr.bf16.mxu1 %v456_v21 }
  0x24   :  { %p474_p4 = pnand %p473_p3, %p467_p0 }
  0x2a   :  { %264 = vmatmul.mubr.bf16.gmra.mrb[4].mxu0 %v458_v22  ;;  %288 = vmatmul.mubr.bf16.gmra.mrb[4].mxu1 %v459_v23 }
  0x2b   :  { %271 = vmatprep.mubr.bf16.mxu0 %v460_v24  ;;  %295 = vmatprep.mubr.bf16.mxu1 %v462_v25 }
  0x32   :  { %272 = vmatmul.mubr.bf16.gmra.mrb[8].mxu0 %v464_v26  ;;  %296 = vmatmul.mubr.bf16.gmra.mrb[8].mxu1 %v465_v27 }
  0xf5   :  { %v377_v28 = vpop.f32.mrb[0].mxu0  ;;  %v395_v29 = vpop.f32.mrb[0].mxu1 }
  0xf6   :  { %v378_v31 = vpop.f32.mrb[1].mxu0  ;;  %v396_v32 = vpop.f32.mrb[1].mxu1 }
  0xf7   :  { %v379_v33 = vadd.f32 %v378_v31, %v377_v28  ;;  %v397_v34 = vadd.f32 %v396_v32, %v395_v29  ;;  %v380_v35 = vpop.f32.mrb[2].mxu0  ;;  %v398_v36 = vpop.f32.mrb[2].mxu1 }
  0xf8   :  { %v381_v37 = vpop.f32.mrb[3].mxu0  ;;  %v399_v38 = vpop.f32.mrb[3].mxu1 }
  0xf9   :  { %v258_v39 = vadd.f32 %v379_v33, %v332_v30  ;;  %v282_v40 = vadd.f32 %v397_v34, %v332_v30  ;;  %v382_v41 = vadd.f32 %v381_v37, %v380_v35  ;;  %v400_v42 = vadd.f32 %v399_v38, %v398_v36 }
  0xfb   :  { %304 = vst [vmem:[#allocation2] sm:$0xff] %v258_v39  ;;  %310 = vst [vmem:[#allocation2 + $0x30] sm:$0xff] %v282_v40  ;;  %v261_v43 = vadd.f32 %v382_v41, %v332_v30  ;;  %v285_v44 = vadd.f32 %v400_v42, %v332_v30 }
  0xfd   :  { %305 = vst [vmem:[#allocation2 + $0x8] sm:$0xff] %v261_v43  ;;  %311 = vst [vmem:[#allocation2 + $0x38] sm:$0xff] %v285_v44  ;;  %v383_v45 = vpop.f32.mrb[4].mxu0  ;;  %v401_v46 = vpop.f32.mrb[4].mxu1 }
  0xfe   :  { %v384_v47 = vpop.f32.mrb[5].mxu0  ;;  %v402_v48 = vpop.f32.mrb[5].mxu1 }
  0xff   :  { %v385_v49 = vadd.f32 %v384_v47, %v383_v45  ;;  %v403_v50 = vadd.f32 %v402_v48, %v401_v46  ;;  %v386_v51 = vpop.f32.mrb[6].mxu0  ;;  %v404_v52 = vpop.f32.mrb[6].mxu1 }
 0x100   :  { %v387_v53 = vpop.f32.mrb[7].mxu0  ;;  %v405_v54 = vpop.f32.mrb[7].mxu1 }
 0x101   :  { %v266_v55 = vadd.f32 %v385_v49, %v332_v30  ;;  %v290_v56 = vadd.f32 %v403_v50, %v332_v30  ;;  %v388_v57 = vadd.f32 %v387_v53, %v386_v51  ;;  %v406_v58 = vadd.f32 %v405_v54, %v404_v52 }
 0x103   :  { %306 = vst [vmem:[#allocation2 + $0x10] sm:$0xff] %v266_v55  ;;  %312 = vst [vmem:[#allocation2 + $0x40] sm:$0xff] %v290_v56  ;;  %v269_v59 = vadd.f32 %v388_v57, %v332_v30  ;;  %v293_v60 = vadd.f32 %v406_v58, %v332_v30 }
 0x105   :  { %307 = vst [vmem:[#allocation2 + $0x18] sm:$0xff] %v269_v59  ;;  %313 = vst [vmem:[#allocation2 + $0x48] sm:$0xff] %v293_v60  ;;  %v389_v61 = vpop.f32.mrb[8].mxu0  ;;  %v407_v62 = vpop.f32.mrb[8].mxu1 }
 0x106   :  { %v390_v63 = vpop.f32.mrb[9].mxu0  ;;  %v408_v0 = vpop.f32.mrb[9].mxu1 }
 0x107   :  { %v391_v1 = vadd.f32 %v390_v63, %v389_v61  ;;  %v409_v2 = vadd.f32 %v408_v0, %v407_v62  ;;  %v392_v3 = vpop.f32.mrb[10].mxu0  ;;  %v410_v4 = vpop.f32.mrb[10].mxu1 }
 0x108   :  { %v393_v5 = vpop.f32.mrb[11].mxu0  ;;  %v411_v6 = vpop.f32.mrb[11].mxu1 }
 0x109   :  { %v274_v7 = vadd.f32 %v391_v1, %v332_v30  ;;  %v298_v8 = vadd.f32 %v409_v2, %v332_v30  ;;  %v394_v9 = vadd.f32 %v393_v5, %v392_v3  ;;  %v412_v10 = vadd.f32 %v411_v6, %v410_v4 }
 0x10b   :  { %308 = vst [vmem:[#allocation2 + $0x20] sm:$0xff] %v274_v7  ;;  %314 = vst [vmem:[#allocation2 + $0x50] sm:$0xff] %v298_v8  ;;  %v277_v11 = vadd.f32 %v394_v9, %v332_v30  ;;  %v301_v12 = vadd.f32 %v412_v10, %v332_v30 }
 0x10d   :  { %309 = vst [vmem:[#allocation2 + $0x28] sm:$0xff] %v277_v11  ;;  %315 = vst [vmem:[#allocation2 + $0x58] sm:$0xff] %v301_v12 }
 0x10e   :  { %477 = shalt.err (!%p474_p4)
}
 0x10f   :  { %s478_s18 = scalar_lea.hbm %s615_s3, 1536 }
 0x110   :  { %p479_p5 = scmp.ne.s32.totalorder %s615_s3, %s478_s18  ;;  %p482_p6 = scmp.lt.u32.totalorder %s478_s18, %s615_s3 }
 0x112   :  { %p484_p7 = pnand %p482_p6, %p479_p5 }
 0x114   :  { %487 = shalt.err (!%p484_p7)
}
 0x115   :  { %s491_s23 = smov 128   ;;  %s492_s24 = smov 8  }
 0x116   :  { %327 = dma.vmem_to_hbm [thread:$0]  %s322_s2, 1536, %s615_s3, [#allocation3], %s491_s23, %s491_s23, %s492_s24  }
 0x117   :  { %488 = dma.done.wait [#allocation3], 1536  }
 0x118   :  { %489 = vsyncadd [#allocation3], 4294965760 }
 0x119   :  { %331 = vsyncpa [#allocation3], 1 }

// kernel: blstm_forward.7
= control target key start
LH: loop header
LB: loop body
LE: loop exit
PB: predicated region body
PF: predicated region fallthrough
CT: control target
= control target key end

     0   :  { %s2461_s1 = inlined_call_operand.vmem [shape: bf16[256,1024], index: 1, kind: input, shape index: {}]   ;;  %s2462_s0 = inlined_call_operand.vmem [shape: bf16[96,256], index: 0, kind: input, shape index: {}]   ;;  %s2463_s2 = inlined_call_operand.vmem [shape: f32[1,1024], index: 2, kind: input, shape index: {}]   ;;  %s2464_s3 = inlined_call_operand.vmem [shape: f32[96,1024], index: 3, kind: output, shape index: {}]  }
   0x1   :  { %v26_v0 = vld [vmem:[%s2461_s1] sm:$0xff]  ;;  %v27_v2 = vld [vmem:[%s2461_s1 + $0x8] sm:$0xff] }
   0x2   :  { %v30_v1 = vld [vmem:[%s2461_s1 + $0x20] sm:$0xff]  ;;  %v31_v4 = vld [vmem:[%s2461_s1 + $0x28] sm:$0xff] }
   0x3   :  { %v1381_v3 = vcombine.high %v26_v0, %v30_v1  ;;  %v1380_v5 = vcombine.low %v26_v0, %v30_v1  ;;  %v34_v6 = vld [vmem:[%s2461_s1 + $0x40] sm:$0xff]  ;;  %v1383_v8 = vcombine.high %v27_v2, %v31_v4  ;;  %v1382_v9 = vcombine.low %v27_v2, %v31_v4  ;;  %v35_v11 = vld [vmem:[%s2461_s1 + $0x48] sm:$0xff] }
   0x4   :  { %v38_v7 = vld [vmem:[%s2461_s1 + $0x60] sm:$0xff]  ;;  %v39_v12 = vld [vmem:[%s2461_s1 + $0x68] sm:$0xff] }
   0x5   :  { %v1389_v10 = vcombine.high %v34_v6, %v38_v7  ;;  %v42_v13 = vld [vmem:[%s2461_s1 + $0x80] sm:$0xff]  ;;  %896 = vmatprep.subr.bf16.mxu0 %v1381_v3  ;;  %v1391_v14 = vcombine.high %v35_v11, %v39_v12  ;;  %v43_v16 = vld [vmem:[%s2461_s1 + $0x88] sm:$0xff]  ;;  %989 = vmatprep.subr.bf16.mxu1 %v1383_v8  ;;  %v1388_v18 = vcombine.low %v34_v6, %v38_v7 }
   0x6   :  { %v46_v15 = vld [vmem:[%s2461_s1 + $0xa0] sm:$0xff]  ;;  %v47_v17 = vld [vmem:[%s2461_s1 + $0xa8] sm:$0xff]  ;;  %897 = vmatpush1.bf16.msra.mxu0 %v1380_v5  ;;  %990 = vmatpush1.bf16.msra.mxu1 %v1382_v9  ;;  %v1390_v19 = vcombine.low %v35_v11, %v39_v12 }
   0x7   :  { %898 = vmatprep.subr.bf16.mxu0 %v1389_v10  ;;  %v1397_v20 = vcombine.high %v42_v13, %v46_v15  ;;  %991 = vmatprep.subr.bf16.mxu1 %v1391_v14  ;;  %v1399_v21 = vcombine.high %v43_v16, %v47_v17  ;;  %v50_v22 = vld [vmem:[%s2461_s1 + $0xc0] sm:$0xff]  ;;  %v51_v24 = vld [vmem:[%s2461_s1 + $0xc8] sm:$0xff]  ;;  %v1396_v26 = vcombine.low %v42_v13, %v46_v15 }
   0x8   :  { %v54_v23 = vld [vmem:[%s2461_s1 + $0xe0] sm:$0xff]  ;;  %v55_v25 = vld [vmem:[%s2461_s1 + $0xe8] sm:$0xff]  ;;  %v1398_v27 = vcombine.low %v43_v16, %v47_v17 }
   0x9   :  { %v1405_v28 = vcombine.high %v50_v22, %v54_v23  ;;  %v1407_v29 = vcombine.high %v51_v24, %v55_v25  ;;  %v58_v30 = vld [vmem:[%s2461_s1 + $0x100] sm:$0xff]  ;;  %v59_v32 = vld [vmem:[%s2461_s1 + $0x108] sm:$0xff]  ;;  %v1404_v34 = vcombine.low %v50_v22, %v54_v23  ;;  %v1406_v35 = vcombine.low %v51_v24, %v55_v25 }
   0xa   :  { %899 = vmatpush1.bf16.msra.mxu0 %v1388_v18  ;;  %992 = vmatpush1.bf16.msra.mxu1 %v1390_v19  ;;  %v62_v31 = vld [vmem:[%s2461_s1 + $0x120] sm:$0xff]  ;;  %v63_v33 = vld [vmem:[%s2461_s1 + $0x128] sm:$0xff] }
   0xb   :  { %900 = vmatprep.subr.bf16.mxu0 %v1397_v20  ;;  %993 = vmatprep.subr.bf16.mxu1 %v1399_v21  ;;  %v1413_v36 = vcombine.high %v58_v30, %v62_v31  ;;  %v1415_v37 = vcombine.high %v59_v32, %v63_v33  ;;  %v66_v38 = vld [vmem:[%s2461_s1 + $0x140] sm:$0xff]  ;;  %v67_v40 = vld [vmem:[%s2461_s1 + $0x148] sm:$0xff]  ;;  %v1412_v42 = vcombine.low %v58_v30, %v62_v31 }
   0xc   :  { %v70_v39 = vld [vmem:[%s2461_s1 + $0x160] sm:$0xff]  ;;  %v71_v41 = vld [vmem:[%s2461_s1 + $0x168] sm:$0xff]  ;;  %v1414_v43 = vcombine.low %v59_v32, %v63_v33 }
   0xd   :  { %v1421_v44 = vcombine.high %v66_v38, %v70_v39  ;;  %v1423_v45 = vcombine.high %v67_v40, %v71_v41  ;;  %v74_v46 = vld [vmem:[%s2461_s1 + $0x180] sm:$0xff]  ;;  %v75_v48 = vld [vmem:[%s2461_s1 + $0x188] sm:$0xff]  ;;  %v1420_v50 = vcombine.low %v66_v38, %v70_v39  ;;  %v1422_v51 = vcombine.low %v67_v40, %v71_v41 }
   0xe   :  { %901 = vmatpush1.bf16.msra.mxu0 %v1396_v26  ;;  %994 = vmatpush1.bf16.msra.mxu1 %v1398_v27  ;;  %v78_v47 = vld [vmem:[%s2461_s1 + $0x1a0] sm:$0xff]  ;;  %v79_v49 = vld [vmem:[%s2461_s1 + $0x1a8] sm:$0xff] }
   0xf   :  { %902 = vmatprep.subr.bf16.mxu0 %v1405_v28  ;;  %995 = vmatprep.subr.bf16.mxu1 %v1407_v29  ;;  %v1429_v52 = vcombine.high %v74_v46, %v78_v47  ;;  %v1431_v53 = vcombine.high %v75_v48, %v79_v49  ;;  %v82_v54 = vld [vmem:[%s2461_s1 + $0x1c0] sm:$0xff]  ;;  %v83_v57 = vld [vmem:[%s2461_s1 + $0x1c8] sm:$0xff]  ;;  %v1428_v59 = vcombine.low %v74_v46, %v78_v47 }
  0x10   :  { %v86_v55 = vld [vmem:[%s2461_s1 + $0x1e0] sm:$0xff]  ;;  %v87_v58 = vld [vmem:[%s2461_s1 + $0x1e8] sm:$0xff]  ;;  %v1430_v60 = vcombine.low %v75_v48, %v79_v49 }
  0x11   :  { %v1639_v56 = vld [vmem:[%s2462_s0 + $0x4] ss:$8 sps:$4 sm:$0xff]   ;;  %v1437_v61 = vcombine.high %v82_v54, %v86_v55  ;;  %v1439_v62 = vcombine.high %v83_v57, %v87_v58  ;;  %v1436_v3 = vcombine.low %v82_v54, %v86_v55  ;;  %v1438_v4 = vcombine.low %v83_v57, %v87_v58 }
  0x12   :  { %903 = vmatpush1.bf16.msra.mxu0 %v1404_v34  ;;  %996 = vmatpush1.bf16.msra.mxu1 %v1406_v35  ;;  %v90_v63 = vld [vmem:[%s2461_s1 + $0x200] sm:$0xff]  ;;  %v91_v1 = vld [vmem:[%s2461_s1 + $0x208] sm:$0xff] }
  0x13   :  { %904 = vmatprep.subr.bf16.mxu0 %v1413_v36  ;;  %997 = vmatprep.subr.bf16.mxu1 %v1415_v37  ;;  %v94_v0 = vld [vmem:[%s2461_s1 + $0x220] sm:$0xff]  ;;  %v95_v2 = vld [vmem:[%s2461_s1 + $0x228] sm:$0xff] }
  0x14   :  { %928 = vmatprep.mubr.bf16.mxu0 %v1639_v56  ;;  %1021 = vmatprep.mubr.bf16.mxu1 %v1639_v56  ;;  %v1445_v5 = vcombine.high %v90_v63, %v94_v0  ;;  %v1447_v6 = vcombine.high %v91_v1, %v95_v2  ;;  %v98_v7 = vld [vmem:[%s2461_s1 + $0x240] sm:$0xff]  ;;  %v99_v9 = vld [vmem:[%s2461_s1 + $0x248] sm:$0xff]  ;;  %v1444_v11 = vcombine.low %v90_v63, %v94_v0  ;;  %v28_v0 = vld [vmem:[%s2461_s1 + $0x10] sm:$0xff] }
  0x15   :  { %v102_v8 = vld [vmem:[%s2461_s1 + $0x260] sm:$0xff]  ;;  %v103_v10 = vld [vmem:[%s2461_s1 + $0x268] sm:$0xff]  ;;  %v1446_v12 = vcombine.low %v91_v1, %v95_v2  ;;  %v32_v1 = vld [vmem:[%s2461_s1 + $0x30] sm:$0xff] }
  0x16   :  { %905 = vmatpush1.bf16.msra.mxu0 %v1412_v42  ;;  %998 = vmatpush1.bf16.msra.mxu1 %v1414_v43  ;;  %v1453_v13 = vcombine.high %v98_v7, %v102_v8  ;;  %v1455_v14 = vcombine.high %v99_v9, %v103_v10  ;;  %v106_v15 = vld [vmem:[%s2461_s1 + $0x280] sm:$0xff]  ;;  %v107_v17 = vld [vmem:[%s2461_s1 + $0x288] sm:$0xff]  ;;  %v1452_v19 = vcombine.low %v98_v7, %v102_v8  ;;  %v29_v2 = vld [vmem:[%s2461_s1 + $0x18] sm:$0xff] }
  0x17   :  { %906 = vmatprep.subr.bf16.mxu0 %v1421_v44  ;;  %999 = vmatprep.subr.bf16.mxu1 %v1423_v45  ;;  %v110_v16 = vld [vmem:[%s2461_s1 + $0x2a0] sm:$0xff]  ;;  %v111_v18 = vld [vmem:[%s2461_s1 + $0x2a8] sm:$0xff]  ;;  %v1454_v20 = vcombine.low %v99_v9, %v103_v10  ;;  %v36_v8 = vld [vmem:[%s2461_s1 + $0x50] sm:$0xff] }
  0x18   :  { %v1461_v21 = vcombine.high %v106_v15, %v110_v16  ;;  %v1463_v22 = vcombine.high %v107_v17, %v111_v18  ;;  %v114_v23 = vld [vmem:[%s2461_s1 + $0x2c0] sm:$0xff]  ;;  %v115_v25 = vld [vmem:[%s2461_s1 + $0x2c8] sm:$0xff]  ;;  %v1460_v27 = vcombine.low %v106_v15, %v110_v16  ;;  %v1462_v28 = vcombine.low %v107_v17, %v111_v18  ;;  %v40_v9 = vld [vmem:[%s2461_s1 + $0x70] sm:$0xff] }
  0x19   :  { %v118_v24 = vld [vmem:[%s2461_s1 + $0x2e0] sm:$0xff]  ;;  %v119_v26 = vld [vmem:[%s2461_s1 + $0x2e8] sm:$0xff]  ;;  %v1393_v15 = vcombine.high %v36_v8, %v40_v9  ;;  %v44_v17 = vld [vmem:[%s2461_s1 + $0x90] sm:$0xff] }
  0x1a   :  { %907 = vmatpush1.bf16.msra.mxu0 %v1420_v50  ;;  %1000 = vmatpush1.bf16.msra.mxu1 %v1422_v51  ;;  %v1469_v29 = vcombine.high %v114_v23, %v118_v24  ;;  %v1471_v30 = vcombine.high %v115_v25, %v119_v26  ;;  %v122_v31 = vld [vmem:[%s2461_s1 + $0x300] sm:$0xff]  ;;  %v123_v33 = vld [vmem:[%s2461_s1 + $0x308] sm:$0xff]  ;;  %v1468_v35 = vcombine.low %v114_v23, %v118_v24  ;;  %v48_v18 = vld [vmem:[%s2461_s1 + $0xb0] sm:$0xff] }
  0x1b   :  { %908 = vmatprep.subr.bf16.mxu0 %v1429_v52  ;;  %1001 = vmatprep.subr.bf16.mxu1 %v1431_v53  ;;  %v126_v32 = vld [vmem:[%s2461_s1 + $0x320] sm:$0xff]  ;;  %v127_v34 = vld [vmem:[%s2461_s1 + $0x328] sm:$0xff]  ;;  %v1470_v36 = vcombine.low %v115_v25, %v119_v26  ;;  %v1401_v24 = vcombine.high %v44_v17, %v48_v18  ;;  %v52_v26 = vld [vmem:[%s2461_s1 + $0xd0] sm:$0xff] }
  0x1c   :  { %v1477_v37 = vcombine.high %v122_v31, %v126_v32  ;;  %v1479_v38 = vcombine.high %v123_v33, %v127_v34  ;;  %v130_v39 = vld [vmem:[%s2461_s1 + $0x340] sm:$0xff]  ;;  %v131_v41 = vld [vmem:[%s2461_s1 + $0x348] sm:$0xff]  ;;  %v1476_v43 = vcombine.low %v122_v31, %v126_v32  ;;  %v1478_v44 = vcombine.low %v123_v33, %v127_v34 }
  0x1d   :  { %v134_v40 = vld [vmem:[%s2461_s1 + $0x360] sm:$0xff]  ;;  %v135_v42 = vld [vmem:[%s2461_s1 + $0x368] sm:$0xff]  ;;  %v1400_v31 = vcombine.low %v44_v17, %v48_v18  ;;  %v100_v18 = vld [vmem:[%s2461_s1 + $0x250] sm:$0xff] }
  0x1e   :  { %909 = vmatpush1.bf16.msra.mxu0 %v1428_v59  ;;  %1002 = vmatpush1.bf16.msra.mxu1 %v1430_v60  ;;  %v1485_v45 = vcombine.high %v130_v39, %v134_v40  ;;  %v1487_v46 = vcombine.high %v131_v41, %v135_v42  ;;  %v138_v47 = vld [vmem:[%s2461_s1 + $0x380] sm:$0xff]  ;;  %v139_v49 = vld [vmem:[%s2461_s1 + $0x388] sm:$0xff]  ;;  %v1484_v51 = vcombine.low %v130_v39, %v134_v40  ;;  %v65_v39 = vld [vmem:[%s2461_s1 + $0x138] sm:$0xff] }
  0x1f   :  { %910 = vmatprep.subr.bf16.mxu0 %v1437_v61  ;;  %1003 = vmatprep.subr.bf16.mxu1 %v1439_v62  ;;  %v142_v48 = vld [vmem:[%s2461_s1 + $0x3a0] sm:$0xff]  ;;  %v143_v50 = vld [vmem:[%s2461_s1 + $0x3a8] sm:$0xff]  ;;  %v1486_v52 = vcombine.low %v131_v41, %v135_v42 }
  0x20   :  { %v1493_v53 = vcombine.high %v138_v47, %v142_v48  ;;  %v1495_v54 = vcombine.high %v139_v49, %v143_v50  ;;  %v146_v55 = vld [vmem:[%s2461_s1 + $0x3c0] sm:$0xff]  ;;  %v147_v58 = vld [vmem:[%s2461_s1 + $0x3c8] sm:$0xff]  ;;  %v1492_v60 = vcombine.low %v138_v47, %v142_v48  ;;  %v1494_v61 = vcombine.low %v139_v49, %v143_v50  ;;  %v73_v47 = vld [vmem:[%s2461_s1 + $0x178] sm:$0xff] }
  0x21   :  { %v150_v57 = vld [vmem:[%s2461_s1 + $0x3e0] sm:$0xff]  ;;  %v151_v59 = vld [vmem:[%s2461_s1 + $0x3e8] sm:$0xff] }
  0x22   :  { %911 = vmatpush1.bf16.msra.mxu0 %v1436_v3  ;;  %1004 = vmatpush1.bf16.msra.mxu1 %v1438_v4  ;;  %v1501_v62 = vcombine.high %v146_v55, %v150_v57  ;;  %v1503_v63 = vcombine.high %v147_v58, %v151_v59  ;;  %v33_v3 = vld [vmem:[%s2461_s1 + $0x38] sm:$0xff]  ;;  %v1500_v4 = vcombine.low %v146_v55, %v150_v57  ;;  %v1766_v10 = vld [vmem:[%s2462_s0] ss:$8 sps:$4 sm:$0xff]  }
  0x23   :  { %912 = vmatprep.subr.bf16.mxu0 %v1445_v5  ;;  %1005 = vmatprep.subr.bf16.mxu1 %v1447_v6  ;;  %v1502_v5 = vcombine.low %v147_v58, %v151_v59  ;;  %v1385_v6 = vcombine.high %v28_v0, %v32_v1  ;;  %v1387_v7 = vcombine.high %v29_v2, %v33_v3  ;;  %v1848_v48 = vld [vmem:[%s2462_s0 + $0x20] ss:$8 sps:$4 sm:$0xff]   ;;  %v1859_v55 = vld [vmem:[%s2462_s0 + $0x34] ss:$8 sps:$4 sm:$0xff]  }
  0x24   :  { %v77_v57 = vld [vmem:[%s2461_s1 + $0x198] sm:$0xff] }
  0x25   :  { %v81_v58 = vld [vmem:[%s2461_s1 + $0x1b8] sm:$0xff] }
  0x26   :  { %913 = vmatpush1.bf16.msra.mxu0 %v1444_v11  ;;  %1006 = vmatpush1.bf16.msra.mxu1 %v1446_v12  ;;  %v37_v11 = vld [vmem:[%s2461_s1 + $0x58] sm:$0xff] }
  0x27   :  { %914 = vmatprep.subr.bf16.mxu0 %v1453_v13  ;;  %1007 = vmatprep.subr.bf16.mxu1 %v1455_v14  ;;  %v41_v12 = vld [vmem:[%s2461_s1 + $0x78] sm:$0xff]  ;;  %v1384_v13 = vcombine.low %v28_v0, %v32_v1  ;;  %v1386_v14 = vcombine.low %v29_v2, %v33_v3  ;;  %v88_v0 = vld [vmem:[%s2461_s1 + $0x1f0] sm:$0xff] }
  0x28   :  { %v1395_v16 = vcombine.high %v37_v11, %v41_v12  ;;  %v1394_v23 = vcombine.low %v37_v11, %v41_v12  ;;  %v85_v1 = vld [vmem:[%s2461_s1 + $0x1d8] sm:$0xff]  ;;  %v1897_v11 = vld [vmem:[%s2462_s0 + $0x44] ss:$8 sps:$4 sm:$0xff]  }
  0x29   :  { %v89_v2 = vld [vmem:[%s2461_s1 + $0x1f8] sm:$0xff] }
  0x2a   :  { %915 = vmatpush1.bf16.msra.mxu0 %v1452_v19  ;;  %1008 = vmatpush1.bf16.msra.mxu1 %v1454_v20  ;;  %v1783_v19 = vld [vmem:[%s2462_s0 + $0x14] ss:$8 sps:$4 sm:$0xff]   ;;  %v1886_v3 = vld [vmem:[%s2462_s0 + $0x30] ss:$8 sps:$4 sm:$0xff]  }
  0x2b   :  { %916 = vmatprep.subr.bf16.mxu0 %v1461_v21  ;;  %1009 = vmatprep.subr.bf16.mxu1 %v1463_v22  ;;  %v45_v20 = vld [vmem:[%s2461_s1 + $0x98] sm:$0xff]  ;;  %v1392_v22 = vcombine.low %v36_v8, %v40_v9  ;;  %v92_v8 = vld [vmem:[%s2461_s1 + $0x210] sm:$0xff] }
  0x2c   :  { %v49_v21 = vld [vmem:[%s2461_s1 + $0xb8] sm:$0xff]  ;;  %v96_v9 = vld [vmem:[%s2461_s1 + $0x230] sm:$0xff] }
  0x2d   :  { %v1403_v25 = vcombine.high %v45_v20, %v49_v21  ;;  %v1402_v32 = vcombine.low %v45_v20, %v49_v21  ;;  %v93_v12 = vld [vmem:[%s2461_s1 + $0x218] sm:$0xff]  ;;  %v104_v20 = vld [vmem:[%s2461_s1 + $0x270] sm:$0xff] }
  0x2e   :  { %917 = vmatpush1.bf16.msra.mxu0 %v1460_v27  ;;  %1010 = vmatpush1.bf16.msra.mxu1 %v1462_v28  ;;  %v56_v27 = vld [vmem:[%s2461_s1 + $0xf0] sm:$0xff]  ;;  %v53_v28 = vld [vmem:[%s2461_s1 + $0xd8] sm:$0xff] }
  0x2f   :  { %918 = vmatprep.subr.bf16.mxu0 %v1469_v29  ;;  %1011 = vmatprep.subr.bf16.mxu1 %v1471_v30  ;;  %v57_v29 = vld [vmem:[%s2461_s1 + $0xf8] sm:$0xff]  ;;  %v1409_v33 = vcombine.high %v52_v26, %v56_v27  ;;  %v1408_v40 = vcombine.low %v52_v26, %v56_v27  ;;  %v1457_v26 = vcombine.high %v100_v18, %v104_v20 }
  0x30   :  { %v1810_v30 = vld [vmem:[%s2462_s0 + $0x10] ss:$8 sps:$4 sm:$0xff]   ;;  %v1411_v34 = vcombine.high %v53_v28, %v57_v29  ;;  %v1410_v41 = vcombine.low %v53_v28, %v57_v29 }
  0x31   :  { %v101_v21 = vld [vmem:[%s2461_s1 + $0x258] sm:$0xff]  ;;  %v108_v28 = vld [vmem:[%s2461_s1 + $0x290] sm:$0xff] }
  0x32   :  { %919 = vmatpush1.bf16.msra.mxu0 %v1468_v35  ;;  %1012 = vmatpush1.bf16.msra.mxu1 %v1470_v36  ;;  %v60_v35 = vld [vmem:[%s2461_s1 + $0x110] sm:$0xff] }
  0x33   :  { %920 = vmatprep.subr.bf16.mxu0 %v1477_v37  ;;  %1013 = vmatprep.subr.bf16.mxu1 %v1479_v38  ;;  %v64_v36 = vld [vmem:[%s2461_s1 + $0x130] sm:$0xff]  ;;  %v1821_v37 = vld [vmem:[%s2462_s0 + $0x24] ss:$8 sps:$4 sm:$0xff]   ;;  %v61_v38 = vld [vmem:[%s2461_s1 + $0x118] sm:$0xff] }
  0x34   :  { %v1417_v42 = vcombine.high %v60_v35, %v64_v36  ;;  %v1416_v49 = vcombine.low %v60_v35, %v64_v36  ;;  %v1418_v50 = vcombine.low %v61_v38, %v65_v39  ;;  %v112_v29 = vld [vmem:[%s2461_s1 + $0x2b0] sm:$0xff] }
  0x35   :  { %v1465_v36 = vcombine.high %v108_v28, %v112_v29 }
  0x36   :  { %921 = vmatpush1.bf16.msra.mxu0 %v1476_v43  ;;  %1014 = vmatpush1.bf16.msra.mxu1 %v1478_v44  ;;  %v1419_v43 = vcombine.high %v61_v38, %v65_v39  ;;  %v68_v44 = vld [vmem:[%s2461_s1 + $0x150] sm:$0xff] }
  0x37   :  { %922 = vmatprep.subr.bf16.mxu0 %v1485_v45  ;;  %1015 = vmatprep.subr.bf16.mxu1 %v1487_v46  ;;  %v72_v45 = vld [vmem:[%s2461_s1 + $0x170] sm:$0xff]  ;;  %v69_v46 = vld [vmem:[%s2461_s1 + $0x158] sm:$0xff] }
  0x38   :  { %v1424_v59 = vcombine.low %v68_v44, %v72_v45  ;;  %v116_v39 = vld [vmem:[%s2461_s1 + $0x2d0] sm:$0xff] }
  0x3a   :  { %923 = vmatpush1.bf16.msra.mxu0 %v1484_v51  ;;  %1016 = vmatpush1.bf16.msra.mxu1 %v1486_v52  ;;  %v1425_v51 = vcombine.high %v68_v44, %v72_v45  ;;  %v1427_v52 = vcombine.high %v69_v46, %v73_v47  ;;  %v1464_v44 = vcombine.low %v108_v28, %v112_v29 }
  0x3b   :  { %924 = vmatprep.subr.bf16.mxu0 %v1493_v53  ;;  %1017 = vmatprep.subr.bf16.mxu1 %v1495_v54  ;;  %v76_v53 = vld [vmem:[%s2461_s1 + $0x190] sm:$0xff] }
  0x3c   :  { %v80_v54 = vld [vmem:[%s2461_s1 + $0x1b0] sm:$0xff] }
  0x3e   :  { %925 = vmatpush1.bf16.msra.mxu0 %v1492_v60  ;;  %1018 = vmatpush1.bf16.msra.mxu1 %v1494_v61  ;;  %v1426_v60 = vcombine.low %v69_v46, %v73_v47  ;;  %v1433_v61 = vcombine.high %v76_v53, %v80_v54 }
  0x3f   :  { %926 = vmatprep.subr.bf16.mxu0 %v1501_v62  ;;  %1019 = vmatprep.subr.bf16.mxu1 %v1503_v63  ;;  %v1435_v62 = vcombine.high %v77_v57, %v81_v58  ;;  %v84_v63 = vld [vmem:[%s2461_s1 + $0x1d0] sm:$0xff] }
  0x42   :  { %927 = vmatpush1.bf16.msra.mxu0 %v1500_v4  ;;  %1020 = vmatpush1.bf16.msra.mxu1 %v1502_v5  ;;  %v1432_v4 = vcombine.low %v76_v53, %v80_v54  ;;  %v1434_v5 = vcombine.low %v77_v57, %v81_v58 }
  0x43   :  { %1082 = vmatprep.subr.bf16.mxu0 %v1385_v6  ;;  %1175 = vmatprep.subr.bf16.mxu1 %v1387_v7  ;;  %v1441_v6 = vcombine.high %v84_v63, %v88_v0  ;;  %v1443_v7 = vcombine.high %v85_v1, %v89_v2 }
  0x45   :  { %929 = vmatmul.mubr.bf16.vlgmr.msra.gmra.mrb[0].mxu0 %v1766_v10  ;;  %1022 = vmatmul.mubr.bf16.vlgmr.msra.gmra.mrb[0].mxu1 %v1766_v10 }
  0x46   :  { %1083 = vmatpush1.bf16.msra.mxu0 %v1384_v13  ;;  %1176 = vmatpush1.bf16.msra.mxu1 %v1386_v14  ;;  %v97_v13 = vld [vmem:[%s2461_s1 + $0x238] sm:$0xff]  ;;  %v1440_v14 = vcombine.low %v84_v63, %v88_v0 }
  0x47   :  { %1084 = vmatprep.subr.bf16.mxu0 %v1393_v15  ;;  %1177 = vmatprep.subr.bf16.mxu1 %v1395_v16  ;;  %v1442_v15 = vcombine.low %v85_v1, %v89_v2  ;;  %v1449_v16 = vcombine.high %v92_v8, %v96_v9  ;;  %v1451_v17 = vcombine.high %v93_v12, %v97_v13 }
  0x48   :  { %938 = vmatprep.mubr.bf16.mxu0 %v1783_v19  ;;  %1031 = vmatprep.mubr.bf16.mxu1 %v1783_v19 }
  0x4a   :  { %1085 = vmatpush1.bf16.msra.mxu0 %v1392_v22  ;;  %1178 = vmatpush1.bf16.msra.mxu1 %v1394_v23  ;;  %v105_v22 = vld [vmem:[%s2461_s1 + $0x278] sm:$0xff]  ;;  %v1924_v23 = vld [vmem:[%s2462_s0 + $0x40] ss:$8 sps:$4 sm:$0xff]  }
  0x4b   :  { %1086 = vmatprep.subr.bf16.mxu0 %v1401_v24  ;;  %1179 = vmatprep.subr.bf16.mxu1 %v1403_v25  ;;  %v1448_v24 = vcombine.low %v92_v8, %v96_v9  ;;  %v1450_v25 = vcombine.low %v93_v12, %v97_v13  ;;  %v1459_v27 = vcombine.high %v101_v21, %v105_v22  ;;  %v148_v13 = vld [vmem:[%s2461_s1 + $0x3d0] sm:$0xff] }
  0x4c   :  { %v1458_v35 = vcombine.low %v101_v21, %v105_v22 }
  0x4d   :  { %939 = vmatmul.mubr.bf16.gmra.mrb[4].mxu0 %v1810_v30  ;;  %1032 = vmatmul.mubr.bf16.gmra.mrb[4].mxu1 %v1810_v30 }
  0x4e   :  { %1087 = vmatpush1.bf16.msra.mxu0 %v1400_v31  ;;  %1180 = vmatpush1.bf16.msra.mxu1 %v1402_v32  ;;  %v1935_v31 = vld [vmem:[%s2462_s0 + $0x54] ss:$8 sps:$4 sm:$0xff]  }
  0x4f   :  { %1088 = vmatprep.subr.bf16.mxu0 %v1409_v33  ;;  %1181 = vmatprep.subr.bf16.mxu1 %v1411_v34  ;;  %v109_v32 = vld [vmem:[%s2461_s1 + $0x298] sm:$0xff]  ;;  %v1456_v34 = vcombine.low %v100_v18, %v104_v20 }
  0x50   :  { %948 = vmatprep.mubr.bf16.mxu0 %v1821_v37  ;;  %1041 = vmatprep.mubr.bf16.mxu1 %v1821_v37  ;;  %v113_v33 = vld [vmem:[%s2461_s1 + $0x2b8] sm:$0xff] }
  0x51   :  { %v1467_v38 = vcombine.high %v109_v32, %v113_v33  ;;  %v1466_v45 = vcombine.low %v109_v32, %v113_v33 }
  0x52   :  { %1089 = vmatpush1.bf16.msra.mxu0 %v1408_v40  ;;  %1182 = vmatpush1.bf16.msra.mxu1 %v1410_v41  ;;  %v120_v40 = vld [vmem:[%s2461_s1 + $0x2f0] sm:$0xff]  ;;  %v117_v41 = vld [vmem:[%s2461_s1 + $0x2d8] sm:$0xff] }
  0x53   :  { %1090 = vmatprep.subr.bf16.mxu0 %v1417_v42  ;;  %1183 = vmatprep.subr.bf16.mxu1 %v1419_v43  ;;  %v121_v42 = vld [vmem:[%s2461_s1 + $0x2f8] sm:$0xff]  ;;  %v1473_v46 = vcombine.high %v116_v39, %v120_v40  ;;  %v1472_v53 = vcombine.low %v116_v39, %v120_v40 }
  0x54   :  { %v1962_v43 = vld [vmem:[%s2462_s0 + $0x50] ss:$8 sps:$4 sm:$0xff]   ;;  %v1475_v47 = vcombine.high %v117_v41, %v121_v42  ;;  %v1474_v54 = vcombine.low %v117_v41, %v121_v42 }
  0x55   :  { %949 = vmatmul.mubr.bf16.gmra.mrb[8].mxu0 %v1848_v48  ;;  %1042 = vmatmul.mubr.bf16.gmra.mrb[8].mxu1 %v1848_v48 }
  0x56   :  { %1091 = vmatpush1.bf16.msra.mxu0 %v1416_v49  ;;  %1184 = vmatpush1.bf16.msra.mxu1 %v1418_v50  ;;  %v124_v49 = vld [vmem:[%s2461_s1 + $0x310] sm:$0xff] }
  0x57   :  { %1092 = vmatprep.subr.bf16.mxu0 %v1425_v51  ;;  %1185 = vmatprep.subr.bf16.mxu1 %v1427_v52  ;;  %v128_v50 = vld [vmem:[%s2461_s1 + $0x330] sm:$0xff]  ;;  %v125_v51 = vld [vmem:[%s2461_s1 + $0x318] sm:$0xff] }
  0x58   :  { %958 = vmatprep.mubr.bf16.mxu0 %v1859_v55  ;;  %1051 = vmatprep.mubr.bf16.mxu1 %v1859_v55  ;;  %v129_v52 = vld [vmem:[%s2461_s1 + $0x338] sm:$0xff]  ;;  %v1481_v57 = vcombine.high %v124_v49, %v128_v50  ;;  %v1480_v63 = vcombine.low %v124_v49, %v128_v50 }
  0x59   :  { %v1483_v58 = vcombine.high %v125_v51, %v129_v52  ;;  %v1482_v0 = vcombine.low %v125_v51, %v129_v52 }
  0x5a   :  { %1093 = vmatpush1.bf16.msra.mxu0 %v1424_v59  ;;  %1186 = vmatpush1.bf16.msra.mxu1 %v1426_v60  ;;  %v132_v59 = vld [vmem:[%s2461_s1 + $0x350] sm:$0xff] }
  0x5b   :  { %1094 = vmatprep.subr.bf16.mxu0 %v1433_v61  ;;  %1187 = vmatprep.subr.bf16.mxu1 %v1435_v62  ;;  %v136_v60 = vld [vmem:[%s2461_s1 + $0x370] sm:$0xff]  ;;  %v133_v61 = vld [vmem:[%s2461_s1 + $0x358] sm:$0xff] }
  0x5c   :  { %v137_v62 = vld [vmem:[%s2461_s1 + $0x378] sm:$0xff]  ;;  %v1489_v1 = vcombine.high %v132_v59, %v136_v60 }
  0x5d   :  { %959 = vmatmul.mubr.bf16.gmra.mrb[12].mxu0 %v1886_v3  ;;  %1052 = vmatmul.mubr.bf16.gmra.mrb[12].mxu1 %v1886_v3  ;;  %v1491_v2 = vcombine.high %v133_v61, %v137_v62  ;;  %v1490_v8 = vcombine.low %v133_v61, %v137_v62 }
  0x5e   :  { %1095 = vmatpush1.bf16.msra.mxu0 %v1432_v4  ;;  %1188 = vmatpush1.bf16.msra.mxu1 %v1434_v5  ;;  %v140_v4 = vld [vmem:[%s2461_s1 + $0x390] sm:$0xff] }
  0x5f   :  { %1096 = vmatprep.subr.bf16.mxu0 %v1441_v6  ;;  %1189 = vmatprep.subr.bf16.mxu1 %v1443_v7  ;;  %v144_v5 = vld [vmem:[%s2461_s1 + $0x3b0] sm:$0xff]  ;;  %v145_v6 = vld [vmem:[%s2461_s1 + $0x3b8] sm:$0xff]  ;;  %v1488_v7 = vcombine.low %v132_v59, %v136_v60 }
  0x60   :  { %968 = vmatprep.mubr.bf16.mxu0 %v1897_v11  ;;  %1061 = vmatprep.mubr.bf16.mxu1 %v1897_v11  ;;  %v1497_v9 = vcombine.high %v140_v4, %v144_v5 }
  0x62   :  { %1097 = vmatpush1.bf16.msra.mxu0 %v1440_v14  ;;  %1190 = vmatpush1.bf16.msra.mxu1 %v1442_v15  ;;  %v152_v14 = vld [vmem:[%s2461_s1 + $0x3f0] sm:$0xff]  ;;  %v149_v15 = vld [vmem:[%s2461_s1 + $0x3d8] sm:$0xff] }
  0x63   :  { %1098 = vmatprep.subr.bf16.mxu0 %v1449_v16  ;;  %1191 = vmatprep.subr.bf16.mxu1 %v1451_v17  ;;  %v153_v16 = vld [vmem:[%s2461_s1 + $0x3f8] sm:$0xff]  ;;  %v1496_v17 = vcombine.low %v140_v4, %v144_v5  ;;  %v1505_v20 = vcombine.high %v148_v13, %v152_v14  ;;  %v1504_v22 = vcombine.low %v148_v13, %v152_v14 }
  0x64   :  { %v1507_v21 = vcombine.high %v149_v15, %v153_v16 }
  0x65   :  { %969 = vmatmul.mubr.bf16.gmra.mrb[16].mxu0 %v1924_v23  ;;  %1062 = vmatmul.mubr.bf16.gmra.mrb[16].mxu1 %v1924_v23 }
  0x66   :  { %1099 = vmatpush1.bf16.msra.mxu0 %v1448_v24  ;;  %1192 = vmatpush1.bf16.msra.mxu1 %v1450_v25  ;;  %v1506_v24 = vcombine.low %v149_v15, %v153_v16 }
  0x67   :  { %1100 = vmatprep.subr.bf16.mxu0 %v1457_v26  ;;  %1193 = vmatprep.subr.bf16.mxu1 %v1459_v27 }
  0x68   :  { %978 = vmatprep.mubr.bf16.mxu0 %v1935_v31  ;;  %1071 = vmatprep.mubr.bf16.mxu1 %v1935_v31 }
  0x6a   :  { %1101 = vmatpush1.bf16.msra.mxu0 %v1456_v34  ;;  %1194 = vmatpush1.bf16.msra.mxu1 %v1458_v35 }
  0x6b   :  { %1102 = vmatprep.subr.bf16.mxu0 %v1465_v36  ;;  %1195 = vmatprep.subr.bf16.mxu1 %v1467_v38 }
  0x6d   :  { %979 = vmatmul.mubr.bf16.gmra.mrb[20].mxu0 %v1962_v43  ;;  %1072 = vmatmul.mubr.bf16.gmra.mrb[20].mxu1 %v1962_v43 }
  0x6e   :  { %1103 = vmatpush1.bf16.msra.mxu0 %v1464_v44  ;;  %1196 = vmatpush1.bf16.msra.mxu1 %v1466_v45 }
  0x6f   :  { %1104 = vmatprep.subr.bf16.mxu0 %v1473_v46  ;;  %1197 = vmatprep.subr.bf16.mxu1 %v1475_v47 }
  0x70   :  { %1114 = vmatprep.mubr.bf16.mxu0 %v1639_v56  ;;  %1207 = vmatprep.mubr.bf16.mxu1 %v1639_v56  ;;  %v141_v56 = vld [vmem:[%s2461_s1 + $0x398] sm:$0xff] }
  0x71   :  { %v1499_v12 = vcombine.high %v141_v56, %v145_v6  ;;  %v1498_v18 = vcombine.low %v141_v56, %v145_v6 }
  0x72   :  { %1105 = vmatpush1.bf16.msra.mxu0 %v1472_v53  ;;  %1198 = vmatpush1.bf16.msra.mxu1 %v1474_v54 }
  0x73   :  { %1106 = vmatprep.subr.bf16.mxu0 %v1481_v57  ;;  %1199 = vmatprep.subr.bf16.mxu1 %v1483_v58 }
  0x76   :  { %1107 = vmatpush1.bf16.msra.mxu0 %v1480_v63  ;;  %1200 = vmatpush1.bf16.msra.mxu1 %v1482_v0 }
  0x77   :  { %1108 = vmatprep.subr.bf16.mxu0 %v1489_v1  ;;  %1201 = vmatprep.subr.bf16.mxu1 %v1491_v2 }
  0x7a   :  { %1109 = vmatpush1.bf16.msra.mxu0 %v1488_v7  ;;  %1202 = vmatpush1.bf16.msra.mxu1 %v1490_v8 }
  0x7b   :  { %1110 = vmatprep.subr.bf16.mxu0 %v1497_v9  ;;  %1203 = vmatprep.subr.bf16.mxu1 %v1499_v12 }
  0x7e   :  { %1111 = vmatpush1.bf16.msra.mxu0 %v1496_v17  ;;  %1204 = vmatpush1.bf16.msra.mxu1 %v1498_v18 }
  0x7f   :  { %1112 = vmatprep.subr.bf16.mxu0 %v1505_v20  ;;  %1205 = vmatprep.subr.bf16.mxu1 %v1507_v21 }
  0x82   :  { %1113 = vmatpush1.bf16.msra.mxu0 %v1504_v22  ;;  %1206 = vmatpush1.bf16.msra.mxu1 %v1506_v24 }
  0x85   :  { %1115 = vmatmul.mubr.bf16.vlgmr.msra.gmra.mrb[24].mxu0 %v1766_v10  ;;  %1208 = vmatmul.mubr.bf16.vlgmr.msra.gmra.mrb[24].mxu1 %v1766_v10  ;;  %v156_v10 = vlaneseq }
  0x86   :  { %1124 = vmatprep.mubr.bf16.mxu0 %v1783_v19  ;;  %1217 = vmatprep.mubr.bf16.mxu1 %v1783_v19 }
  0x87   :  { %v2038_v19 = vshrl.u32 %v156_v10, 7 }
  0x8d   :  { %1125 = vmatmul.mubr.bf16.gmra.mrb[28].mxu0 %v1810_v30  ;;  %1218 = vmatmul.mubr.bf16.gmra.mrb[28].mxu1 %v1810_v30  ;;  %v158_v30 = vsub.s32 0, %v2038_v19 }
  0x8e   :  { %1134 = vmatprep.mubr.bf16.mxu0 %v1821_v37  ;;  %1227 = vmatprep.mubr.bf16.mxu1 %v1821_v37  ;;  %v2044_v37 = vld [vmem:[%s2463_s2] sm:$0xff] }
  0x95   :  { %1135 = vmatmul.mubr.bf16.gmra.mrb[32].mxu0 %v1848_v48  ;;  %1228 = vmatmul.mubr.bf16.gmra.mrb[32].mxu1 %v1848_v48  ;;  %v166_v48 = vsub.s32 2, %v2038_v19 }
  0x96   :  { %1144 = vmatprep.mubr.bf16.mxu0 %v1859_v55  ;;  %1237 = vmatprep.mubr.bf16.mxu1 %v1859_v55  ;;  %v162_v55 = vsub.s32 1, %v2038_v19 }
  0x98   :  { %v2056_v25 = vrot.slane %v2044_v37, %v162_v55 }
  0x9d   :  { %1145 = vmatmul.mubr.bf16.gmra.mrb[36].mxu0 %v1886_v3  ;;  %1238 = vmatmul.mubr.bf16.gmra.mrb[36].mxu1 %v1886_v3  ;;  %v170_v3 = vsub.s32 3, %v2038_v19 }
  0x9e   :  { %1154 = vmatprep.mubr.bf16.mxu0 %v1897_v11  ;;  %1247 = vmatprep.mubr.bf16.mxu1 %v1897_v11  ;;  %v2050_v11 = vrot.slane %v2044_v37, %v158_v30 }
  0x9f   :  { %v2059_v26 = vrot.slane %v2044_v37, %v170_v3 }
  0xa5   :  { %1155 = vmatmul.mubr.bf16.gmra.mrb[40].mxu0 %v1924_v23  ;;  %1248 = vmatmul.mubr.bf16.gmra.mrb[40].mxu1 %v1924_v23  ;;  %v2053_v23 = vrot.slane %v2044_v37, %v166_v48 }
  0xa6   :  { %1164 = vmatprep.mubr.bf16.mxu0 %v1935_v31  ;;  %1257 = vmatprep.mubr.bf16.mxu1 %v1935_v31 }
  0xad   :  { %1165 = vmatmul.mubr.bf16.gmra.mrb[44].mxu0 %v1962_v43  ;;  %1258 = vmatmul.mubr.bf16.gmra.mrb[44].mxu1 %v1962_v43 }
 0x118   :  { %v930_v27 = vpop.f32.mrb[0].mxu0  ;;  %v1023_v29 = vpop.f32.mrb[0].mxu1 }
 0x119   :  { %v931_v28 = vadd.f32 %v930_v27, %v2050_v11  ;;  %v932_v31 = vpop.f32.mrb[1].mxu0  ;;  %v1024_v32 = vadd.f32 %v1023_v29, %v2053_v23  ;;  %v1025_v34 = vpop.f32.mrb[1].mxu1 }
 0x11a   :  { %v933_v33 = vadd.f32 %v932_v31, %v2056_v25  ;;  %v934_v35 = vpop.f32.mrb[2].mxu0  ;;  %v1026_v36 = vadd.f32 %v1025_v34, %v2059_v26  ;;  %v1027_v39 = vpop.f32.mrb[2].mxu1 }
 0x11b   :  { %1268 = vst [vmem:[%s2464_s3] sm:$0xff] %v931_v28  ;;  %v935_v38 = vadd.f32 %v934_v35, %v2050_v11  ;;  %v936_v40 = vpop.f32.mrb[3].mxu0  ;;  %1270 = vst [vmem:[%s2464_s3 + $0x10] sm:$0xff] %v1024_v32  ;;  %v1028_v41 = vadd.f32 %v1027_v39, %v2053_v23  ;;  %v1029_v43 = vpop.f32.mrb[3].mxu1 }
 0x11c   :  { %1269 = vst [vmem:[%s2464_s3 + $0x8] sm:$0xff] %v933_v33  ;;  %v937_v42 = vadd.f32 %v936_v40, %v2056_v25  ;;  %1271 = vst [vmem:[%s2464_s3 + $0x18] sm:$0xff] %v1026_v36  ;;  %v1030_v44 = vadd.f32 %v1029_v43, %v2059_v26 }
 0x11d   :  { %1276 = vst [vmem:[%s2464_s3 + $0x40] sm:$0xff] %v935_v38  ;;  %1278 = vst [vmem:[%s2464_s3 + $0x50] sm:$0xff] %v1028_v41 }
 0x11e   :  { %1277 = vst [vmem:[%s2464_s3 + $0x48] sm:$0xff] %v937_v42  ;;  %1279 = vst [vmem:[%s2464_s3 + $0x58] sm:$0xff] %v1030_v44 }
 0x120   :  { %v940_v45 = vpop.f32.mrb[4].mxu0  ;;  %v1033_v47 = vpop.f32.mrb[4].mxu1 }
 0x121   :  { %v941_v46 = vadd.f32 %v940_v45, %v2050_v11  ;;  %v942_v49 = vpop.f32.mrb[5].mxu0  ;;  %v1034_v50 = vadd.f32 %v1033_v47, %v2053_v23  ;;  %v1035_v52 = vpop.f32.mrb[5].mxu1 }
 0x122   :  { %v943_v51 = vadd.f32 %v942_v49, %v2056_v25  ;;  %v944_v53 = vpop.f32.mrb[6].mxu0  ;;  %v1036_v54 = vadd.f32 %v1035_v52, %v2059_v26  ;;  %v1037_v58 = vpop.f32.mrb[6].mxu1 }
 0x123   :  { %1284 = vst [vmem:[%s2464_s3 + $0x80] sm:$0xff] %v941_v46  ;;  %v945_v57 = vadd.f32 %v944_v53, %v2050_v11  ;;  %v946_v59 = vpop.f32.mrb[7].mxu0  ;;  %1286 = vst [vmem:[%s2464_s3 + $0x90] sm:$0xff] %v1034_v50  ;;  %v1038_v60 = vadd.f32 %v1037_v58, %v2053_v23  ;;  %v1039_v62 = vpop.f32.mrb[7].mxu1 }
 0x124   :  { %1285 = vst [vmem:[%s2464_s3 + $0x88] sm:$0xff] %v943_v51  ;;  %v947_v61 = vadd.f32 %v946_v59, %v2056_v25  ;;  %1287 = vst [vmem:[%s2464_s3 + $0x98] sm:$0xff] %v1036_v54  ;;  %v1040_v63 = vadd.f32 %v1039_v62, %v2059_v26 }
 0x125   :  { %1292 = vst [vmem:[%s2464_s3 + $0xc0] sm:$0xff] %v945_v57  ;;  %1294 = vst [vmem:[%s2464_s3 + $0xd0] sm:$0xff] %v1038_v60 }
 0x126   :  { %1293 = vst [vmem:[%s2464_s3 + $0xc8] sm:$0xff] %v947_v61  ;;  %1295 = vst [vmem:[%s2464_s3 + $0xd8] sm:$0xff] %v1040_v63 }
 0x128   :  { %v950_v0 = vpop.f32.mrb[8].mxu0  ;;  %v1043_v2 = vpop.f32.mrb[8].mxu1 }
 0x129   :  { %v951_v1 = vadd.f32 %v950_v0, %v2050_v11  ;;  %v952_v4 = vpop.f32.mrb[9].mxu0  ;;  %v1044_v5 = vadd.f32 %v1043_v2, %v2053_v23  ;;  %v1045_v6 = vpop.f32.mrb[9].mxu1 }
 0x12a   :  { %v953_v56 = vadd.f32 %v952_v4, %v2056_v25  ;;  %v954_v7 = vpop.f32.mrb[10].mxu0  ;;  %v1046_v8 = vadd.f32 %v1045_v6, %v2059_v26  ;;  %v1047_v12 = vpop.f32.mrb[10].mxu1 }
 0x12b   :  { %1300 = vst [vmem:[%s2464_s3 + $0x100] sm:$0xff] %v951_v1  ;;  %v955_v9 = vadd.f32 %v954_v7, %v2050_v11  ;;  %v956_v13 = vpop.f32.mrb[11].mxu0  ;;  %1302 = vst [vmem:[%s2464_s3 + $0x110] sm:$0xff] %v1044_v5  ;;  %v1048_v14 = vadd.f32 %v1047_v12, %v2053_v23  ;;  %v1049_v16 = vpop.f32.mrb[11].mxu1 }
 0x12c   :  { %1301 = vst [vmem:[%s2464_s3 + $0x108] sm:$0xff] %v953_v56  ;;  %v957_v15 = vadd.f32 %v956_v13, %v2056_v25  ;;  %1303 = vst [vmem:[%s2464_s3 + $0x118] sm:$0xff] %v1046_v8  ;;  %v1050_v17 = vadd.f32 %v1049_v16, %v2059_v26  ;;  %v178_v56 = vsub.s32 5, %v2038_v19 }
 0x12d   :  { %1308 = vst [vmem:[%s2464_s3 + $0x140] sm:$0xff] %v955_v9  ;;  %1310 = vst [vmem:[%s2464_s3 + $0x150] sm:$0xff] %v1048_v14 }
 0x12e   :  { %1309 = vst [vmem:[%s2464_s3 + $0x148] sm:$0xff] %v957_v15  ;;  %1311 = vst [vmem:[%s2464_s3 + $0x158] sm:$0xff] %v1050_v17  ;;  %v2264_v8 = vrot.slane %v2044_v37, %v178_v56 }
 0x130   :  { %v960_v18 = vpop.f32.mrb[12].mxu0  ;;  %v1053_v21 = vpop.f32.mrb[12].mxu1 }
 0x131   :  { %v961_v20 = vadd.f32 %v960_v18, %v2050_v11  ;;  %v962_v22 = vpop.f32.mrb[13].mxu0  ;;  %v1054_v24 = vadd.f32 %v1053_v21, %v2053_v23  ;;  %v1055_v30 = vpop.f32.mrb[13].mxu1 }
 0x132   :  { %v963_v10 = vadd.f32 %v962_v22, %v2056_v25  ;;  %v964_v48 = vpop.f32.mrb[14].mxu0  ;;  %v1056_v55 = vadd.f32 %v1055_v30, %v2059_v26  ;;  %v1057_v27 = vpop.f32.mrb[14].mxu1 }
 0x133   :  { %1316 = vst [vmem:[%s2464_s3 + $0x180] sm:$0xff] %v961_v20  ;;  %v965_v3 = vadd.f32 %v964_v48, %v2050_v11  ;;  %v966_v28 = vpop.f32.mrb[15].mxu0  ;;  %1318 = vst [vmem:[%s2464_s3 + $0x190] sm:$0xff] %v1054_v24  ;;  %v1058_v29 = vadd.f32 %v1057_v27, %v2053_v23  ;;  %v1059_v32 = vpop.f32.mrb[15].mxu1 }
 0x134   :  { %1317 = vst [vmem:[%s2464_s3 + $0x188] sm:$0xff] %v963_v10  ;;  %v967_v31 = vadd.f32 %v966_v28, %v2056_v25  ;;  %1319 = vst [vmem:[%s2464_s3 + $0x198] sm:$0xff] %v1056_v55  ;;  %v1060_v33 = vadd.f32 %v1059_v32, %v2059_v26 }
 0x135   :  { %1324 = vst [vmem:[%s2464_s3 + $0x1c0] sm:$0xff] %v965_v3  ;;  %1326 = vst [vmem:[%s2464_s3 + $0x1d0] sm:$0xff] %v1058_v29 }
 0x136   :  { %1325 = vst [vmem:[%s2464_s3 + $0x1c8] sm:$0xff] %v967_v31  ;;  %1327 = vst [vmem:[%s2464_s3 + $0x1d8] sm:$0xff] %v1060_v33 }
 0x138   :  { %v970_v34 = vpop.f32.mrb[16].mxu0  ;;  %v1063_v36 = vpop.f32.mrb[16].mxu1 }
 0x139   :  { %v971_v35 = vadd.f32 %v970_v34, %v2050_v11  ;;  %v972_v38 = vpop.f32.mrb[17].mxu0  ;;  %v1064_v39 = vadd.f32 %v1063_v36, %v2053_v23  ;;  %v1065_v41 = vpop.f32.mrb[17].mxu1 }
 0x13a   :  { %v973_v40 = vadd.f32 %v972_v38, %v2056_v25  ;;  %v974_v42 = vpop.f32.mrb[18].mxu0  ;;  %v1066_v43 = vadd.f32 %v1065_v41, %v2059_v26  ;;  %v1067_v45 = vpop.f32.mrb[18].mxu1 }
 0x13b   :  { %1332 = vst [vmem:[%s2464_s3 + $0x200] sm:$0xff] %v971_v35  ;;  %v975_v44 = vadd.f32 %v974_v42, %v2050_v11  ;;  %v976_v46 = vpop.f32.mrb[19].mxu0  ;;  %1334 = vst [vmem:[%s2464_s3 + $0x210] sm:$0xff] %v1064_v39  ;;  %v1068_v47 = vadd.f32 %v1067_v45, %v2053_v23  ;;  %v1069_v50 = vpop.f32.mrb[19].mxu1 }
 0x13c   :  { %1333 = vst [vmem:[%s2464_s3 + $0x208] sm:$0xff] %v973_v40  ;;  %v977_v49 = vadd.f32 %v976_v46, %v2056_v25  ;;  %1335 = vst [vmem:[%s2464_s3 + $0x218] sm:$0xff] %v1066_v43  ;;  %v1070_v51 = vadd.f32 %v1069_v50, %v2059_v26 }
 0x13d   :  { %1340 = vst [vmem:[%s2464_s3 + $0x240] sm:$0xff] %v975_v44  ;;  %1342 = vst [vmem:[%s2464_s3 + $0x250] sm:$0xff] %v1068_v47 }
 0x13e   :  { %1341 = vst [vmem:[%s2464_s3 + $0x248] sm:$0xff] %v977_v49  ;;  %1343 = vst [vmem:[%s2464_s3 + $0x258] sm:$0xff] %v1070_v51 }
 0x140   :  { %v980_v52 = vpop.f32.mrb[20].mxu0  ;;  %v1073_v54 = vpop.f32.mrb[20].mxu1 }
 0x141   :  { %v981_v53 = vadd.f32 %v980_v52, %v2050_v11  ;;  %v982_v57 = vpop.f32.mrb[21].mxu0  ;;  %v1074_v58 = vadd.f32 %v1073_v54, %v2053_v23  ;;  %v1075_v60 = vpop.f32.mrb[21].mxu1 }
 0x142   :  { %v983_v59 = vadd.f32 %v982_v57, %v2056_v25  ;;  %v984_v61 = vpop.f32.mrb[22].mxu0  ;;  %v1076_v62 = vadd.f32 %v1075_v60, %v2059_v26  ;;  %v1077_v0 = vpop.f32.mrb[22].mxu1 }
 0x143   :  { %1348 = vst [vmem:[%s2464_s3 + $0x280] sm:$0xff] %v981_v53  ;;  %v985_v63 = vadd.f32 %v984_v61, %v2050_v11  ;;  %v986_v1 = vpop.f32.mrb[23].mxu0  ;;  %1350 = vst [vmem:[%s2464_s3 + $0x290] sm:$0xff] %v1074_v58  ;;  %v1078_v2 = vadd.f32 %v1077_v0, %v2053_v23  ;;  %v1079_v5 = vpop.f32.mrb[23].mxu1  ;;  %v174_v23 = vsub.s32 4, %v2038_v19 }
 0x144   :  { %1349 = vst [vmem:[%s2464_s3 + $0x288] sm:$0xff] %v983_v59  ;;  %v987_v4 = vadd.f32 %v986_v1, %v2056_v25  ;;  %1351 = vst [vmem:[%s2464_s3 + $0x298] sm:$0xff] %v1076_v62  ;;  %v1080_v11 = vadd.f32 %v1079_v5, %v2059_v26  ;;  %v182_v25 = vsub.s32 6, %v2038_v19  ;;  %v186_v26 = vsub.s32 7, %v2038_v19 }
 0x145   :  { %1356 = vst [vmem:[%s2464_s3 + $0x2c0] sm:$0xff] %v985_v63  ;;  %1358 = vst [vmem:[%s2464_s3 + $0x2d0] sm:$0xff] %v1078_v2  ;;  %v2258_v6 = vrot.slane %v2044_v37, %v174_v23 }
 0x146   :  { %1357 = vst [vmem:[%s2464_s3 + $0x2c8] sm:$0xff] %v987_v4  ;;  %1359 = vst [vmem:[%s2464_s3 + $0x2d8] sm:$0xff] %v1080_v11  ;;  %v2261_v7 = vrot.slane %v2044_v37, %v182_v25  ;;  %v2267_v9 = vrot.slane %v2044_v37, %v186_v26 }
 0x158   :  { %v1116_v12 = vpop.f32.mrb[24].mxu0  ;;  %v1209_v14 = vpop.f32.mrb[24].mxu1 }
 0x159   :  { %v1117_v13 = vadd.f32 %v1116_v12, %v2258_v6  ;;  %v1118_v15 = vpop.f32.mrb[25].mxu0  ;;  %v1210_v16 = vadd.f32 %v1209_v14, %v2261_v7  ;;  %v1211_v17 = vpop.f32.mrb[25].mxu1 }
 0x15a   :  { %v1119_v19 = vadd.f32 %v1118_v15, %v2264_v8  ;;  %v1120_v18 = vpop.f32.mrb[26].mxu0  ;;  %v1212_v20 = vadd.f32 %v1211_v17, %v2267_v9  ;;  %v1213_v21 = vpop.f32.mrb[26].mxu1 }
 0x15b   :  { %1272 = vst [vmem:[%s2464_s3 + $0x20] sm:$0xff] %v1117_v13  ;;  %v1121_v37 = vadd.f32 %v1120_v18, %v2258_v6  ;;  %v1122_v22 = vpop.f32.mrb[27].mxu0  ;;  %1274 = vst [vmem:[%s2464_s3 + $0x30] sm:$0xff] %v1210_v16  ;;  %v1214_v24 = vadd.f32 %v1213_v21, %v2261_v7  ;;  %v1215_v30 = vpop.f32.mrb[27].mxu1 }
 0x15c   :  { %1273 = vst [vmem:[%s2464_s3 + $0x28] sm:$0xff] %v1119_v19  ;;  %v1123_v10 = vadd.f32 %v1122_v22, %v2264_v8  ;;  %1275 = vst [vmem:[%s2464_s3 + $0x38] sm:$0xff] %v1212_v20  ;;  %v1216_v48 = vadd.f32 %v1215_v30, %v2267_v9 }
 0x15d   :  { %1280 = vst [vmem:[%s2464_s3 + $0x60] sm:$0xff] %v1121_v37  ;;  %1282 = vst [vmem:[%s2464_s3 + $0x70] sm:$0xff] %v1214_v24 }
 0x15e   :  { %1281 = vst [vmem:[%s2464_s3 + $0x68] sm:$0xff] %v1123_v10  ;;  %1283 = vst [vmem:[%s2464_s3 + $0x78] sm:$0xff] %v1216_v48 }
 0x160   :  { %v1126_v55 = vpop.f32.mrb[28].mxu0  ;;  %v1219_v27 = vpop.f32.mrb[28].mxu1 }
 0x161   :  { %v1127_v3 = vadd.f32 %v1126_v55, %v2258_v6  ;;  %v1128_v28 = vpop.f32.mrb[29].mxu0  ;;  %v1220_v29 = vadd.f32 %v1219_v27, %v2261_v7  ;;  %v1221_v32 = vpop.f32.mrb[29].mxu1 }
 0x162   :  { %v1129_v31 = vadd.f32 %v1128_v28, %v2264_v8  ;;  %v1130_v33 = vpop.f32.mrb[30].mxu0  ;;  %v1222_v34 = vadd.f32 %v1221_v32, %v2267_v9  ;;  %v1223_v36 = vpop.f32.mrb[30].mxu1 }
 0x163   :  { %1288 = vst [vmem:[%s2464_s3 + $0xa0] sm:$0xff] %v1127_v3  ;;  %v1131_v35 = vadd.f32 %v1130_v33, %v2258_v6  ;;  %v1132_v38 = vpop.f32.mrb[31].mxu0  ;;  %1290 = vst [vmem:[%s2464_s3 + $0xb0] sm:$0xff] %v1220_v29  ;;  %v1224_v39 = vadd.f32 %v1223_v36, %v2261_v7  ;;  %v1225_v41 = vpop.f32.mrb[31].mxu1 }
 0x164   :  { %1289 = vst [vmem:[%s2464_s3 + $0xa8] sm:$0xff] %v1129_v31  ;;  %v1133_v40 = vadd.f32 %v1132_v38, %v2264_v8  ;;  %1291 = vst [vmem:[%s2464_s3 + $0xb8] sm:$0xff] %v1222_v34  ;;  %v1226_v42 = vadd.f32 %v1225_v41, %v2267_v9 }
 0x165   :  { %1296 = vst [vmem:[%s2464_s3 + $0xe0] sm:$0xff] %v1131_v35  ;;  %1298 = vst [vmem:[%s2464_s3 + $0xf0] sm:$0xff] %v1224_v39 }
 0x166   :  { %1297 = vst [vmem:[%s2464_s3 + $0xe8] sm:$0xff] %v1133_v40  ;;  %1299 = vst [vmem:[%s2464_s3 + $0xf8] sm:$0xff] %v1226_v42 }
 0x168   :  { %v1136_v43 = vpop.f32.mrb[32].mxu0  ;;  %v1229_v45 = vpop.f32.mrb[32].mxu1 }
 0x169   :  { %v1137_v44 = vadd.f32 %v1136_v43, %v2258_v6  ;;  %v1138_v46 = vpop.f32.mrb[33].mxu0  ;;  %v1230_v47 = vadd.f32 %v1229_v45, %v2261_v7  ;;  %v1231_v50 = vpop.f32.mrb[33].mxu1 }
 0x16a   :  { %v1139_v49 = vadd.f32 %v1138_v46, %v2264_v8  ;;  %v1140_v51 = vpop.f32.mrb[34].mxu0  ;;  %v1232_v52 = vadd.f32 %v1231_v50, %v2267_v9  ;;  %v1233_v54 = vpop.f32.mrb[34].mxu1 }
 0x16b   :  { %1304 = vst [vmem:[%s2464_s3 + $0x120] sm:$0xff] %v1137_v44  ;;  %v1141_v53 = vadd.f32 %v1140_v51, %v2258_v6  ;;  %v1142_v57 = vpop.f32.mrb[35].mxu0  ;;  %1306 = vst [vmem:[%s2464_s3 + $0x130] sm:$0xff] %v1230_v47  ;;  %v1234_v58 = vadd.f32 %v1233_v54, %v2261_v7  ;;  %v1235_v60 = vpop.f32.mrb[35].mxu1 }
 0x16c   :  { %1305 = vst [vmem:[%s2464_s3 + $0x128] sm:$0xff] %v1139_v49  ;;  %v1143_v59 = vadd.f32 %v1142_v57, %v2264_v8  ;;  %1307 = vst [vmem:[%s2464_s3 + $0x138] sm:$0xff] %v1232_v52  ;;  %v1236_v61 = vadd.f32 %v1235_v60, %v2267_v9 }
 0x16d   :  { %1312 = vst [vmem:[%s2464_s3 + $0x160] sm:$0xff] %v1141_v53  ;;  %1314 = vst [vmem:[%s2464_s3 + $0x170] sm:$0xff] %v1234_v58 }
 0x16e   :  { %1313 = vst [vmem:[%s2464_s3 + $0x168] sm:$0xff] %v1143_v59  ;;  %1315 = vst [vmem:[%s2464_s3 + $0x178] sm:$0xff] %v1236_v61 }
 0x170   :  { %v1146_v62 = vpop.f32.mrb[36].mxu0  ;;  %v1239_v0 = vpop.f32.mrb[36].mxu1 }
 0x171   :  { %v1147_v63 = vadd.f32 %v1146_v62, %v2258_v6  ;;  %v1148_v1 = vpop.f32.mrb[37].mxu0  ;;  %v1240_v2 = vadd.f32 %v1239_v0, %v2261_v7  ;;  %v1241_v5 = vpop.f32.mrb[37].mxu1 }
 0x172   :  { %v1149_v4 = vadd.f32 %v1148_v1, %v2264_v8  ;;  %v1150_v11 = vpop.f32.mrb[38].mxu0  ;;  %v1242_v23 = vadd.f32 %v1241_v5, %v2267_v9  ;;  %v1243_v56 = vpop.f32.mrb[38].mxu1 }
 0x173   :  { %1320 = vst [vmem:[%s2464_s3 + $0x1a0] sm:$0xff] %v1147_v63  ;;  %v1151_v25 = vadd.f32 %v1150_v11, %v2258_v6  ;;  %v1152_v26 = vpop.f32.mrb[39].mxu0  ;;  %1322 = vst [vmem:[%s2464_s3 + $0x1b0] sm:$0xff] %v1240_v2  ;;  %v1244_v12 = vadd.f32 %v1243_v56, %v2261_v7  ;;  %v1245_v14 = vpop.f32.mrb[39].mxu1 }
 0x174   :  { %1321 = vst [vmem:[%s2464_s3 + $0x1a8] sm:$0xff] %v1149_v4  ;;  %v1153_v13 = vadd.f32 %v1152_v26, %v2264_v8  ;;  %1323 = vst [vmem:[%s2464_s3 + $0x1b8] sm:$0xff] %v1242_v23  ;;  %v1246_v15 = vadd.f32 %v1245_v14, %v2267_v9 }
 0x175   :  { %1328 = vst [vmem:[%s2464_s3 + $0x1e0] sm:$0xff] %v1151_v25  ;;  %1330 = vst [vmem:[%s2464_s3 + $0x1f0] sm:$0xff] %v1244_v12 }
 0x176   :  { %1329 = vst [vmem:[%s2464_s3 + $0x1e8] sm:$0xff] %v1153_v13  ;;  %1331 = vst [vmem:[%s2464_s3 + $0x1f8] sm:$0xff] %v1246_v15 }
 0x178   :  { %v1156_v16 = vpop.f32.mrb[40].mxu0  ;;  %v1249_v17 = vpop.f32.mrb[40].mxu1 }
 0x179   :  { %v1157_v19 = vadd.f32 %v1156_v16, %v2258_v6  ;;  %v1158_v18 = vpop.f32.mrb[41].mxu0  ;;  %v1250_v20 = vadd.f32 %v1249_v17, %v2261_v7  ;;  %v1251_v21 = vpop.f32.mrb[41].mxu1 }
 0x17a   :  { %v1159_v37 = vadd.f32 %v1158_v18, %v2264_v8  ;;  %v1160_v22 = vpop.f32.mrb[42].mxu0  ;;  %v1252_v24 = vadd.f32 %v1251_v21, %v2267_v9  ;;  %v1253_v30 = vpop.f32.mrb[42].mxu1 }
 0x17b   :  { %1336 = vst [vmem:[%s2464_s3 + $0x220] sm:$0xff] %v1157_v19  ;;  %v1161_v10 = vadd.f32 %v1160_v22, %v2258_v6  ;;  %v1162_v48 = vpop.f32.mrb[43].mxu0  ;;  %1338 = vst [vmem:[%s2464_s3 + $0x230] sm:$0xff] %v1250_v20  ;;  %v1254_v55 = vadd.f32 %v1253_v30, %v2261_v7  ;;  %v1255_v27 = vpop.f32.mrb[43].mxu1 }
 0x17c   :  { %1337 = vst [vmem:[%s2464_s3 + $0x228] sm:$0xff] %v1159_v37  ;;  %v1163_v3 = vadd.f32 %v1162_v48, %v2264_v8  ;;  %1339 = vst [vmem:[%s2464_s3 + $0x238] sm:$0xff] %v1252_v24  ;;  %v1256_v28 = vadd.f32 %v1255_v27, %v2267_v9 }
 0x17d   :  { %1344 = vst [vmem:[%s2464_s3 + $0x260] sm:$0xff] %v1161_v10  ;;  %1346 = vst [vmem:[%s2464_s3 + $0x270] sm:$0xff] %v1254_v55 }
 0x17e   :  { %1345 = vst [vmem:[%s2464_s3 + $0x268] sm:$0xff] %v1163_v3  ;;  %1347 = vst [vmem:[%s2464_s3 + $0x278] sm:$0xff] %v1256_v28 }
 0x180   :  { %v1166_v29 = vpop.f32.mrb[44].mxu0  ;;  %v1259_v32 = vpop.f32.mrb[44].mxu1 }
 0x181   :  { %v1167_v31 = vadd.f32 %v1166_v29, %v2258_v6  ;;  %v1168_v33 = vpop.f32.mrb[45].mxu0  ;;  %v1260_v34 = vadd.f32 %v1259_v32, %v2261_v7  ;;  %v1261_v36 = vpop.f32.mrb[45].mxu1 }
 0x182   :  { %v1169_v35 = vadd.f32 %v1168_v33, %v2264_v8  ;;  %v1170_v38 = vpop.f32.mrb[46].mxu0  ;;  %v1262_v39 = vadd.f32 %v1261_v36, %v2267_v9  ;;  %v1263_v41 = vpop.f32.mrb[46].mxu1 }
 0x183   :  { %1352 = vst [vmem:[%s2464_s3 + $0x2a0] sm:$0xff] %v1167_v31  ;;  %v1171_v40 = vadd.f32 %v1170_v38, %v2258_v6  ;;  %v1172_v42 = vpop.f32.mrb[47].mxu0  ;;  %1354 = vst [vmem:[%s2464_s3 + $0x2b0] sm:$0xff] %v1260_v34  ;;  %v1264_v43 = vadd.f32 %v1263_v41, %v2261_v7  ;;  %v1265_v45 = vpop.f32.mrb[47].mxu1 }
 0x184   :  { %1353 = vst [vmem:[%s2464_s3 + $0x2a8] sm:$0xff] %v1169_v35  ;;  %v1173_v44 = vadd.f32 %v1172_v42, %v2264_v8  ;;  %1355 = vst [vmem:[%s2464_s3 + $0x2b8] sm:$0xff] %v1262_v39  ;;  %v1266_v6 = vadd.f32 %v1265_v45, %v2267_v9 }
 0x185   :  { %1360 = vst [vmem:[%s2464_s3 + $0x2e0] sm:$0xff] %v1171_v40  ;;  %1362 = vst [vmem:[%s2464_s3 + $0x2f0] sm:$0xff] %v1264_v43 }
 0x186   :  { %1361 = vst [vmem:[%s2464_s3 + $0x2e8] sm:$0xff] %v1173_v44  ;;  %1363 = vst [vmem:[%s2464_s3 + $0x2f8] sm:$0xff] %v1266_v6 }

</bundles_post_ra>
